<compile_context>
chip_gen: v6e
topology: v6e:2x2x1
jax: 0.10.0
libtpu: 0.0.40
codegen_flags: <defaults>
</compile_context>

<pallas_src>
import jax
import jax.numpy as jnp
from jax.experimental import pallas as pl
from jax.experimental.pallas import tpu as pltpu

SEQ = 29          # peptide length implied by flatten(32*8): 29 -> 15 -> 8
IN_CH = 21        # input_classes
C1 = C2 = C3 = 32
L2, L3 = 15, 8
HID = 128
NCLS = 2
K = 5
LANE = 128        # lane-dense output width (logits live in lanes [0, NCLS))


def _pad_seq(a, left, right):
    """Zero-pad along the (leading, untiled) sequence axis."""
    zl = jnp.zeros((left,) + a.shape[1:], jnp.float32)
    zr = jnp.zeros((right,) + a.shape[1:], jnp.float32)
    return jnp.concatenate([zl, a, zr], axis=0)


def kcrnet_kernel(x_ref, w1_ref, b1_ref, w2_ref, b2_ref, w3_ref, b3_ref,
                  wl1_ref, bl1_ref, wl2_ref, bl2_ref, out_ref):
    B = x_ref.shape[1]                                     # batch block size

    def tap_matmul(a, w2d):
        # (L, B, Ci) @ (Ci, Co) -> (L, B, Co); reshape is tile-aligned (B % 8 == 0).
        L, _, Ci = a.shape
        y = jnp.dot(a.reshape(L * B, Ci), w2d, preferred_element_type=jnp.float32)
        return y.reshape(L, B, w2d.shape[1])

    # ---- conv1: k=5, stride 1, padding 2, + ReLU (dropout is identity in eval)
    # TODO(synk): training-mode stochastic dropout not implemented (eval semantics).
    xp = _pad_seq(x_ref[...], 2, 2)                        # (33, B, 21)
    acc = tap_matmul(xp[0:SEQ], w1_ref[0])
    for k in range(1, K):
        acc = acc + tap_matmul(xp[k:k + SEQ], w1_ref[k])
    h = jnp.maximum(acc + b1_ref[...], 0.0)                # (29, B, 32)

    # ---- conv2: k=5, stride 2, padding 2 — evaluate only even output positions.
    # out[l] = sum_k pad[2l + k]; even/odd split of pad is a free leading-dim
    # reshape, then each tap is a plain leading-dim slice.
    hp = _pad_seq(h, 2, 3)                                 # (34, B, 32)
    eo = hp.reshape(17, 2, B, C1)
    ev, od = eo[:, 0], eo[:, 1]                            # (17, B, 32) each
    acc = tap_matmul(ev[0:L2], w2_ref[0])                  # k = 0
    acc = acc + tap_matmul(od[0:L2], w2_ref[1])            # k = 1
    acc = acc + tap_matmul(ev[1:1 + L2], w2_ref[2])        # k = 2
    acc = acc + tap_matmul(od[1:1 + L2], w2_ref[3])        # k = 3
    acc = acc + tap_matmul(ev[2:2 + L2], w2_ref[4])        # k = 4
    h = jnp.maximum(acc + b2_ref[...], 0.0)                # (15, B, 32)

    # ---- conv3: k=5, stride 2, padding 2 (same scheme)
    hp = _pad_seq(h, 2, 3)                                 # (20, B, 32)
    eo = hp.reshape(10, 2, B, C2)
    ev, od = eo[:, 0], eo[:, 1]                            # (10, B, 32) each
    acc = tap_matmul(ev[0:L3], w3_ref[0])
    acc = acc + tap_matmul(od[0:L3], w3_ref[1])
    acc = acc + tap_matmul(ev[1:1 + L3], w3_ref[2])
    acc = acc + tap_matmul(od[1:1 + L3], w3_ref[3])
    acc = acc + tap_matmul(ev[2:2 + L3], w3_ref[4])
    h = jnp.maximum(acc + b3_ref[...], 0.0)                # (8, B, 32)

    # ---- linear1: PyTorch flattens (C, L) channel-major (index c*8 + l); that
    # reindex is folded into wl1, passed as (L3, C3, HID).  Each term is a
    # (B, 32) @ (32, 128) matmul with the full batch block as M.
    z = jnp.dot(h[0], wl1_ref[0], preferred_element_type=jnp.float32)
    for l in range(1, L3):
        z = z + jnp.dot(h[l], wl1_ref[l], preferred_element_type=jnp.float32)
    z = jnp.maximum(z + bl1_ref[...], 0.0)                 # (B, 128)

    # ---- linear2 into a lane-dense (B, 128) block (logits in the first 2 lanes)
    out_ref[...] = (jnp.dot(z, wl2_ref[...], preferred_element_type=jnp.float32)
                    + bl2_ref[...])


def kcrnet_forward(x, p, *, b_blk_max=128):
    B = x.shape[0]
    # Adaptive batch block: multiple of 8 (sublane-aligned), capped at 128 so
    # small batches don't pad to a full 128-row block.
    b_blk = min(b_blk_max, max(8, -(-B // 8) * 8))
    assert b_blk % 8 == 0
    nb = max(1, pl.cdiv(B, b_blk))
    Bp = nb * b_blk

    # Batch on sublanes, channels on lanes, sequence leading.
    xt = jnp.transpose(x, (1, 0, 2)).astype(jnp.float32)   # (SEQ, B, IN_CH)
    if Bp != B:
        xt = jnp.pad(xt, ((0, 0), (0, Bp - B), (0, 0)))

    # Re-layout PyTorch-convention parameters for the (L, B, C) kernel layout.
    w1 = jnp.transpose(p["conv1_w"], (2, 1, 0))            # (5, 21, 32)
    w2 = jnp.transpose(p["conv2_w"], (2, 1, 0))            # (5, 32, 32)
    w3 = jnp.transpose(p["conv3_w"], (2, 1, 0))            # (5, 32, 32)
    b1 = p["conv1_b"].reshape(1, C1)
    b2 = p["conv2_b"].reshape(1, C2)
    b3 = p["conv3_b"].reshape(1, C3)
    wl1 = jnp.transpose(p["lin1_w"].reshape(HID, C3, L3), (2, 1, 0))   # (8, 32, 128)
    bl1 = p["lin1_b"].reshape(1, HID)
    # Pad linear2 to 128 output lanes so the kernel's stores are lane-dense.
    wl2 = jnp.zeros((HID, LANE), jnp.float32).at[:, :NCLS].set(p["lin2_w"].T)
    bl2 = jnp.zeros((1, LANE), jnp.float32).at[:, :NCLS].set(p["lin2_b"])

    args = (xt, w1, b1, w2, b2, w3, b3, wl1, bl1, wl2, bl2)

    def full(a):
        n = a.ndim
        return pl.BlockSpec(a.shape, lambda i, _n=n: (0,) * _n)

    in_specs = [pl.BlockSpec((SEQ, b_blk, IN_CH), lambda i: (0, i, 0))]
    in_specs += [full(a) for a in args[1:]]

    out = pl.pallas_call(
        kcrnet_kernel,
        out_shape=jax.ShapeDtypeStruct((Bp, LANE), jnp.float32),
        grid=(nb,),
        in_specs=in_specs,
        out_specs=pl.BlockSpec((b_blk, LANE), lambda i: (i, 0)),
        compiler_params=pltpu.CompilerParams(dimension_semantics=("parallel",)),
    )(*args)
    return out[:B, :NCLS]


def ref_forward(x, p):
    """Pure-JAX reference reproducing the PyTorch forward (eval mode)."""
    xt = jnp.transpose(x, (0, 2, 1))                       # (B, 21, 29)

    def conv(a, w, b, stride):
        o = jax.lax.conv_general_dilated(
            a, w, window_strides=(stride,), padding=[(2, 2)],
            dimension_numbers=("NCH", "OIH", "NCH"),
            precision=jax.lax.Precision.HIGHEST)
        return o + b[None, :, None]

    h = jax.nn.relu(conv(xt, p["conv1_w"], p["conv1_b"], 1))
    h = jax.nn.relu(conv(h, p["conv2_w"], p["conv2_b"], 2))
    h = jax.nn.relu(conv(h, p["conv3_w"], p["conv3_b"], 2))
    h = h.reshape(h.shape[0], -1)                          # (B, 256), c*8 + l order
    h = jax.nn.relu(jnp.dot(h, p["lin1_w"].T, precision=jax.lax.Precision.HIGHEST)
                    + p["lin1_b"])
    return (jnp.dot(h, p["lin2_w"].T, precision=jax.lax.Precision.HIGHEST)
            + p["lin2_b"])


if __name__ == "__main__":
    key = jax.random.PRNGKey(0)
    ks = jax.random.split(key, 12)
    scale = 0.05
    params = {
        "conv1_w": scale * jax.random.normal(ks[0], (C1, IN_CH, K), jnp.float32),
        "conv1_b": scale * jax.random.normal(ks[1], (C1,), jnp.float32),
        "conv2_w": scale * jax.random.normal(ks[2], (C2, C1, K), jnp.float32),
        "conv2_b": scale * jax.random.normal(ks[3], (C2,), jnp.float32),
        "conv3_w": scale * jax.random.normal(ks[4], (C3, C2, K), jnp.float32),
        "conv3_b": scale * jax.random.normal(ks[5], (C3,), jnp.float32),
        "lin1_w": scale * jax.random.normal(ks[6], (HID, C3 * L3), jnp.float32),
        "lin1_b": scale * jax.random.normal(ks[7], (HID,), jnp.float32),
        "lin2_w": scale * jax.random.normal(ks[8], (NCLS, HID), jnp.float32),
        "lin2_b": scale * jax.random.normal(ks[9], (NCLS,), jnp.float32),
    }

    # Small-batch correctness check (single grid block, batch padded to 8).
    B = 2
    x = jax.random.normal(ks[10], (B, SEQ, IN_CH), jnp.float32)   # (batch, 29, 21)
    out = jax.block_until_ready(kcrnet_forward(x, params))
    ref = jax.block_until_ready(ref_forward(x, params))
    assert out.shape == (B, NCLS), out.shape
    if not jnp.allclose(out, ref, rtol=1e-3, atol=1e-3):
        raise AssertionError(f"kernel/reference mismatch (B={B}):\n{out}\nvs\n{ref}")

    # Multi-block check: exercises grid=(2,), b_blk=128, and batch padding.
    B2 = 130
    x2 = jax.random.normal(ks[11], (B2, SEQ, IN_CH), jnp.float32)
    out2 = jax.block_until_ready(kcrnet_forward(x2, params))
    ref2 = jax.block_until_ready(ref_forward(x2, params))
    assert out2.shape == (B2, NCLS), out2.shape
    if not jnp.allclose(out2, ref2, rtol=1e-3, atol=1e-3):
        raise AssertionError(f"kernel/reference mismatch (B={B2})")

    print("KERNEL_OK")
</pallas_src>

<mosaic_0001>
module attributes {stable_mosaic.version = 11 : i64} {
  func.func @kcrnet_kernel(%arg0: i32, %arg1: memref<29x8x21xf32, #tpu.memory_space<vmem>>, %arg2: memref<5x21x32xf32, #tpu.memory_space<vmem>>, %arg3: memref<1x32xf32, #tpu.memory_space<vmem>>, %arg4: memref<5x32x32xf32, #tpu.memory_space<vmem>>, %arg5: memref<1x32xf32, #tpu.memory_space<vmem>>, %arg6: memref<5x32x32xf32, #tpu.memory_space<vmem>>, %arg7: memref<1x32xf32, #tpu.memory_space<vmem>>, %arg8: memref<8x32x128xf32, #tpu.memory_space<vmem>>, %arg9: memref<1x128xf32, #tpu.memory_space<vmem>>, %arg10: memref<128x128xf32, #tpu.memory_space<vmem>>, %arg11: memref<1x128xf32, #tpu.memory_space<vmem>>, %arg12: memref<8x128xf32, #tpu.memory_space<vmem>>) attributes {dimension_semantics = [#tpu.dimension_semantics<parallel>], iteration_bounds = array<i64: 1>, scalar_prefetch = 0 : i64, scratch_operands = 0 : i64, tpu.core_type = #tpu.core_type<tc>, window_params = [{transform_indices = @transform_0, window_bounds = array<i64: 29, 8, 21>}, {pipeline_mode = #tpu.pipeline_mode<synchronous>, transform_indices = @transform_1, window_bounds = array<i64: 5, 21, 32>}, {pipeline_mode = #tpu.pipeline_mode<synchronous>, transform_indices = @transform_2, window_bounds = array<i64: 1, 32>}, {pipeline_mode = #tpu.pipeline_mode<synchronous>, transform_indices = @transform_3, window_bounds = array<i64: 5, 32, 32>}, {pipeline_mode = #tpu.pipeline_mode<synchronous>, transform_indices = @transform_4, window_bounds = array<i64: 1, 32>}, {pipeline_mode = #tpu.pipeline_mode<synchronous>, transform_indices = @transform_5, window_bounds = array<i64: 5, 32, 32>}, {pipeline_mode = #tpu.pipeline_mode<synchronous>, transform_indices = @transform_6, window_bounds = array<i64: 1, 32>}, {pipeline_mode = #tpu.pipeline_mode<synchronous>, transform_indices = @transform_7, window_bounds = array<i64: 8, 32, 128>}, {pipeline_mode = #tpu.pipeline_mode<synchronous>, transform_indices = @transform_8, window_bounds = array<i64: 1, 128>}, {pipeline_mode = #tpu.pipeline_mode<synchronous>, transform_indices = @transform_9, window_bounds = array<i64: 128, 128>}, {pipeline_mode = #tpu.pipeline_mode<synchronous>, transform_indices = @transform_10, window_bounds = array<i64: 1, 128>}, {transform_indices = @transform_11, window_bounds = array<i64: 8, 128>}]} {
    %c0 = arith.constant 0 : index
    %c0_0 = arith.constant 0 : index
    %c0_1 = arith.constant 0 : index
    %0 = vector.load %arg1[%c0, %c0_0, %c0_1] : memref<29x8x21xf32, #tpu.memory_space<vmem>>, vector<29x8x21xf32>
    %cst = arith.constant 0.000000e+00 : f32
    %1 = vector.broadcast %cst : f32 to vector<2x8x21xf32>
    %cst_2 = arith.constant 0.000000e+00 : f32
    %2 = vector.broadcast %cst_2 : f32 to vector<2x8x21xf32>
    %3 = tpu.concatenate %1, %0, %2 in 0 : vector<2x8x21xf32>, vector<29x8x21xf32>, vector<2x8x21xf32> -> vector<33x8x21xf32>
    %4 = vector.extract_strided_slice %3 {offsets = [0, 0, 0], sizes = [29, 8, 21], strides = [1, 1, 1]} : vector<33x8x21xf32> to vector<29x8x21xf32>
    %c0_3 = arith.constant 0 : index
    %c0_4 = arith.constant 0 : index
    %c0_5 = arith.constant 0 : index
    %5 = vector.load %arg2[%c0_3, %c0_4, %c0_5] : memref<5x21x32xf32, #tpu.memory_space<vmem>>, vector<1x21x32xf32>
    %6 = vector.shape_cast %5 : vector<1x21x32xf32> to vector<21x32xf32>
    %7 = vector.shape_cast %4 : vector<29x8x21xf32> to vector<232x21xf32>
    %cst_6 = arith.constant dense<0.000000e+00> : vector<232x32xf32>
    %8 = tpu.matmul %7, %6, %cst_6 {dimension_numbers = #tpu.dot_dimension_numbers<[1], [0], [0], [1], [0, 0, 1, 1], [], []>} : vector<232x21xf32>, vector<21x32xf32>, vector<232x32xf32> -> vector<232x32xf32>
    %9 = vector.shape_cast %8 : vector<232x32xf32> to vector<29x8x32xf32>
    %10 = vector.extract_strided_slice %3 {offsets = [1, 0, 0], sizes = [29, 8, 21], strides = [1, 1, 1]} : vector<33x8x21xf32> to vector<29x8x21xf32>
    %c1 = arith.constant 1 : index
    %c0_7 = arith.constant 0 : index
    %c0_8 = arith.constant 0 : index
    %11 = vector.load %arg2[%c1, %c0_7, %c0_8] : memref<5x21x32xf32, #tpu.memory_space<vmem>>, vector<1x21x32xf32>
    %12 = vector.shape_cast %11 : vector<1x21x32xf32> to vector<21x32xf32>
    %13 = vector.shape_cast %10 : vector<29x8x21xf32> to vector<232x21xf32>
    %cst_9 = arith.constant dense<0.000000e+00> : vector<232x32xf32>
    %14 = tpu.matmul %13, %12, %cst_9 {dimension_numbers = #tpu.dot_dimension_numbers<[1], [0], [0], [1], [0, 0, 1, 1], [], []>} : vector<232x21xf32>, vector<21x32xf32>, vector<232x32xf32> -> vector<232x32xf32>
    %15 = vector.shape_cast %14 : vector<232x32xf32> to vector<29x8x32xf32>
    %16 = arith.addf %9, %15 : vector<29x8x32xf32>
    %17 = vector.extract_strided_slice %3 {offsets = [2, 0, 0], sizes = [29, 8, 21], strides = [1, 1, 1]} : vector<33x8x21xf32> to vector<29x8x21xf32>
    %c2 = arith.constant 2 : index
    %c0_10 = arith.constant 0 : index
    %c0_11 = arith.constant 0 : index
    %18 = vector.load %arg2[%c2, %c0_10, %c0_11] : memref<5x21x32xf32, #tpu.memory_space<vmem>>, vector<1x21x32xf32>
    %19 = vector.shape_cast %18 : vector<1x21x32xf32> to vector<21x32xf32>
    %20 = vector.shape_cast %17 : vector<29x8x21xf32> to vector<232x21xf32>
    %cst_12 = arith.constant dense<0.000000e+00> : vector<232x32xf32>
    %21 = tpu.matmul %20, %19, %cst_12 {dimension_numbers = #tpu.dot_dimension_numbers<[1], [0], [0], [1], [0, 0, 1, 1], [], []>} : vector<232x21xf32>, vector<21x32xf32>, vector<232x32xf32> -> vector<232x32xf32>
    %22 = vector.shape_cast %21 : vector<232x32xf32> to vector<29x8x32xf32>
    %23 = arith.addf %16, %22 : vector<29x8x32xf32>
    %24 = vector.extract_strided_slice %3 {offsets = [3, 0, 0], sizes = [29, 8, 21], strides = [1, 1, 1]} : vector<33x8x21xf32> to vector<29x8x21xf32>
    %c3 = arith.constant 3 : index
    %c0_13 = arith.constant 0 : index
    %c0_14 = arith.constant 0 : index
    %25 = vector.load %arg2[%c3, %c0_13, %c0_14] : memref<5x21x32xf32, #tpu.memory_space<vmem>>, vector<1x21x32xf32>
    %26 = vector.shape_cast %25 : vector<1x21x32xf32> to vector<21x32xf32>
    %27 = vector.shape_cast %24 : vector<29x8x21xf32> to vector<232x21xf32>
    %cst_15 = arith.constant dense<0.000000e+00> : vector<232x32xf32>
    %28 = tpu.matmul %27, %26, %cst_15 {dimension_numbers = #tpu.dot_dimension_numbers<[1], [0], [0], [1], [0, 0, 1, 1], [], []>} : vector<232x21xf32>, vector<21x32xf32>, vector<232x32xf32> -> vector<232x32xf32>
    %29 = vector.shape_cast %28 : vector<232x32xf32> to vector<29x8x32xf32>
    %30 = arith.addf %23, %29 : vector<29x8x32xf32>
    %31 = vector.extract_strided_slice %3 {offsets = [4, 0, 0], sizes = [29, 8, 21], strides = [1, 1, 1]} : vector<33x8x21xf32> to vector<29x8x21xf32>
    %c4 = arith.constant 4 : index
    %c0_16 = arith.constant 0 : index
    %c0_17 = arith.constant 0 : index
    %32 = vector.load %arg2[%c4, %c0_16, %c0_17] : memref<5x21x32xf32, #tpu.memory_space<vmem>>, vector<1x21x32xf32>
    %33 = vector.shape_cast %32 : vector<1x21x32xf32> to vector<21x32xf32>
    %34 = vector.shape_cast %31 : vector<29x8x21xf32> to vector<232x21xf32>
    %cst_18 = arith.constant dense<0.000000e+00> : vector<232x32xf32>
    %35 = tpu.matmul %34, %33, %cst_18 {dimension_numbers = #tpu.dot_dimension_numbers<[1], [0], [0], [1], [0, 0, 1, 1], [], []>} : vector<232x21xf32>, vector<21x32xf32>, vector<232x32xf32> -> vector<232x32xf32>
    %36 = vector.shape_cast %35 : vector<232x32xf32> to vector<29x8x32xf32>
    %37 = arith.addf %30, %36 : vector<29x8x32xf32>
    %c0_19 = arith.constant 0 : index
    %c0_20 = arith.constant 0 : index
    %38 = vector.load %arg3[%c0_19, %c0_20] : memref<1x32xf32, #tpu.memory_space<vmem>>, vector<1x32xf32>
    %39 = vector.shape_cast %38 : vector<1x32xf32> to vector<1x1x32xf32>
    %40 = vector.broadcast %39 : vector<1x1x32xf32> to vector<29x8x32xf32>
    %41 = arith.addf %37, %40 : vector<29x8x32xf32>
    %cst_21 = arith.constant 0.000000e+00 : f32
    %42 = vector.broadcast %cst_21 : f32 to vector<29x8x32xf32>
    %43 = arith.maximumf %41, %42 : vector<29x8x32xf32>
    %cst_22 = arith.constant 0.000000e+00 : f32
    %44 = vector.broadcast %cst_22 : f32 to vector<2x8x32xf32>
    %cst_23 = arith.constant 0.000000e+00 : f32
    %45 = vector.broadcast %cst_23 : f32 to vector<3x8x32xf32>
    %46 = tpu.concatenate %44, %43, %45 in 0 : vector<2x8x32xf32>, vector<29x8x32xf32>, vector<3x8x32xf32> -> vector<34x8x32xf32>
    %47 = vector.shape_cast %46 : vector<34x8x32xf32> to vector<17x2x8x32xf32>
    %48 = vector.extract_strided_slice %47 {offsets = [0, 0, 0, 0], sizes = [17, 1, 8, 32], strides = [1, 1, 1, 1]} : vector<17x2x8x32xf32> to vector<17x1x8x32xf32>
    %49 = vector.shape_cast %48 : vector<17x1x8x32xf32> to vector<17x8x32xf32>
    %50 = vector.extract_strided_slice %47 {offsets = [0, 1, 0, 0], sizes = [17, 1, 8, 32], strides = [1, 1, 1, 1]} : vector<17x2x8x32xf32> to vector<17x1x8x32xf32>
    %51 = vector.shape_cast %50 : vector<17x1x8x32xf32> to vector<17x8x32xf32>
    %52 = vector.extract_strided_slice %49 {offsets = [0, 0, 0], sizes = [15, 8, 32], strides = [1, 1, 1]} : vector<17x8x32xf32> to vector<15x8x32xf32>
    %c0_24 = arith.constant 0 : index
    %c0_25 = arith.constant 0 : index
    %c0_26 = arith.constant 0 : index
    %53 = vector.load %arg4[%c0_24, %c0_25, %c0_26] : memref<5x32x32xf32, #tpu.memory_space<vmem>>, vector<1x32x32xf32>
    %54 = vector.shape_cast %53 : vector<1x32x32xf32> to vector<32x32xf32>
    %55 = vector.shape_cast %52 : vector<15x8x32xf32> to vector<120x32xf32>
    %cst_27 = arith.constant dense<0.000000e+00> : vector<120x32xf32>
    %56 = tpu.matmul %55, %54, %cst_27 {dimension_numbers = #tpu.dot_dimension_numbers<[1], [0], [0], [1], [0, 0, 1, 1], [], []>} : vector<120x32xf32>, vector<32x32xf32>, vector<120x32xf32> -> vector<120x32xf32>
    %57 = vector.shape_cast %56 : vector<120x32xf32> to vector<15x8x32xf32>
    %58 = vector.extract_strided_slice %51 {offsets = [0, 0, 0], sizes = [15, 8, 32], strides = [1, 1, 1]} : vector<17x8x32xf32> to vector<15x8x32xf32>
    %c1_28 = arith.constant 1 : index
    %c0_29 = arith.constant 0 : index
    %c0_30 = arith.constant 0 : index
    %59 = vector.load %arg4[%c1_28, %c0_29, %c0_30] : memref<5x32x32xf32, #tpu.memory_space<vmem>>, vector<1x32x32xf32>
    %60 = vector.shape_cast %59 : vector<1x32x32xf32> to vector<32x32xf32>
    %61 = vector.shape_cast %58 : vector<15x8x32xf32> to vector<120x32xf32>
    %cst_31 = arith.constant dense<0.000000e+00> : vector<120x32xf32>
    %62 = tpu.matmul %61, %60, %cst_31 {dimension_numbers = #tpu.dot_dimension_numbers<[1], [0], [0], [1], [0, 0, 1, 1], [], []>} : vector<120x32xf32>, vector<32x32xf32>, vector<120x32xf32> -> vector<120x32xf32>
    %63 = vector.shape_cast %62 : vector<120x32xf32> to vector<15x8x32xf32>
    %64 = arith.addf %57, %63 : vector<15x8x32xf32>
    %65 = vector.extract_strided_slice %49 {offsets = [1, 0, 0], sizes = [15, 8, 32], strides = [1, 1, 1]} : vector<17x8x32xf32> to vector<15x8x32xf32>
    %c2_32 = arith.constant 2 : index
    %c0_33 = arith.constant 0 : index
    %c0_34 = arith.constant 0 : index
    %66 = vector.load %arg4[%c2_32, %c0_33, %c0_34] : memref<5x32x32xf32, #tpu.memory_space<vmem>>, vector<1x32x32xf32>
    %67 = vector.shape_cast %66 : vector<1x32x32xf32> to vector<32x32xf32>
    %68 = vector.shape_cast %65 : vector<15x8x32xf32> to vector<120x32xf32>
    %cst_35 = arith.constant dense<0.000000e+00> : vector<120x32xf32>
    %69 = tpu.matmul %68, %67, %cst_35 {dimension_numbers = #tpu.dot_dimension_numbers<[1], [0], [0], [1], [0, 0, 1, 1], [], []>} : vector<120x32xf32>, vector<32x32xf32>, vector<120x32xf32> -> vector<120x32xf32>
    %70 = vector.shape_cast %69 : vector<120x32xf32> to vector<15x8x32xf32>
    %71 = arith.addf %64, %70 : vector<15x8x32xf32>
    %72 = vector.extract_strided_slice %51 {offsets = [1, 0, 0], sizes = [15, 8, 32], strides = [1, 1, 1]} : vector<17x8x32xf32> to vector<15x8x32xf32>
    %c3_36 = arith.constant 3 : index
    %c0_37 = arith.constant 0 : index
    %c0_38 = arith.constant 0 : index
    %73 = vector.load %arg4[%c3_36, %c0_37, %c0_38] : memref<5x32x32xf32, #tpu.memory_space<vmem>>, vector<1x32x32xf32>
    %74 = vector.shape_cast %73 : vector<1x32x32xf32> to vector<32x32xf32>
    %75 = vector.shape_cast %72 : vector<15x8x32xf32> to vector<120x32xf32>
    %cst_39 = arith.constant dense<0.000000e+00> : vector<120x32xf32>
    %76 = tpu.matmul %75, %74, %cst_39 {dimension_numbers = #tpu.dot_dimension_numbers<[1], [0], [0], [1], [0, 0, 1, 1], [], []>} : vector<120x32xf32>, vector<32x32xf32>, vector<120x32xf32> -> vector<120x32xf32>
    %77 = vector.shape_cast %76 : vector<120x32xf32> to vector<15x8x32xf32>
    %78 = arith.addf %71, %77 : vector<15x8x32xf32>
    %79 = vector.extract_strided_slice %49 {offsets = [2, 0, 0], sizes = [15, 8, 32], strides = [1, 1, 1]} : vector<17x8x32xf32> to vector<15x8x32xf32>
    %c4_40 = arith.constant 4 : index
    %c0_41 = arith.constant 0 : index
    %c0_42 = arith.constant 0 : index
    %80 = vector.load %arg4[%c4_40, %c0_41, %c0_42] : memref<5x32x32xf32, #tpu.memory_space<vmem>>, vector<1x32x32xf32>
    %81 = vector.shape_cast %80 : vector<1x32x32xf32> to vector<32x32xf32>
    %82 = vector.shape_cast %79 : vector<15x8x32xf32> to vector<120x32xf32>
    %cst_43 = arith.constant dense<0.000000e+00> : vector<120x32xf32>
    %83 = tpu.matmul %82, %81, %cst_43 {dimension_numbers = #tpu.dot_dimension_numbers<[1], [0], [0], [1], [0, 0, 1, 1], [], []>} : vector<120x32xf32>, vector<32x32xf32>, vector<120x32xf32> -> vector<120x32xf32>
    %84 = vector.shape_cast %83 : vector<120x32xf32> to vector<15x8x32xf32>
    %85 = arith.addf %78, %84 : vector<15x8x32xf32>
    %c0_44 = arith.constant 0 : index
    %c0_45 = arith.constant 0 : index
    %86 = vector.load %arg5[%c0_44, %c0_45] : memref<1x32xf32, #tpu.memory_space<vmem>>, vector<1x32xf32>
    %87 = vector.shape_cast %86 : vector<1x32xf32> to vector<1x1x32xf32>
    %88 = vector.broadcast %87 : vector<1x1x32xf32> to vector<15x8x32xf32>
    %89 = arith.addf %85, %88 : vector<15x8x32xf32>
    %cst_46 = arith.constant 0.000000e+00 : f32
    %90 = vector.broadcast %cst_46 : f32 to vector<15x8x32xf32>
    %91 = arith.maximumf %89, %90 : vector<15x8x32xf32>
    %cst_47 = arith.constant 0.000000e+00 : f32
    %92 = vector.broadcast %cst_47 : f32 to vector<2x8x32xf32>
    %cst_48 = arith.constant 0.000000e+00 : f32
    %93 = vector.broadcast %cst_48 : f32 to vector<3x8x32xf32>
    %94 = tpu.concatenate %92, %91, %93 in 0 : vector<2x8x32xf32>, vector<15x8x32xf32>, vector<3x8x32xf32> -> vector<20x8x32xf32>
    %95 = vector.shape_cast %94 : vector<20x8x32xf32> to vector<10x2x8x32xf32>
    %96 = vector.extract_strided_slice %95 {offsets = [0, 0, 0, 0], sizes = [10, 1, 8, 32], strides = [1, 1, 1, 1]} : vector<10x2x8x32xf32> to vector<10x1x8x32xf32>
    %97 = vector.shape_cast %96 : vector<10x1x8x32xf32> to vector<10x8x32xf32>
    %98 = vector.extract_strided_slice %95 {offsets = [0, 1, 0, 0], sizes = [10, 1, 8, 32], strides = [1, 1, 1, 1]} : vector<10x2x8x32xf32> to vector<10x1x8x32xf32>
    %99 = vector.shape_cast %98 : vector<10x1x8x32xf32> to vector<10x8x32xf32>
    %100 = vector.extract_strided_slice %97 {offsets = [0, 0, 0], sizes = [8, 8, 32], strides = [1, 1, 1]} : vector<10x8x32xf32> to vector<8x8x32xf32>
    %c0_49 = arith.constant 0 : index
    %c0_50 = arith.constant 0 : index
    %c0_51 = arith.constant 0 : index
    %101 = vector.load %arg6[%c0_49, %c0_50, %c0_51] : memref<5x32x32xf32, #tpu.memory_space<vmem>>, vector<1x32x32xf32>
    %102 = vector.shape_cast %101 : vector<1x32x32xf32> to vector<32x32xf32>
    %103 = vector.shape_cast %100 : vector<8x8x32xf32> to vector<64x32xf32>
    %cst_52 = arith.constant dense<0.000000e+00> : vector<64x32xf32>
    %104 = tpu.matmul %103, %102, %cst_52 {dimension_numbers = #tpu.dot_dimension_numbers<[1], [0], [0], [1], [0, 0, 1, 1], [], []>} : vector<64x32xf32>, vector<32x32xf32>, vector<64x32xf32> -> vector<64x32xf32>
    %105 = vector.shape_cast %104 : vector<64x32xf32> to vector<8x8x32xf32>
    %106 = vector.extract_strided_slice %99 {offsets = [0, 0, 0], sizes = [8, 8, 32], strides = [1, 1, 1]} : vector<10x8x32xf32> to vector<8x8x32xf32>
    %c1_53 = arith.constant 1 : index
    %c0_54 = arith.constant 0 : index
    %c0_55 = arith.constant 0 : index
    %107 = vector.load %arg6[%c1_53, %c0_54, %c0_55] : memref<5x32x32xf32, #tpu.memory_space<vmem>>, vector<1x32x32xf32>
    %108 = vector.shape_cast %107 : vector<1x32x32xf32> to vector<32x32xf32>
    %109 = vector.shape_cast %106 : vector<8x8x32xf32> to vector<64x32xf32>
    %cst_56 = arith.constant dense<0.000000e+00> : vector<64x32xf32>
    %110 = tpu.matmul %109, %108, %cst_56 {dimension_numbers = #tpu.dot_dimension_numbers<[1], [0], [0], [1], [0, 0, 1, 1], [], []>} : vector<64x32xf32>, vector<32x32xf32>, vector<64x32xf32> -> vector<64x32xf32>
    %111 = vector.shape_cast %110 : vector<64x32xf32> to vector<8x8x32xf32>
    %112 = arith.addf %105, %111 : vector<8x8x32xf32>
    %113 = vector.extract_strided_slice %97 {offsets = [1, 0, 0], sizes = [8, 8, 32], strides = [1, 1, 1]} : vector<10x8x32xf32> to vector<8x8x32xf32>
    %c2_57 = arith.constant 2 : index
    %c0_58 = arith.constant 0 : index
    %c0_59 = arith.constant 0 : index
    %114 = vector.load %arg6[%c2_57, %c0_58, %c0_59] : memref<5x32x32xf32, #tpu.memory_space<vmem>>, vector<1x32x32xf32>
    %115 = vector.shape_cast %114 : vector<1x32x32xf32> to vector<32x32xf32>
    %116 = vector.shape_cast %113 : vector<8x8x32xf32> to vector<64x32xf32>
    %cst_60 = arith.constant dense<0.000000e+00> : vector<64x32xf32>
    %117 = tpu.matmul %116, %115, %cst_60 {dimension_numbers = #tpu.dot_dimension_numbers<[1], [0], [0], [1], [0, 0, 1, 1], [], []>} : vector<64x32xf32>, vector<32x32xf32>, vector<64x32xf32> -> vector<64x32xf32>
    %118 = vector.shape_cast %117 : vector<64x32xf32> to vector<8x8x32xf32>
    %119 = arith.addf %112, %118 : vector<8x8x32xf32>
    %120 = vector.extract_strided_slice %99 {offsets = [1, 0, 0], sizes = [8, 8, 32], strides = [1, 1, 1]} : vector<10x8x32xf32> to vector<8x8x32xf32>
    %c3_61 = arith.constant 3 : index
    %c0_62 = arith.constant 0 : index
    %c0_63 = arith.constant 0 : index
    %121 = vector.load %arg6[%c3_61, %c0_62, %c0_63] : memref<5x32x32xf32, #tpu.memory_space<vmem>>, vector<1x32x32xf32>
    %122 = vector.shape_cast %121 : vector<1x32x32xf32> to vector<32x32xf32>
    %123 = vector.shape_cast %120 : vector<8x8x32xf32> to vector<64x32xf32>
    %cst_64 = arith.constant dense<0.000000e+00> : vector<64x32xf32>
    %124 = tpu.matmul %123, %122, %cst_64 {dimension_numbers = #tpu.dot_dimension_numbers<[1], [0], [0], [1], [0, 0, 1, 1], [], []>} : vector<64x32xf32>, vector<32x32xf32>, vector<64x32xf32> -> vector<64x32xf32>
    %125 = vector.shape_cast %124 : vector<64x32xf32> to vector<8x8x32xf32>
    %126 = arith.addf %119, %125 : vector<8x8x32xf32>
    %127 = vector.extract_strided_slice %97 {offsets = [2, 0, 0], sizes = [8, 8, 32], strides = [1, 1, 1]} : vector<10x8x32xf32> to vector<8x8x32xf32>
    %c4_65 = arith.constant 4 : index
    %c0_66 = arith.constant 0 : index
    %c0_67 = arith.constant 0 : index
    %128 = vector.load %arg6[%c4_65, %c0_66, %c0_67] : memref<5x32x32xf32, #tpu.memory_space<vmem>>, vector<1x32x32xf32>
    %129 = vector.shape_cast %128 : vector<1x32x32xf32> to vector<32x32xf32>
    %130 = vector.shape_cast %127 : vector<8x8x32xf32> to vector<64x32xf32>
    %cst_68 = arith.constant dense<0.000000e+00> : vector<64x32xf32>
    %131 = tpu.matmul %130, %129, %cst_68 {dimension_numbers = #tpu.dot_dimension_numbers<[1], [0], [0], [1], [0, 0, 1, 1], [], []>} : vector<64x32xf32>, vector<32x32xf32>, vector<64x32xf32> -> vector<64x32xf32>
    %132 = vector.shape_cast %131 : vector<64x32xf32> to vector<8x8x32xf32>
    %133 = arith.addf %126, %132 : vector<8x8x32xf32>
    %c0_69 = arith.constant 0 : index
    %c0_70 = arith.constant 0 : index
    %134 = vector.load %arg7[%c0_69, %c0_70] : memref<1x32xf32, #tpu.memory_space<vmem>>, vector<1x32xf32>
    %135 = vector.shape_cast %134 : vector<1x32xf32> to vector<1x1x32xf32>
    %136 = vector.broadcast %135 : vector<1x1x32xf32> to vector<8x8x32xf32>
    %137 = arith.addf %133, %136 : vector<8x8x32xf32>
    %cst_71 = arith.constant 0.000000e+00 : f32
    %138 = vector.broadcast %cst_71 : f32 to vector<8x8x32xf32>
    %139 = arith.maximumf %137, %138 : vector<8x8x32xf32>
    %140 = vector.extract_strided_slice %139 {offsets = [0, 0, 0], sizes = [1, 8, 32], strides = [1, 1, 1]} : vector<8x8x32xf32> to vector<1x8x32xf32>
    %141 = vector.shape_cast %140 : vector<1x8x32xf32> to vector<8x32xf32>
    %c0_72 = arith.constant 0 : index
    %c0_73 = arith.constant 0 : index
    %c0_74 = arith.constant 0 : index
    %142 = vector.load %arg8[%c0_72, %c0_73, %c0_74] : memref<8x32x128xf32, #tpu.memory_space<vmem>>, vector<1x32x128xf32>
    %143 = vector.shape_cast %142 : vector<1x32x128xf32> to vector<32x128xf32>
    %cst_75 = arith.constant dense<0.000000e+00> : vector<8x128xf32>
    %144 = tpu.matmul %141, %143, %cst_75 {dimension_numbers = #tpu.dot_dimension_numbers<[1], [0], [0], [1], [0, 0, 1, 1], [], []>} : vector<8x32xf32>, vector<32x128xf32>, vector<8x128xf32> -> vector<8x128xf32>
    %145 = vector.extract_strided_slice %139 {offsets = [1, 0, 0], sizes = [1, 8, 32], strides = [1, 1, 1]} : vector<8x8x32xf32> to vector<1x8x32xf32>
    %146 = vector.shape_cast %145 : vector<1x8x32xf32> to vector<8x32xf32>
    %c1_76 = arith.constant 1 : index
    %c0_77 = arith.constant 0 : index
    %c0_78 = arith.constant 0 : index
    %147 = vector.load %arg8[%c1_76, %c0_77, %c0_78] : memref<8x32x128xf32, #tpu.memory_space<vmem>>, vector<1x32x128xf32>
    %148 = vector.shape_cast %147 : vector<1x32x128xf32> to vector<32x128xf32>
    %cst_79 = arith.constant dense<0.000000e+00> : vector<8x128xf32>
    %149 = tpu.matmul %146, %148, %cst_79 {dimension_numbers = #tpu.dot_dimension_numbers<[1], [0], [0], [1], [0, 0, 1, 1], [], []>} : vector<8x32xf32>, vector<32x128xf32>, vector<8x128xf32> -> vector<8x128xf32>
    %150 = arith.addf %144, %149 : vector<8x128xf32>
    %151 = vector.extract_strided_slice %139 {offsets = [2, 0, 0], sizes = [1, 8, 32], strides = [1, 1, 1]} : vector<8x8x32xf32> to vector<1x8x32xf32>
    %152 = vector.shape_cast %151 : vector<1x8x32xf32> to vector<8x32xf32>
    %c2_80 = arith.constant 2 : index
    %c0_81 = arith.constant 0 : index
    %c0_82 = arith.constant 0 : index
    %153 = vector.load %arg8[%c2_80, %c0_81, %c0_82] : memref<8x32x128xf32, #tpu.memory_space<vmem>>, vector<1x32x128xf32>
    %154 = vector.shape_cast %153 : vector<1x32x128xf32> to vector<32x128xf32>
    %cst_83 = arith.constant dense<0.000000e+00> : vector<8x128xf32>
    %155 = tpu.matmul %152, %154, %cst_83 {dimension_numbers = #tpu.dot_dimension_numbers<[1], [0], [0], [1], [0, 0, 1, 1], [], []>} : vector<8x32xf32>, vector<32x128xf32>, vector<8x128xf32> -> vector<8x128xf32>
    %156 = arith.addf %150, %155 : vector<8x128xf32>
    %157 = vector.extract_strided_slice %139 {offsets = [3, 0, 0], sizes = [1, 8, 32], strides = [1, 1, 1]} : vector<8x8x32xf32> to vector<1x8x32xf32>
    %158 = vector.shape_cast %157 : vector<1x8x32xf32> to vector<8x32xf32>
    %c3_84 = arith.constant 3 : index
    %c0_85 = arith.constant 0 : index
    %c0_86 = arith.constant 0 : index
    %159 = vector.load %arg8[%c3_84, %c0_85, %c0_86] : memref<8x32x128xf32, #tpu.memory_space<vmem>>, vector<1x32x128xf32>
    %160 = vector.shape_cast %159 : vector<1x32x128xf32> to vector<32x128xf32>
    %cst_87 = arith.constant dense<0.000000e+00> : vector<8x128xf32>
    %161 = tpu.matmul %158, %160, %cst_87 {dimension_numbers = #tpu.dot_dimension_numbers<[1], [0], [0], [1], [0, 0, 1, 1], [], []>} : vector<8x32xf32>, vector<32x128xf32>, vector<8x128xf32> -> vector<8x128xf32>
    %162 = arith.addf %156, %161 : vector<8x128xf32>
    %163 = vector.extract_strided_slice %139 {offsets = [4, 0, 0], sizes = [1, 8, 32], strides = [1, 1, 1]} : vector<8x8x32xf32> to vector<1x8x32xf32>
    %164 = vector.shape_cast %163 : vector<1x8x32xf32> to vector<8x32xf32>
    %c4_88 = arith.constant 4 : index
    %c0_89 = arith.constant 0 : index
    %c0_90 = arith.constant 0 : index
    %165 = vector.load %arg8[%c4_88, %c0_89, %c0_90] : memref<8x32x128xf32, #tpu.memory_space<vmem>>, vector<1x32x128xf32>
    %166 = vector.shape_cast %165 : vector<1x32x128xf32> to vector<32x128xf32>
    %cst_91 = arith.constant dense<0.000000e+00> : vector<8x128xf32>
    %167 = tpu.matmul %164, %166, %cst_91 {dimension_numbers = #tpu.dot_dimension_numbers<[1], [0], [0], [1], [0, 0, 1, 1], [], []>} : vector<8x32xf32>, vector<32x128xf32>, vector<8x128xf32> -> vector<8x128xf32>
    %168 = arith.addf %162, %167 : vector<8x128xf32>
    %169 = vector.extract_strided_slice %139 {offsets = [5, 0, 0], sizes = [1, 8, 32], strides = [1, 1, 1]} : vector<8x8x32xf32> to vector<1x8x32xf32>
    %170 = vector.shape_cast %169 : vector<1x8x32xf32> to vector<8x32xf32>
    %c5 = arith.constant 5 : index
    %c0_92 = arith.constant 0 : index
    %c0_93 = arith.constant 0 : index
    %171 = vector.load %arg8[%c5, %c0_92, %c0_93] : memref<8x32x128xf32, #tpu.memory_space<vmem>>, vector<1x32x128xf32>
    %172 = vector.shape_cast %171 : vector<1x32x128xf32> to vector<32x128xf32>
    %cst_94 = arith.constant dense<0.000000e+00> : vector<8x128xf32>
    %173 = tpu.matmul %170, %172, %cst_94 {dimension_numbers = #tpu.dot_dimension_numbers<[1], [0], [0], [1], [0, 0, 1, 1], [], []>} : vector<8x32xf32>, vector<32x128xf32>, vector<8x128xf32> -> vector<8x128xf32>
    %174 = arith.addf %168, %173 : vector<8x128xf32>
    %175 = vector.extract_strided_slice %139 {offsets = [6, 0, 0], sizes = [1, 8, 32], strides = [1, 1, 1]} : vector<8x8x32xf32> to vector<1x8x32xf32>
    %176 = vector.shape_cast %175 : vector<1x8x32xf32> to vector<8x32xf32>
    %c6 = arith.constant 6 : index
    %c0_95 = arith.constant 0 : index
    %c0_96 = arith.constant 0 : index
    %177 = vector.load %arg8[%c6, %c0_95, %c0_96] : memref<8x32x128xf32, #tpu.memory_space<vmem>>, vector<1x32x128xf32>
    %178 = vector.shape_cast %177 : vector<1x32x128xf32> to vector<32x128xf32>
    %cst_97 = arith.constant dense<0.000000e+00> : vector<8x128xf32>
    %179 = tpu.matmul %176, %178, %cst_97 {dimension_numbers = #tpu.dot_dimension_numbers<[1], [0], [0], [1], [0, 0, 1, 1], [], []>} : vector<8x32xf32>, vector<32x128xf32>, vector<8x128xf32> -> vector<8x128xf32>
    %180 = arith.addf %174, %179 : vector<8x128xf32>
    %181 = vector.extract_strided_slice %139 {offsets = [7, 0, 0], sizes = [1, 8, 32], strides = [1, 1, 1]} : vector<8x8x32xf32> to vector<1x8x32xf32>
    %182 = vector.shape_cast %181 : vector<1x8x32xf32> to vector<8x32xf32>
    %c7 = arith.constant 7 : index
    %c0_98 = arith.constant 0 : index
    %c0_99 = arith.constant 0 : index
    %183 = vector.load %arg8[%c7, %c0_98, %c0_99] : memref<8x32x128xf32, #tpu.memory_space<vmem>>, vector<1x32x128xf32>
    %184 = vector.shape_cast %183 : vector<1x32x128xf32> to vector<32x128xf32>
    %cst_100 = arith.constant dense<0.000000e+00> : vector<8x128xf32>
    %185 = tpu.matmul %182, %184, %cst_100 {dimension_numbers = #tpu.dot_dimension_numbers<[1], [0], [0], [1], [0, 0, 1, 1], [], []>} : vector<8x32xf32>, vector<32x128xf32>, vector<8x128xf32> -> vector<8x128xf32>
    %186 = arith.addf %180, %185 : vector<8x128xf32>
    %c0_101 = arith.constant 0 : index
    %c0_102 = arith.constant 0 : index
    %187 = vector.load %arg9[%c0_101, %c0_102] : memref<1x128xf32, #tpu.memory_space<vmem>>, vector<1x128xf32>
    %188 = vector.broadcast %187 : vector<1x128xf32> to vector<8x128xf32>
    %189 = arith.addf %186, %188 : vector<8x128xf32>
    %cst_103 = arith.constant 0.000000e+00 : f32
    %190 = vector.broadcast %cst_103 : f32 to vector<8x128xf32>
    %191 = arith.maximumf %189, %190 : vector<8x128xf32>
    %c0_104 = arith.constant 0 : index
    %c0_105 = arith.constant 0 : index
    %192 = vector.load %arg10[%c0_104, %c0_105] : memref<128x128xf32, #tpu.memory_space<vmem>>, vector<128x128xf32>
    %cst_106 = arith.constant dense<0.000000e+00> : vector<8x128xf32>
    %193 = tpu.matmul %191, %192, %cst_106 {dimension_numbers = #tpu.dot_dimension_numbers<[1], [0], [0], [1], [0, 0, 1, 1], [], []>} : vector<8x128xf32>, vector<128x128xf32>, vector<8x128xf32> -> vector<8x128xf32>
    %c0_107 = arith.constant 0 : index
    %c0_108 = arith.constant 0 : index
    %194 = vector.load %arg11[%c0_107, %c0_108] : memref<1x128xf32, #tpu.memory_space<vmem>>, vector<1x128xf32>
    %195 = vector.broadcast %194 : vector<1x128xf32> to vector<8x128xf32>
    %196 = arith.addf %193, %195 : vector<8x128xf32>
    %c0_109 = arith.constant 0 : index
    %c0_110 = arith.constant 0 : index
    %197 = vector.load %arg12[%c0_109, %c0_110] : memref<8x128xf32, #tpu.memory_space<vmem>>, vector<8x128xf32>
    tpu.vector_store %arg12[%c0_109, %c0_110], %196 {strides = array<i32>} : memref<8x128xf32, #tpu.memory_space<vmem>>, vector<8x128xf32>,
    return
  }
  func.func @transform_0(%arg0: i32) -> (i32, i32, i32) {
    %c0_i32 = arith.constant 0 : i32
    %c0_i32_0 = arith.constant 0 : i32
    %c0_i32_1 = arith.constant 0 : i32
    return %c0_i32, %arg0, %c0_i32_0 : i32, i32, i32
  }
  func.func @transform_1(%arg0: i32) -> (i32, i32, i32) {
    %c0_i32 = arith.constant 0 : i32
    %c0_i32_0 = arith.constant 0 : i32
    %c0_i32_1 = arith.constant 0 : i32
    %c0_i32_2 = arith.constant 0 : i32
    return %c0_i32, %c0_i32_0, %c0_i32_1 : i32, i32, i32
  }
  func.func @transform_2(%arg0: i32) -> (i32, i32) {
    %c0_i32 = arith.constant 0 : i32
    %c0_i32_0 = arith.constant 0 : i32
    %c0_i32_1 = arith.constant 0 : i32
    return %c0_i32, %c0_i32_0 : i32, i32
  }
  func.func @transform_3(%arg0: i32) -> (i32, i32, i32) {
    %c0_i32 = arith.constant 0 : i32
    %c0_i32_0 = arith.constant 0 : i32
    %c0_i32_1 = arith.constant 0 : i32
    %c0_i32_2 = arith.constant 0 : i32
    return %c0_i32, %c0_i32_0, %c0_i32_1 : i32, i32, i32
  }
  func.func @transform_4(%arg0: i32) -> (i32, i32) {
    %c0_i32 = arith.constant 0 : i32
    %c0_i32_0 = arith.constant 0 : i32
    %c0_i32_1 = arith.constant 0 : i32
    return %c0_i32, %c0_i32_0 : i32, i32
  }
  func.func @transform_5(%arg0: i32) -> (i32, i32, i32) {
    %c0_i32 = arith.constant 0 : i32
    %c0_i32_0 = arith.constant 0 : i32
    %c0_i32_1 = arith.constant 0 : i32
    %c0_i32_2 = arith.constant 0 : i32
    return %c0_i32, %c0_i32_0, %c0_i32_1 : i32, i32, i32
  }
  func.func @transform_6(%arg0: i32) -> (i32, i32) {
    %c0_i32 = arith.constant 0 : i32
    %c0_i32_0 = arith.constant 0 : i32
    %c0_i32_1 = arith.constant 0 : i32
    return %c0_i32, %c0_i32_0 : i32, i32
  }
  func.func @transform_7(%arg0: i32) -> (i32, i32, i32) {
    %c0_i32 = arith.constant 0 : i32
    %c0_i32_0 = arith.constant 0 : i32
    %c0_i32_1 = arith.constant 0 : i32
    %c0_i32_2 = arith.constant 0 : i32
    return %c0_i32, %c0_i32_0, %c0_i32_1 : i32, i32, i32
  }
  func.func @transform_8(%arg0: i32) -> (i32, i32) {
    %c0_i32 = arith.constant 0 : i32
    %c0_i32_0 = arith.constant 0 : i32
    %c0_i32_1 = arith.constant 0 : i32
    return %c0_i32, %c0_i32_0 : i32, i32
  }
  func.func @transform_9(%arg0: i32) -> (i32, i32) {
    %c0_i32 = arith.constant 0 : i32
    %c0_i32_0 = arith.constant 0 : i32
    %c0_i32_1 = arith.constant 0 : i32
    return %c0_i32, %c0_i32_0 : i32, i32
  }
  func.func @transform_10(%arg0: i32) -> (i32, i32) {
    %c0_i32 = arith.constant 0 : i32
    %c0_i32_0 = arith.constant 0 : i32
    %c0_i32_1 = arith.constant 0 : i32
    return %c0_i32, %c0_i32_0 : i32, i32
  }
  func.func @transform_11(%arg0: i32) -> (i32, i32) {
    %c0_i32 = arith.constant 0 : i32
    %c0_i32_0 = arith.constant 0 : i32
    return %arg0, %c0_i32 : i32, i32
  }
}

</mosaic_0001>

<bundles_post_ra>
// kernel: tpu_custom_call.1
= control target key start
LH: loop header
LB: loop body
LE: loop exit
PB: predicated region body
PF: predicated region fallthrough
CT: control target
= control target key end

     0   :  { %16 = vsyncpa [#allocation3], 0  ;;  %s7498_s0 = inlined_call_operand.vmem [shape: f32[29,8,21], index: 0, kind: input, shape index: {}]   ;;  %s7499_s1 = inlined_call_operand.hbm [shape: f32[5,21,32], index: 1, kind: input, shape index: {}]   ;;  %s7500_s2 = inlined_call_operand.vmem [shape: f32[1,32], index: 2, kind: input, shape index: {}]   ;;  %s7501_s3 = inlined_call_operand.hbm [shape: f32[5,32,32], index: 3, kind: input, shape index: {}]   ;;  %s7502_s4 = inlined_call_operand.vmem [shape: f32[1,32], index: 4, kind: input, shape index: {}]   ;;  %s7503_s5 = inlined_call_operand.hbm [shape: f32[5,32,32], index: 5, kind: input, shape index: {}]   ;;  %s7504_s6 = inlined_call_operand.vmem [shape: f32[1,32], index: 6, kind: input, shape index: {}]   ;;  %s7505_s7 = inlined_call_operand.vmem [shape: f32[8,32,128], index: 7, kind: input, shape index: {}]   ;;  %s7506_s8 = inlined_call_operand.vmem [shape: f32[1,128], index: 8, kind: input, shape index: {}]   ;;  %s7507_s9 = inlined_call_operand.vmem [shape: f32[128,128], index: 9, kind: input, shape index: {}]   ;;  %s7508_s10 = inlined_call_operand.vmem [shape: f32[1,128], index: 10, kind: input, shape index: {}]   ;;  %s7509_s11 = inlined_call_operand.hbm [shape: f32[8,128], index: 11, kind: output, shape index: {}]  }
   0x1   :  { %17 = vsyncpa [#allocation6], 0 }
   0x2   :  { %18 = vsyncpa [#allocation4], 0  ;;  %s5491_s17 = smov [#allocation5]   ;;  %s5492_s19 = smov [#allocation2]  }
   0x3   :  { %s40_s18 = sshll.u32 %s5491_s17, 4  ;;  %s26_s20 = sshll.u32 %s5492_s19, 4  ;;  %s41_s18 = int_to_ptr.vmem [resolvable:$true] %s40_s18  ;;  %s27_s20 = int_to_ptr.vmem [resolvable:$true] %s26_s20 }
   0x4   :  { %s5413_s21 = scalar_lea.vmem %s41_s18, 2560  ;;  %p5418_p1 = scmp.lt.s32.totalorder %s41_s18, %s41_s18 }
   0x5   :  { %p5414_p0 = scmp.ne.s32.totalorder %s41_s18, %s5413_s21  ;;  %p5419_p2 = scmp.lt.s32.totalorder %s5413_s21, %s5413_s21 }
   0x7   :  { %p5420_p3 = por %p5419_p2, %p5418_p1 }
   0x9   :  { %p5421_p4 = pnand %p5420_p3, %p5414_p0 }
   0xb   :  { %5424 = shalt.err (!%p5421_p4)
}
   0xc   :  { %s5493_s22 = smov 128   ;;  %s5494_s23 = smov 8  }
   0xd   :  { %46 = dma.hbm_to_vmem [thread:$0]  %s7501_s3, 2560, %s41_s18, [#allocation6], %s5493_s22, %s5493_s22, %s5494_s23  }
   0xe   :  { %s5433_s26 = scalar_lea.vmem %s27_s20, 1920  ;;  %p5438_p6 = scmp.lt.s32.totalorder %s27_s20, %s27_s20 }
   0xf   :  { %p5434_p5 = scmp.ne.s32.totalorder %s27_s20, %s5433_s26  ;;  %p5439_p7 = scmp.lt.s32.totalorder %s5433_s26, %s5433_s26 }
  0x11   :  { %p5440_p8 = por %p5439_p7, %p5438_p6 }
  0x13   :  { %p5441_p9 = pnand %p5440_p8, %p5434_p5 }
  0x15   :  { %5444 = shalt.err (!%p5441_p9)
}
  0x16   :  { %32 = dma.hbm_to_vmem [thread:$0]  %s7499_s1, 1920, %s27_s20, [#allocation3], %s5493_s22, %s5493_s22, %s5494_s23  }
  0x17   :  { %s5495_s29 = smov [#allocation7]  }
  0x18   :  { %s54_s30 = sshll.u32 %s5495_s29, 4  ;;  %s55_s30 = int_to_ptr.vmem [resolvable:$true] %s54_s30 }
  0x19   :  { %s5453_s12 = scalar_lea.vmem %s55_s30, 2560  ;;  %p5458_p11 = scmp.lt.s32.totalorder %s55_s30, %s55_s30 }
  0x1a   :  { %p5454_p10 = scmp.ne.s32.totalorder %s55_s30, %s5453_s12  ;;  %p5459_p12 = scmp.lt.s32.totalorder %s5453_s12, %s5453_s12 }
  0x1c   :  { %p5460_p13 = por %p5459_p12, %p5458_p11 }
  0x1e   :  { %p5461_p0 = pnand %p5460_p13, %p5454_p10 }
  0x20   :  { %5464 = shalt.err (!%p5461_p0)
}
  0x21   :  { %60 = dma.hbm_to_vmem [thread:$0]  %s7503_s5, 2560, %s55_s30, [#allocation6], %s5493_s22, %s5493_s22, %s5494_s23  }
  0x22   :  { %5485 = dma.done.wait [#allocation3], 1920  }
  0x23   :  { %5486 = vsyncadd [#allocation3], 4294965376 }
  0x24   :  { %5487 = dma.done.wait [#allocation6], 5120  }
  0x25   :  { %5488 = vsyncadd [#allocation6], 4294962176  ;;  %v7510_v0 = vmov 0.0   ;;  %vm5497_vm0 = vmmov 0   ;;  %vm197_vm1 = vcmask 1044480   ;;  %v110_v2 = vld [vmem:[#allocation2 + $0x8] sm:$0xff] }
  0x26   :  { %4438 = vmatprep.subr.mxu0 %v7510_v0  ;;  %4444 = vmatprep.mubr.msk.f32.mxu0 %vm5497_vm0, %v7510_v0  ;;  %v111_v1 = vld [vmem:[#allocation2 + $0x10] sm:$0x1f]  ;;  %v414_v3 = vld [vmem:[#allocation2 + $0x28] sm:$0x1f]  ;;  %v413_v4 = vld [vmem:[#allocation2 + $0x20] sm:$0xff]  ;;  %vm112_vm2 = vcmask 171008  }
  0x27   :  { %5391 = vmatprep.subr.mxu1 %v7510_v0  ;;  %4546 = vmatprep.mubr.msk.f32.mxu1 %vm5497_vm0, %v7510_v0  ;;  %v109_v5 = vld [vmem:[#allocation2] sm:$0xff]  ;;  %v412_v6 = vld [vmem:[#allocation2 + $0x18] sm:$0xff]  ;;  %v5585_v7 = vld [vmem:[%s7498_s0 + $0x10] sm:$0xff]  ;;  %vm1470_vm3 = vcmask 261120   ;;  %s5498_s25 = smov [#allocation8]  }
  0x28   :  { %4439 = vmatpush3.msk.msra.mxu0 %vm197_vm1, %v111_v1  ;;  %5394 = vmatpush3.msk.msra.mxu1 %vm197_vm1, %v414_v3  ;;  %v5599_v8 = vld [vmem:[%s7498_s0 + $0x18] sm:$0xff]  ;;  %v5606_v9 = vld [vmem:[%s7498_s0] sm:$0xff]  ;;  %v5627_v12 = vld [vmem:[%s7498_s0 + $0x8] sm:$0xff] }
  0x29   :  { %4440 = vmatprep.subr.mxu0 %v7510_v0  ;;  %5392 = vmatprep.subr.mxu1 %v7510_v0  ;;  %v912_v10 = vld [vmem:[#allocation2 + $0x58] sm:$0x1f]  ;;  %v5620_v11 = vld [vmem:[%s7498_s0 + $0x20] sm:$0xff]  ;;  %v911_v13 = vld [vmem:[#allocation2 + $0x50] sm:$0xff] }
  0x2a   :  { %4441 = vmatpush3.msra.mxu0 %v110_v2  ;;  %5395 = vmatpush3.msra.mxu1 %v413_v4  ;;  %v5640_v14 = vld [vmem:[%s7498_s0 + $0x28] sm:$0xff]  ;;  %v5654_v16 = vld [vmem:[%s7498_s0 + $0x30] sm:$0xff]  ;;  %v5668_v17 = vld [vmem:[%s7498_s0 + $0x38] sm:$0xff] }
  0x2b   :  { %4442 = vmatprep.subr.mxu0 %v7510_v0  ;;  %5393 = vmatprep.subr.mxu1 %v7510_v0  ;;  %v910_v15 = vld [vmem:[#allocation2 + $0x48] sm:$0xff]  ;;  %v5681_v18 = vld [vmem:[%s7498_s0 + $0x40] sm:$0xff]  ;;  %v5707_v20 = vld [vmem:[%s7498_s0 + $0x50] sm:$0xff] }
  0x2c   :  { %4443 = vmatpush3.msra.mxu0 %v109_v5  ;;  %5396 = vmatpush3.msra.mxu1 %v412_v6  ;;  %v5694_v19 = vld [vmem:[%s7498_s0 + $0x48] sm:$0xff]  ;;  %v5720_v21 = vld [vmem:[%s7498_s0 + $0x58] sm:$0xff]  ;;  %v5733_v22 = vld [vmem:[%s7498_s0 + $0x60] sm:$0xff] }
  0x2d   :  { %4445 = vmatmul.mubr.f32.vlgmr.msra.gmra.mxu0 %v7510_v0  ;;  %4531 = vmatprep.subr.mxu0 %v7510_v0  ;;  %v5746_v23 = vld [vmem:[%s7498_s0 + $0x68] sm:$0xff]  ;;  %v5759_v24 = vld [vmem:[%s7498_s0 + $0x70] sm:$0xff]  ;;  %v5772_v25 = vld [vmem:[%s7498_s0 + $0x78] sm:$0xff] }
  0x2e   :  { %4532 = vmatpush3.msk.msra.mxu0 %vm197_vm1, %v414_v3  ;;  %4447 = vmatprep.mubr.msk.f32.mxu0 %vm5497_vm0, %v7510_v0  ;;  %v5785_v26 = vld [vmem:[%s7498_s0 + $0x80] sm:$0xff]  ;;  %v5798_v27 = vld [vmem:[%s7498_s0 + $0x88] sm:$0xff]  ;;  %v5811_v28 = vld [vmem:[%s7498_s0 + $0x90] sm:$0xff] }
  0x2f   :  { %4533 = vmatprep.subr.mxu0 %v7510_v0  ;;  %4547 = vmatmul.mubr.msk.f32.vlgmr.msra.gmra.mxu1 %vm112_vm2, %v5585_v7  ;;  %v5824_v29 = vld [vmem:[%s7498_s0 + $0x98] sm:$0xff]  ;;  %v5837_v30 = vld [vmem:[%s7498_s0 + $0xa0] sm:$0xff]  ;;  %v5850_v31 = vld [vmem:[%s7498_s0 + $0xa8] sm:$0xff] }
  0x30   :  { %4534 = vmatpush3.msra.mxu0 %v413_v4  ;;  %4549 = vmatprep.mubr.msk.f32.mxu1 %vm5497_vm0, %v7510_v0  ;;  %v5863_v32 = vld [vmem:[%s7498_s0 + $0xb0] sm:$0xff]  ;;  %v5876_v33 = vld [vmem:[%s7498_s0 + $0xb8] sm:$0xff]  ;;  %v5889_v34 = vld [vmem:[%s7498_s0 + $0xc0] sm:$0xff] }
  0x31   :  { %4448 = vmatmul.mubr.f32.gmra.mxu0 %v7510_v0  ;;  %4535 = vmatprep.subr.mxu0 %v7510_v0  ;;  %v5902_v35 = vld [vmem:[%s7498_s0 + $0xc8] sm:$0xff]  ;;  %v5915_v36 = vld [vmem:[%s7498_s0 + $0xd0] sm:$0xff]  ;;  %v5928_v37 = vld [vmem:[%s7498_s0 + $0xd8] sm:$0xff] }
  0x32   :  { %4450 = vmatprep.mubr.msk.f32.mxu0 %vm5497_vm0, %v7510_v0  ;;  %4536 = vmatpush3.msra.mxu0 %v412_v6  ;;  %v663_v38 = vld [vmem:[#allocation2 + $0x40] sm:$0x1f]  ;;  %v662_v39 = vld [vmem:[#allocation2 + $0x38] sm:$0xff]  ;;  %v661_v40 = vld [vmem:[#allocation2 + $0x30] sm:$0xff] }
  0x33   :  { %4717 = vmatprep.subr.mxu1 %v7510_v0  ;;  %4550 = vmatmul.mubr.msk.f32.gmra.mxu1 %vm112_vm2, %v5599_v8  ;;  %v1158_v41 = vld [vmem:[#allocation2 + $0x70] sm:$0x1f]  ;;  %v1157_v42 = vld [vmem:[#allocation2 + $0x68] sm:$0xff]  ;;  %v1156_v43 = vld [vmem:[#allocation2 + $0x60] sm:$0xff] }
  0x34   :  { %4624 = vmatprep.subr.mxu0 %v7510_v0  ;;  %4552 = vmatprep.mubr.msk.f32.mxu1 %vm5497_vm0, %v7510_v0  ;;  %v6174_v3 = vld [vmem:[%s7498_s0 + $0xe0] sm:$0xff]  ;;  %s3764_s0 = sshll.u32 %s5498_s25, 4  ;;  %s3765_s0 = int_to_ptr.vmem [resolvable:$true] %s3764_s0 }
  0x35   :  { %4451 = vmatmul.mubr.msk.f32.gmra.mxu0 %vm112_vm2, %v5606_v9  ;;  %4718 = vmatpush3.msk.msra.mxu1 %vm197_vm1, %v912_v10  ;;  %s5465_s26 = scalar_lea.vmem %s3765_s0, 128  ;;  %p5470_p2 = scmp.lt.s32.totalorder %s3765_s0, %s3765_s0 }
  0x36   :  { %4453 = vmatprep.mubr.msk.f32.mxu0 %vm5497_vm0, %v7510_v0  ;;  %4719 = vmatprep.subr.mxu1 %v7510_v0  ;;  %p5466_p1 = scmp.ne.s32.totalorder %s3765_s0, %s5465_s26  ;;  %p5471_p3 = scmp.lt.s32.totalorder %s5465_s26, %s5465_s26 }
  0x37   :  { %4553 = vmatmul.mubr.msk.f32.gmra.mxu1 %vm112_vm2, %v5620_v11 }
  0x38   :  { %4555 = vmatprep.mubr.msk.f32.mxu1 %vm5497_vm0, %v7510_v0  ;;  %4720 = vmatpush3.msra.mxu1 %v911_v13  ;;  %p5472_p4 = por %p5471_p3, %p5470_p2 }
  0x39   :  { %4454 = vmatmul.mubr.msk.f32.gmra.mxu0 %vm112_vm2, %v5627_v12  ;;  %4721 = vmatprep.subr.mxu1 %v7510_v0 }
  0x3a   :  { %4456 = vmatprep.mubr.msk.f32.mxu0 %vm5497_vm0, %v7510_v0  ;;  %4722 = vmatpush3.msra.mxu1 %v910_v15  ;;  %p5473_p5 = pnand %p5472_p4, %p5466_p1 }
  0x3b   :  { %4556 = vmatmul.mubr.msk.f32.gmra.mxu1 %vm112_vm2, %v5640_v14  ;;  %4903 = vmatprep.subr.mxu1 %v7510_v0 }
  0x3c   :  { %4558 = vmatprep.mubr.msk.f32.mxu1 %vm5497_vm0, %v7510_v0 }
  0x3d   :  { %4457 = vmatmul.mubr.msk.f32.gmra.mxu0 %vm112_vm2, %v5585_v7 }
  0x3e   :  { %4459 = vmatprep.mubr.msk.f32.mxu0 %vm5497_vm0, %v7510_v0 }
  0x3f   :  { %4559 = vmatmul.mubr.msk.f32.gmra.mxu1 %vm112_vm2, %v5654_v16 }
  0x40   :  { %4561 = vmatprep.mubr.msk.f32.mxu1 %vm5497_vm0, %v7510_v0 }
  0x41   :  { %4460 = vmatmul.mubr.msk.f32.gmra.mxu0 %vm112_vm2, %v5599_v8 }
  0x42   :  { %4462 = vmatprep.mubr.msk.f32.mxu0 %vm5497_vm0, %v7510_v0 }
  0x43   :  { %4562 = vmatmul.mubr.msk.f32.gmra.mxu1 %vm112_vm2, %v5668_v17 }
  0x44   :  { %4564 = vmatprep.mubr.msk.f32.mxu1 %vm5497_vm0, %v7510_v0 }
  0x45   :  { %4463 = vmatmul.mubr.msk.f32.gmra.mxu0 %vm112_vm2, %v5620_v11 }
  0x46   :  { %4465 = vmatprep.mubr.msk.f32.mxu0 %vm5497_vm0, %v7510_v0 }
  0x47   :  { %4565 = vmatmul.mubr.msk.f32.gmra.mxu1 %vm112_vm2, %v5681_v18 }
  0x48   :  { %4567 = vmatprep.mubr.msk.f32.mxu1 %vm5497_vm0, %v7510_v0 }
  0x49   :  { %4466 = vmatmul.mubr.msk.f32.gmra.mxu0 %vm112_vm2, %v5640_v14 }
  0x4a   :  { %4468 = vmatprep.mubr.msk.f32.mxu0 %vm5497_vm0, %v7510_v0 }
  0x4b   :  { %4568 = vmatmul.mubr.msk.f32.gmra.mxu1 %vm112_vm2, %v5694_v19 }
  0x4c   :  { %4570 = vmatprep.mubr.msk.f32.mxu1 %vm5497_vm0, %v7510_v0 }
  0x4d   :  { %4469 = vmatmul.mubr.msk.f32.gmra.mxu0 %vm112_vm2, %v5654_v16 }
  0x4e   :  { %4471 = vmatprep.mubr.msk.f32.mxu0 %vm5497_vm0, %v7510_v0 }
  0x4f   :  { %4571 = vmatmul.mubr.msk.f32.gmra.mxu1 %vm112_vm2, %v5707_v20 }
  0x50   :  { %4573 = vmatprep.mubr.msk.f32.mxu1 %vm5497_vm0, %v7510_v0 }
  0x51   :  { %4472 = vmatmul.mubr.msk.f32.gmra.mxu0 %vm112_vm2, %v5668_v17 }
  0x52   :  { %4474 = vmatprep.mubr.msk.f32.mxu0 %vm5497_vm0, %v7510_v0 }
  0x53   :  { %4574 = vmatmul.mubr.msk.f32.gmra.mxu1 %vm112_vm2, %v5720_v21 }
  0x54   :  { %4576 = vmatprep.mubr.msk.f32.mxu1 %vm5497_vm0, %v7510_v0 }
  0x55   :  { %4475 = vmatmul.mubr.msk.f32.gmra.mxu0 %vm112_vm2, %v5681_v18 }
  0x56   :  { %4477 = vmatprep.mubr.msk.f32.mxu0 %vm5497_vm0, %v7510_v0 }
  0x57   :  { %4577 = vmatmul.mubr.msk.f32.gmra.mxu1 %vm112_vm2, %v5733_v22 }
  0x58   :  { %4579 = vmatprep.mubr.msk.f32.mxu1 %vm5497_vm0, %v7510_v0 }
  0x59   :  { %4478 = vmatmul.mubr.msk.f32.gmra.mxu0 %vm112_vm2, %v5694_v19 }
  0x5a   :  { %4480 = vmatprep.mubr.msk.f32.mxu0 %vm5497_vm0, %v7510_v0 }
  0x5b   :  { %4580 = vmatmul.mubr.msk.f32.gmra.mxu1 %vm112_vm2, %v5746_v23 }
  0x5c   :  { %4582 = vmatprep.mubr.msk.f32.mxu1 %vm5497_vm0, %v7510_v0 }
  0x5d   :  { %4481 = vmatmul.mubr.msk.f32.gmra.mxu0 %vm112_vm2, %v5707_v20 }
  0x5e   :  { %4483 = vmatprep.mubr.msk.f32.mxu0 %vm5497_vm0, %v7510_v0 }
  0x5f   :  { %4583 = vmatmul.mubr.msk.f32.gmra.mxu1 %vm112_vm2, %v5759_v24 }
  0x60   :  { %4585 = vmatprep.mubr.msk.f32.mxu1 %vm5497_vm0, %v7510_v0 }
  0x61   :  { %4484 = vmatmul.mubr.msk.f32.gmra.mxu0 %vm112_vm2, %v5720_v21 }
  0x62   :  { %4486 = vmatprep.mubr.msk.f32.mxu0 %vm5497_vm0, %v7510_v0 }
  0x63   :  { %4586 = vmatmul.mubr.msk.f32.gmra.mxu1 %vm112_vm2, %v5772_v25 }
  0x64   :  { %4588 = vmatprep.mubr.msk.f32.mxu1 %vm5497_vm0, %v7510_v0 }
  0x65   :  { %4487 = vmatmul.mubr.msk.f32.gmra.mxu0 %vm112_vm2, %v5733_v22 }
  0x66   :  { %4489 = vmatprep.mubr.msk.f32.mxu0 %vm5497_vm0, %v7510_v0 }
  0x67   :  { %4589 = vmatmul.mubr.msk.f32.gmra.mxu1 %vm112_vm2, %v5785_v26 }
  0x68   :  { %4591 = vmatprep.mubr.msk.f32.mxu1 %vm5497_vm0, %v7510_v0 }
  0x69   :  { %4490 = vmatmul.mubr.msk.f32.gmra.mxu0 %vm112_vm2, %v5746_v23 }
  0x6a   :  { %4492 = vmatprep.mubr.msk.f32.mxu0 %vm5497_vm0, %v7510_v0 }
  0x6b   :  { %4592 = vmatmul.mubr.msk.f32.gmra.mxu1 %vm112_vm2, %v5798_v27 }
  0x6c   :  { %4594 = vmatprep.mubr.msk.f32.mxu1 %vm5497_vm0, %v7510_v0 }
  0x6d   :  { %4493 = vmatmul.mubr.msk.f32.gmra.mxu0 %vm112_vm2, %v5759_v24 }
  0x6e   :  { %4495 = vmatprep.mubr.msk.f32.mxu0 %vm5497_vm0, %v7510_v0 }
  0x6f   :  { %4595 = vmatmul.mubr.msk.f32.gmra.mxu1 %vm112_vm2, %v5811_v28 }
  0x70   :  { %4597 = vmatprep.mubr.msk.f32.mxu1 %vm5497_vm0, %v7510_v0 }
  0x71   :  { %4496 = vmatmul.mubr.msk.f32.gmra.mxu0 %vm112_vm2, %v5772_v25 }
  0x72   :  { %4498 = vmatprep.mubr.msk.f32.mxu0 %vm5497_vm0, %v7510_v0 }
  0x73   :  { %4598 = vmatmul.mubr.msk.f32.gmra.mxu1 %vm112_vm2, %v5824_v29 }
  0x74   :  { %4600 = vmatprep.mubr.msk.f32.mxu1 %vm5497_vm0, %v7510_v0 }
  0x75   :  { %4499 = vmatmul.mubr.msk.f32.gmra.mxu0 %vm112_vm2, %v5785_v26 }
  0x76   :  { %4501 = vmatprep.mubr.msk.f32.mxu0 %vm5497_vm0, %v7510_v0 }
  0x77   :  { %4601 = vmatmul.mubr.msk.f32.gmra.mxu1 %vm112_vm2, %v5837_v30 }
  0x78   :  { %4603 = vmatprep.mubr.msk.f32.mxu1 %vm5497_vm0, %v7510_v0 }
  0x79   :  { %4502 = vmatmul.mubr.msk.f32.gmra.mxu0 %vm112_vm2, %v5798_v27 }
  0x7a   :  { %4504 = vmatprep.mubr.msk.f32.mxu0 %vm5497_vm0, %v7510_v0 }
  0x7b   :  { %4604 = vmatmul.mubr.msk.f32.gmra.mxu1 %vm112_vm2, %v5850_v31 }
  0x7c   :  { %4606 = vmatprep.mubr.msk.f32.mxu1 %vm5497_vm0, %v7510_v0 }
  0x7d   :  { %4505 = vmatmul.mubr.msk.f32.gmra.mxu0 %vm112_vm2, %v5811_v28 }
  0x7e   :  { %4507 = vmatprep.mubr.msk.f32.mxu0 %vm5497_vm0, %v7510_v0 }
  0x7f   :  { %4607 = vmatmul.mubr.msk.f32.gmra.mxu1 %vm112_vm2, %v5863_v32 }
  0x80   :  { %4609 = vmatprep.mubr.msk.f32.mxu1 %vm5497_vm0, %v7510_v0 }
  0x81   :  { %4508 = vmatmul.mubr.msk.f32.gmra.mxu0 %vm112_vm2, %v5824_v29 }
  0x82   :  { %4510 = vmatprep.mubr.msk.f32.mxu0 %vm5497_vm0, %v7510_v0 }
  0x83   :  { %4610 = vmatmul.mubr.msk.f32.gmra.mxu1 %vm112_vm2, %v5876_v33 }
  0x84   :  { %4612 = vmatprep.mubr.msk.f32.mxu1 %vm5497_vm0, %v7510_v0 }
  0x85   :  { %4511 = vmatmul.mubr.msk.f32.gmra.mxu0 %vm112_vm2, %v5837_v30 }
  0x86   :  { %4513 = vmatprep.mubr.msk.f32.mxu0 %vm5497_vm0, %v7510_v0 }
  0x87   :  { %4613 = vmatmul.mubr.msk.f32.gmra.mxu1 %vm112_vm2, %v5889_v34 }
  0x88   :  { %4615 = vmatprep.mubr.msk.f32.mxu1 %vm5497_vm0, %v7510_v0 }
  0x89   :  { %4514 = vmatmul.mubr.msk.f32.gmra.mxu0 %vm112_vm2, %v5850_v31 }
  0x8a   :  { %4516 = vmatprep.mubr.msk.f32.mxu0 %vm5497_vm0, %v7510_v0 }
  0x8b   :  { %4616 = vmatmul.mubr.msk.f32.gmra.mxu1 %vm112_vm2, %v5902_v35 }
  0x8c   :  { %4618 = vmatprep.mubr.msk.f32.mxu1 %vm5497_vm0, %v7510_v0 }
  0x8d   :  { %4517 = vmatmul.mubr.msk.f32.gmra.mxu0 %vm112_vm2, %v5863_v32 }
  0x8e   :  { %4519 = vmatprep.mubr.msk.f32.mxu0 %vm5497_vm0, %v7510_v0 }
  0x8f   :  { %4619 = vmatmul.mubr.msk.f32.gmra.mxu1 %vm112_vm2, %v5915_v36 }
  0x90   :  { %4621 = vmatprep.mubr.msk.f32.mxu1 %vm5497_vm0, %v7510_v0 }
  0x91   :  { %4520 = vmatmul.mubr.msk.f32.gmra.mxu0 %vm112_vm2, %v5876_v33 }
  0x92   :  { %4522 = vmatprep.mubr.msk.f32.mxu0 %vm5497_vm0, %v7510_v0 }
  0x93   :  { %4622 = vmatmul.mubr.msk.f32.gmra.mxu1 %vm112_vm2, %v5928_v37 }
  0x94   :  { %4723 = vmatprep.mubr.msk.f32.mxu1 %vm5497_vm0, %v7510_v0 }
  0x95   :  { %4523 = vmatmul.mubr.msk.f32.gmra.mxu0 %vm112_vm2, %v5889_v34 }
  0x96   :  { %4525 = vmatprep.mubr.msk.f32.mxu0 %vm5497_vm0, %v7510_v0 }
  0x97   :  { %4724 = vmatmul.mubr.msk.f32.vlgmr.msra.gmra.mxu1 %vm112_vm2, %v5627_v12 }
  0x98   :  { %4726 = vmatprep.mubr.msk.f32.mxu1 %vm5497_vm0, %v7510_v0 }
  0x99   :  { %4526 = vmatmul.mubr.msk.f32.gmra.mxu0 %vm112_vm2, %v5902_v35 }
  0x9a   :  { %4528 = vmatprep.mubr.msk.f32.mxu0 %vm5497_vm0, %v7510_v0 }
  0x9b   :  { %4727 = vmatmul.mubr.msk.f32.gmra.mxu1 %vm112_vm2, %v5585_v7 }
  0x9c   :  { %4729 = vmatprep.mubr.msk.f32.mxu1 %vm5497_vm0, %v7510_v0 }
  0x9d   :  { %4529 = vmatmul.mubr.msk.f32.gmra.mxu0 %vm112_vm2, %v5915_v36 }
  0x9e   :  { %4537 = vmatprep.mubr.msk.f32.mxu0 %vm5497_vm0, %v7510_v0 }
  0x9f   :  { %4730 = vmatmul.mubr.msk.f32.gmra.mxu1 %vm112_vm2, %v5599_v8 }
  0xa0   :  { %4732 = vmatprep.mubr.msk.f32.mxu1 %vm5497_vm0, %v7510_v0 }
  0xa1   :  { %4538 = vmatmul.mubr.f32.vlgmr.msra.gmra.mxu0 %v7510_v0 }
  0xa2   :  { %4625 = vmatpush3.msk.msra.mxu0 %vm197_vm1, %v663_v38  ;;  %4540 = vmatprep.mubr.msk.f32.mxu0 %vm5497_vm0, %v7510_v0 }
  0xa3   :  { %4626 = vmatprep.subr.mxu0 %v7510_v0  ;;  %4733 = vmatmul.mubr.msk.f32.gmra.mxu1 %vm112_vm2, %v5620_v11 }
  0xa4   :  { %4627 = vmatpush3.msra.mxu0 %v662_v39  ;;  %4735 = vmatprep.mubr.msk.f32.mxu1 %vm5497_vm0, %v7510_v0 }
  0xa5   :  { %4541 = vmatmul.mubr.msk.f32.gmra.mxu0 %vm112_vm2, %v5606_v9  ;;  %4628 = vmatprep.subr.mxu0 %v7510_v0 }
  0xa6   :  { %4543 = vmatprep.mubr.msk.f32.mxu0 %vm5497_vm0, %v7510_v0  ;;  %4629 = vmatpush3.msra.mxu0 %v661_v40 }
  0xa7   :  { %4810 = vmatprep.subr.mxu0 %v7510_v0  ;;  %4736 = vmatmul.mubr.msk.f32.gmra.mxu1 %vm112_vm2, %v5640_v14 }
  0xa8   :  { %4738 = vmatprep.mubr.msk.f32.mxu1 %vm5497_vm0, %v7510_v0 }
  0xa9   :  { %4544 = vmatmul.mubr.msk.f32.gmra.mxu0 %vm112_vm2, %v5627_v12 }
  0xaa   :  { %4630 = vmatprep.mubr.msk.f32.mxu0 %vm5497_vm0, %v7510_v0 }
  0xab   :  { %4739 = vmatmul.mubr.msk.f32.gmra.mxu1 %vm112_vm2, %v5654_v16 }
  0xac   :  { %4741 = vmatprep.mubr.msk.f32.mxu1 %vm5497_vm0, %v7510_v0 }
  0xad   :  { %4631 = vmatmul.mubr.msk.f32.vlgmr.msra.gmra.mxu0 %vm112_vm2, %v5606_v9 }
  0xae   :  { %4811 = vmatpush3.msk.msra.mxu0 %vm197_vm1, %v1158_v41  ;;  %4633 = vmatprep.mubr.msk.f32.mxu0 %vm5497_vm0, %v7510_v0 }
  0xaf   :  { %4812 = vmatprep.subr.mxu0 %v7510_v0  ;;  %4742 = vmatmul.mubr.msk.f32.gmra.mxu1 %vm112_vm2, %v5668_v17 }
  0xb0   :  { %4813 = vmatpush3.msra.mxu0 %v1157_v42  ;;  %4744 = vmatprep.mubr.msk.f32.mxu1 %vm5497_vm0, %v7510_v0 }
  0xb1   :  { %4634 = vmatmul.mubr.msk.f32.gmra.mxu0 %vm112_vm2, %v5627_v12  ;;  %4814 = vmatprep.subr.mxu0 %v7510_v0 }
  0xb2   :  { %4636 = vmatprep.mubr.msk.f32.mxu0 %vm5497_vm0, %v7510_v0  ;;  %4815 = vmatpush3.msra.mxu0 %v1156_v43 }
  0xb3   :  { %4745 = vmatmul.mubr.msk.f32.gmra.mxu1 %vm112_vm2, %v5681_v18  ;;  %5009 = vmatprep.subr.mxu0 %v7510_v0 }
  0xb4   :  { %4747 = vmatprep.mubr.msk.f32.mxu1 %vm5497_vm0, %v7510_v0 }
  0xb5   :  { %4637 = vmatmul.mubr.msk.f32.gmra.mxu0 %vm112_vm2, %v5585_v7 }
  0xb6   :  { %4639 = vmatprep.mubr.msk.f32.mxu0 %vm5497_vm0, %v7510_v0 }
  0xb7   :  { %4748 = vmatmul.mubr.msk.f32.gmra.mxu1 %vm112_vm2, %v5694_v19 }
  0xb8   :  { %4750 = vmatprep.mubr.msk.f32.mxu1 %vm5497_vm0, %v7510_v0 }
  0xb9   :  { %4640 = vmatmul.mubr.msk.f32.gmra.mxu0 %vm112_vm2, %v5599_v8 }
  0xba   :  { %4642 = vmatprep.mubr.msk.f32.mxu0 %vm5497_vm0, %v7510_v0 }
  0xbb   :  { %4751 = vmatmul.mubr.msk.f32.gmra.mxu1 %vm112_vm2, %v5707_v20 }
  0xbc   :  { %4753 = vmatprep.mubr.msk.f32.mxu1 %vm5497_vm0, %v7510_v0 }
  0xbd   :  { %4643 = vmatmul.mubr.msk.f32.gmra.mxu0 %vm112_vm2, %v5620_v11 }
  0xbe   :  { %4645 = vmatprep.mubr.msk.f32.mxu0 %vm5497_vm0, %v7510_v0 }
  0xbf   :  { %4754 = vmatmul.mubr.msk.f32.gmra.mxu1 %vm112_vm2, %v5720_v21 }
  0xc0   :  { %4756 = vmatprep.mubr.msk.f32.mxu1 %vm5497_vm0, %v7510_v0 }
  0xc1   :  { %4646 = vmatmul.mubr.msk.f32.gmra.mxu0 %vm112_vm2, %v5640_v14 }
  0xc2   :  { %4648 = vmatprep.mubr.msk.f32.mxu0 %vm5497_vm0, %v7510_v0 }
  0xc3   :  { %4757 = vmatmul.mubr.msk.f32.gmra.mxu1 %vm112_vm2, %v5733_v22 }
  0xc4   :  { %4759 = vmatprep.mubr.msk.f32.mxu1 %vm5497_vm0, %v7510_v0 }
  0xc5   :  { %4649 = vmatmul.mubr.msk.f32.gmra.mxu0 %vm112_vm2, %v5654_v16 }
  0xc6   :  { %4651 = vmatprep.mubr.msk.f32.mxu0 %vm5497_vm0, %v7510_v0 }
  0xc7   :  { %4760 = vmatmul.mubr.msk.f32.gmra.mxu1 %vm112_vm2, %v5746_v23 }
  0xc8   :  { %4762 = vmatprep.mubr.msk.f32.mxu1 %vm5497_vm0, %v7510_v0 }
  0xc9   :  { %4652 = vmatmul.mubr.msk.f32.gmra.mxu0 %vm112_vm2, %v5668_v17 }
  0xca   :  { %4654 = vmatprep.mubr.msk.f32.mxu0 %vm5497_vm0, %v7510_v0 }
  0xcb   :  { %4763 = vmatmul.mubr.msk.f32.gmra.mxu1 %vm112_vm2, %v5759_v24 }
  0xcc   :  { %4765 = vmatprep.mubr.msk.f32.mxu1 %vm5497_vm0, %v7510_v0 }
  0xcd   :  { %4655 = vmatmul.mubr.msk.f32.gmra.mxu0 %vm112_vm2, %v5681_v18 }
  0xce   :  { %4657 = vmatprep.mubr.msk.f32.mxu0 %vm5497_vm0, %v7510_v0 }
  0xcf   :  { %4766 = vmatmul.mubr.msk.f32.gmra.mxu1 %vm112_vm2, %v5772_v25 }
  0xd0   :  { %4768 = vmatprep.mubr.msk.f32.mxu1 %vm5497_vm0, %v7510_v0 }
  0xd1   :  { %4658 = vmatmul.mubr.msk.f32.gmra.mxu0 %vm112_vm2, %v5694_v19 }
  0xd2   :  { %4660 = vmatprep.mubr.msk.f32.mxu0 %vm5497_vm0, %v7510_v0 }
  0xd3   :  { %4769 = vmatmul.mubr.msk.f32.gmra.mxu1 %vm112_vm2, %v5785_v26 }
  0xd4   :  { %4771 = vmatprep.mubr.msk.f32.mxu1 %vm5497_vm0, %v7510_v0 }
  0xd5   :  { %4661 = vmatmul.mubr.msk.f32.gmra.mxu0 %vm112_vm2, %v5707_v20 }
  0xd6   :  { %4663 = vmatprep.mubr.msk.f32.mxu0 %vm5497_vm0, %v7510_v0 }
  0xd7   :  { %4772 = vmatmul.mubr.msk.f32.gmra.mxu1 %vm112_vm2, %v5798_v27 }
  0xd8   :  { %4774 = vmatprep.mubr.msk.f32.mxu1 %vm5497_vm0, %v7510_v0 }
  0xd9   :  { %4664 = vmatmul.mubr.msk.f32.gmra.mxu0 %vm112_vm2, %v5720_v21 }
  0xda   :  { %4666 = vmatprep.mubr.msk.f32.mxu0 %vm5497_vm0, %v7510_v0 }
  0xdb   :  { %4775 = vmatmul.mubr.msk.f32.gmra.mxu1 %vm112_vm2, %v5811_v28 }
  0xdc   :  { %4777 = vmatprep.mubr.msk.f32.mxu1 %vm5497_vm0, %v7510_v0 }
  0xdd   :  { %4667 = vmatmul.mubr.msk.f32.gmra.mxu0 %vm112_vm2, %v5733_v22 }
  0xde   :  { %4669 = vmatprep.mubr.msk.f32.mxu0 %vm5497_vm0, %v7510_v0 }
  0xdf   :  { %4778 = vmatmul.mubr.msk.f32.gmra.mxu1 %vm112_vm2, %v5824_v29 }
  0xe0   :  { %4780 = vmatprep.mubr.msk.f32.mxu1 %vm5497_vm0, %v7510_v0 }
  0xe1   :  { %4670 = vmatmul.mubr.msk.f32.gmra.mxu0 %vm112_vm2, %v5746_v23 }
  0xe2   :  { %4672 = vmatprep.mubr.msk.f32.mxu0 %vm5497_vm0, %v7510_v0 }
  0xe3   :  { %4781 = vmatmul.mubr.msk.f32.gmra.mxu1 %vm112_vm2, %v5837_v30 }
  0xe4   :  { %4783 = vmatprep.mubr.msk.f32.mxu1 %vm5497_vm0, %v7510_v0 }
  0xe5   :  { %4673 = vmatmul.mubr.msk.f32.gmra.mxu0 %vm112_vm2, %v5759_v24 }
  0xe6   :  { %4675 = vmatprep.mubr.msk.f32.mxu0 %vm5497_vm0, %v7510_v0 }
  0xe7   :  { %4784 = vmatmul.mubr.msk.f32.gmra.mxu1 %vm112_vm2, %v5850_v31 }
  0xe8   :  { %4786 = vmatprep.mubr.msk.f32.mxu1 %vm5497_vm0, %v7510_v0 }
  0xe9   :  { %4676 = vmatmul.mubr.msk.f32.gmra.mxu0 %vm112_vm2, %v5772_v25 }
  0xea   :  { %4678 = vmatprep.mubr.msk.f32.mxu0 %vm5497_vm0, %v7510_v0 }
  0xeb   :  { %4787 = vmatmul.mubr.msk.f32.gmra.mxu1 %vm112_vm2, %v5863_v32 }
  0xec   :  { %4789 = vmatprep.mubr.msk.f32.mxu1 %vm5497_vm0, %v7510_v0 }
  0xed   :  { %v6117_v44 = vpop.f32.mrf.mxu0  ;;  %4679 = vmatmul.mubr.msk.f32.gmra.mxu0 %vm112_vm2, %v5785_v26 }
  0xee   :  { %4681 = vmatprep.mubr.msk.f32.mxu0 %vm5497_vm0, %v7510_v0 }
  0xef   :  { %v4446_v45 = vpop.f32.mrf.mxu0  ;;  %v502_v46 = vpop.f32.mrf.mxu1  ;;  %4790 = vmatmul.mubr.msk.f32.gmra.mxu1 %vm112_vm2, %v5876_v33 }
  0xf0   :  { %4792 = vmatprep.mubr.msk.f32.mxu1 %vm5497_vm0, %v7510_v0 }
  0xf1   :  { %v6127_v47 = vpop.f32.mrf.mxu0  ;;  %4682 = vmatmul.mubr.msk.f32.gmra.mxu0 %vm112_vm2, %v5798_v27  ;;  %v4548_v48 = vpop.f32.mrf.mxu1 }
  0xf2   :  { %4684 = vmatprep.mubr.msk.f32.mxu0 %vm5497_vm0, %v7510_v0 }
  0xf3   :  { %v4449_v49 = vpop.f32.mrf.mxu0  ;;  %v507_v50 = vpop.f32.mrf.mxu1  ;;  %4793 = vmatmul.mubr.msk.f32.gmra.mxu1 %vm112_vm2, %v5889_v34 }
  0xf4   :  { %4795 = vmatprep.mubr.msk.f32.mxu1 %vm5497_vm0, %v7510_v0 }
  0xf5   :  { %v6137_v51 = vpop.f32.mrf.mxu0  ;;  %4685 = vmatmul.mubr.msk.f32.gmra.mxu0 %vm112_vm2, %v5811_v28  ;;  %v4551_v52 = vpop.f32.mrf.mxu1 }
  0xf6   :  { %4687 = vmatprep.mubr.msk.f32.mxu0 %vm5497_vm0, %v7510_v0 }
  0xf7   :  { %v4452_v53 = vpop.f32.mrf.mxu0  ;;  %v512_v54 = vpop.f32.mrf.mxu1  ;;  %4796 = vmatmul.mubr.msk.f32.gmra.mxu1 %vm112_vm2, %v5902_v35 }
  0xf8   :  { %4798 = vmatprep.mubr.msk.f32.mxu1 %vm5497_vm0, %v7510_v0 }
  0xf9   :  { %v282_v55 = vpop.f32.mrf.mxu0  ;;  %4688 = vmatmul.mubr.msk.f32.gmra.mxu0 %vm112_vm2, %v5824_v29  ;;  %v4554_v57 = vpop.f32.mrf.mxu1 }
  0xfa   :  { %v6151_v56 = vadd.f32 %v502_v46, %v282_v55  ;;  %4690 = vmatprep.mubr.msk.f32.mxu0 %vm5497_vm0, %v7510_v0 }
  0xfb   :  { %v4455_v58 = vpop.f32.mrf.mxu0  ;;  %v517_v59 = vpop.f32.mrf.mxu1  ;;  %4799 = vmatmul.mubr.msk.f32.gmra.mxu1 %vm112_vm2, %v5915_v36 }
  0xfc   :  { %4801 = vmatprep.mubr.msk.f32.mxu1 %vm5497_vm0, %v7510_v0 }
  0xfd   :  { %v287_v60 = vpop.f32.mrf.mxu0  ;;  %4691 = vmatmul.mubr.msk.f32.gmra.mxu0 %vm112_vm2, %v5837_v30  ;;  %v4557_v62 = vpop.f32.mrf.mxu1 }
  0xfe   :  { %v6161_v61 = vadd.f32 %v507_v50, %v287_v60  ;;  %4693 = vmatprep.mubr.msk.f32.mxu0 %vm5497_vm0, %v7510_v0 }
  0xff   :  { %v4458_v63 = vpop.f32.mrf.mxu0  ;;  %v522_v1 = vpop.f32.mrf.mxu1  ;;  %4802 = vmatmul.mubr.msk.f32.gmra.mxu1 %vm112_vm2, %v5928_v37 }
 0x100   :  { %4804 = vmatprep.mubr.msk.f32.mxu1 %vm5497_vm0, %v7510_v0 }
 0x101   :  { %v292_v2 = vpop.f32.mrf.mxu0  ;;  %4694 = vmatmul.mubr.msk.f32.gmra.mxu0 %vm112_vm2, %v5850_v31  ;;  %v4560_v5 = vpop.f32.mrf.mxu1 }
 0x102   :  { %v6176_v4 = vadd.f32 %v512_v54, %v292_v2  ;;  %4696 = vmatprep.mubr.msk.f32.mxu0 %vm5497_vm0, %v7510_v0 }
 0x103   :  { %v4461_v6 = vpop.f32.mrf.mxu0  ;;  %v527_v9 = vpop.f32.mrf.mxu1  ;;  %4805 = vmatmul.mubr.msk.f32.gmra.mxu1 %vm112_vm2, %v6174_v3 }
 0x104   :  { %4807 = vmatprep.mubr.msk.f32.mxu1 %vm5497_vm0, %v7510_v0 }
 0x105   :  { %v297_v10 = vpop.f32.mrf.mxu0  ;;  %4697 = vmatmul.mubr.msk.f32.gmra.mxu0 %vm112_vm2, %v5863_v32  ;;  %v4563_v13 = vpop.f32.mrf.mxu1 }
 0x106   :  { %v6186_v12 = vadd.f32 %v517_v59, %v297_v10  ;;  %4699 = vmatprep.mubr.msk.f32.mxu0 %vm5497_vm0, %v7510_v0 }
 0x107   :  { %v4464_v15 = vpop.f32.mrf.mxu0  ;;  %v532_v38 = vpop.f32.mrf.mxu1  ;;  %4808 = vmatmul.mubr.f32.gmra.mxu1 %v7510_v0 }
 0x108   :  { %4911 = vmatprep.mubr.msk.f32.mxu1 %vm5497_vm0, %v7510_v0 }
 0x109   :  { %v302_v39 = vpop.f32.mrf.mxu0  ;;  %4700 = vmatmul.mubr.msk.f32.gmra.mxu0 %vm112_vm2, %v5876_v33  ;;  %v4566_v41 = vpop.f32.mrf.mxu1 }
 0x10a   :  { %v6195_v40 = vadd.f32 %v522_v1, %v302_v39  ;;  %4702 = vmatprep.mubr.msk.f32.mxu0 %vm5497_vm0, %v7510_v0 }
 0x10b   :  { %v4467_v42 = vpop.f32.mrf.mxu0  ;;  %v537_v43 = vpop.f32.mrf.mxu1 }
 0x10d   :  { %v307_v45 = vpop.f32.mrf.mxu0  ;;  %4703 = vmatmul.mubr.msk.f32.gmra.mxu0 %vm112_vm2, %v5889_v34  ;;  %v4569_v48 = vpop.f32.mrf.mxu1 }
 0x10e   :  { %v6201_v46 = vadd.f32 %v527_v9, %v307_v45  ;;  %4705 = vmatprep.mubr.msk.f32.mxu0 %vm5497_vm0, %v7510_v0 }
 0x10f   :  { %v4470_v49 = vpop.f32.mrf.mxu0  ;;  %v542_v50 = vpop.f32.mrf.mxu1 }
 0x111   :  { %v312_v52 = vpop.f32.mrf.mxu0  ;;  %4706 = vmatmul.mubr.msk.f32.gmra.mxu0 %vm112_vm2, %v5902_v35  ;;  %v4572_v54 = vpop.f32.mrf.mxu1 }
 0x112   :  { %v6207_v53 = vadd.f32 %v532_v38, %v312_v52  ;;  %4708 = vmatprep.mubr.msk.f32.mxu0 %vm5497_vm0, %v7510_v0  ;;  %v1469_v54 = vld [vmem:[#allocation5 + $0x18] sm:$0xff] }
 0x113   :  { %v4473_v55 = vpop.f32.mrf.mxu0  ;;  %v547_v57 = vpop.f32.mrf.mxu1  ;;  %4904 = vmatpush3.msra.mxu1 %v1469_v54 }
 0x114   :  { %4905 = vmatprep.subr.mxu1 %v7510_v0 }
 0x115   :  { %v317_v58 = vpop.f32.mrf.mxu0  ;;  %4709 = vmatmul.mubr.msk.f32.gmra.mxu0 %vm112_vm2, %v5915_v36  ;;  %v4575_v60 = vpop.f32.mrf.mxu1 }
 0x116   :  { %v6213_v59 = vadd.f32 %v537_v43, %v317_v58  ;;  %4711 = vmatprep.mubr.msk.f32.mxu0 %vm5497_vm0, %v7510_v0 }
 0x117   :  { %v4476_v62 = vpop.f32.mrf.mxu0  ;;  %v552_v63 = vpop.f32.mrf.mxu1 }
 0x119   :  { %v322_v1 = vpop.f32.mrf.mxu0  ;;  %4712 = vmatmul.mubr.msk.f32.gmra.mxu0 %vm112_vm2, %v5928_v37  ;;  %v4578_v5 = vpop.f32.mrf.mxu1 }
 0x11a   :  { %v6219_v2 = vadd.f32 %v542_v50, %v322_v1  ;;  %4714 = vmatprep.mubr.msk.f32.mxu0 %vm5497_vm0, %v7510_v0 }
 0x11b   :  { %v4479_v6 = vpop.f32.mrf.mxu0  ;;  %v557_v9 = vpop.f32.mrf.mxu1 }
 0x11d   :  { %v327_v10 = vpop.f32.mrf.mxu0  ;;  %4715 = vmatmul.mubr.msk.f32.gmra.mxu0 %vm112_vm2, %v6174_v3  ;;  %v4581_v15 = vpop.f32.mrf.mxu1 }
 0x11e   :  { %v6225_v13 = vadd.f32 %v547_v57, %v327_v10  ;;  %4816 = vmatprep.mubr.msk.f32.mxu0 %vm5497_vm0, %v7510_v0 }
 0x11f   :  { %v4482_v38 = vpop.f32.mrf.mxu0  ;;  %v562_v39 = vpop.f32.mrf.mxu1 }
 0x121   :  { %v332_v41 = vpop.f32.mrf.mxu0  ;;  %4817 = vmatmul.mubr.msk.f32.vlgmr.msra.gmra.mxu0 %vm112_vm2, %v5585_v7  ;;  %v4584_v43 = vpop.f32.mrf.mxu1 }
 0x122   :  { %v6231_v42 = vadd.f32 %v552_v63, %v332_v41  ;;  %4819 = vmatprep.mubr.msk.f32.mxu0 %vm5497_vm0, %v7510_v0 }
 0x123   :  { %v4485_v45 = vpop.f32.mrf.mxu0  ;;  %v567_v48 = vpop.f32.mrf.mxu1 }
 0x125   :  { %v337_v49 = vpop.f32.mrf.mxu0  ;;  %4820 = vmatmul.mubr.msk.f32.gmra.mxu0 %vm112_vm2, %v5599_v8  ;;  %v4587_v52 = vpop.f32.mrf.mxu1 }
 0x126   :  { %v6237_v50 = vadd.f32 %v557_v9, %v337_v49  ;;  %4822 = vmatprep.mubr.msk.f32.mxu0 %vm5497_vm0, %v7510_v0 }
 0x127   :  { %v4488_v7 = vpop.f32.mrf.mxu0  ;;  %v572_v55 = vpop.f32.mrf.mxu1 }
 0x129   :  { %v342_v57 = vpop.f32.mrf.mxu0  ;;  %4823 = vmatmul.mubr.msk.f32.gmra.mxu0 %vm112_vm2, %v5620_v11  ;;  %v4590_v8 = vpop.f32.mrf.mxu1 }
 0x12a   :  { %v6244_v58 = vadd.f32 %v562_v39, %v342_v57  ;;  %4825 = vmatprep.mubr.msk.f32.mxu0 %vm5497_vm0, %v7510_v0 }
 0x12b   :  { %v4491_v60 = vpop.f32.mrf.mxu0  ;;  %v577_v62 = vpop.f32.mrf.mxu1 }
 0x12d   :  { %v347_v63 = vpop.f32.mrf.mxu0  ;;  %4826 = vmatmul.mubr.msk.f32.gmra.mxu0 %vm112_vm2, %v5640_v14  ;;  %v4593_v5 = vpop.f32.mrf.mxu1 }
 0x12e   :  { %v6250_v1 = vadd.f32 %v567_v48, %v347_v63  ;;  %4828 = vmatprep.mubr.msk.f32.mxu0 %vm5497_vm0, %v7510_v0  ;;  %v1468_v5 = vld [vmem:[#allocation5 + $0x10] sm:$0xff] }
 0x12f   :  { %v4494_v6 = vpop.f32.mrf.mxu0  ;;  %v582_v11 = vpop.f32.mrf.mxu1  ;;  %4906 = vmatpush3.msra.mxu1 %v1468_v5 }
 0x130   :  { %4907 = vmatprep.subr.mxu1 %v7510_v0 }
 0x131   :  { %v352_v9 = vpop.f32.mrf.mxu0  ;;  %4829 = vmatmul.mubr.msk.f32.gmra.mxu0 %vm112_vm2, %v5654_v16  ;;  %v4596_v15 = vpop.f32.mrf.mxu1 }
 0x132   :  { %v6256_v10 = vadd.f32 %v572_v55, %v352_v9  ;;  %4831 = vmatprep.mubr.msk.f32.mxu0 %vm5497_vm0, %v7510_v0 }
 0x133   :  { %v4497_v38 = vpop.f32.mrf.mxu0  ;;  %v587_v14 = vpop.f32.mrf.mxu1 }
 0x135   :  { %v357_v39 = vpop.f32.mrf.mxu0  ;;  %4832 = vmatmul.mubr.msk.f32.gmra.mxu0 %vm112_vm2, %v5668_v17  ;;  %v4599_v43 = vpop.f32.mrf.mxu1 }
 0x136   :  { %v6262_v41 = vadd.f32 %v577_v62, %v357_v39  ;;  %4834 = vmatprep.mubr.msk.f32.mxu0 %vm5497_vm0, %v7510_v0 }
 0x137   :  { %v4500_v45 = vpop.f32.mrf.mxu0  ;;  %v592_v16 = vpop.f32.mrf.mxu1 }
 0x139   :  { %v362_v48 = vpop.f32.mrf.mxu0  ;;  %4835 = vmatmul.mubr.msk.f32.gmra.mxu0 %vm112_vm2, %v5681_v18  ;;  %v4602_v52 = vpop.f32.mrf.mxu1 }
 0x13a   :  { %v6268_v49 = vadd.f32 %v582_v11, %v362_v48  ;;  %4837 = vmatprep.mubr.msk.f32.mxu0 %vm5497_vm0, %v7510_v0 }
 0x13b   :  { %v4503_v54 = vpop.f32.mrf.mxu0  ;;  %v597_v17 = vpop.f32.mrf.mxu1 }
 0x13d   :  { %v367_v7 = vpop.f32.mrf.mxu0  ;;  %4838 = vmatmul.mubr.msk.f32.gmra.mxu0 %vm112_vm2, %v5694_v19  ;;  %v4605_v57 = vpop.f32.mrf.mxu1 }
 0x13e   :  { %v6274_v55 = vadd.f32 %v587_v14, %v367_v7  ;;  %4840 = vmatprep.mubr.msk.f32.mxu0 %vm5497_vm0, %v7510_v0 }
 0x13f   :  { %v4506_v8 = vpop.f32.mrf.mxu0  ;;  %v602_v18 = vpop.f32.mrf.mxu1 }
 0x141   :  { %v372_v60 = vpop.f32.mrf.mxu0  ;;  %4841 = vmatmul.mubr.msk.f32.gmra.mxu0 %vm112_vm2, %v5707_v20  ;;  %v4608_v63 = vpop.f32.mrf.mxu1 }
 0x142   :  { %v6280_v62 = vadd.f32 %v592_v16, %v372_v60  ;;  %4843 = vmatprep.mubr.msk.f32.mxu0 %vm5497_vm0, %v7510_v0 }
 0x143   :  { %v4509_v19 = vpop.f32.mrf.mxu0  ;;  %v607_v6 = vpop.f32.mrf.mxu1 }
 0x145   :  { %v377_v11 = vpop.f32.mrf.mxu0  ;;  %4844 = vmatmul.mubr.msk.f32.gmra.mxu0 %vm112_vm2, %v5720_v21  ;;  %v4611_v20 = vpop.f32.mrf.mxu1 }
 0x146   :  { %v6287_v9 = vadd.f32 %v597_v17, %v377_v11  ;;  %4846 = vmatprep.mubr.msk.f32.mxu0 %vm5497_vm0, %v7510_v0 }
 0x147   :  { %v4512_v15 = vpop.f32.mrf.mxu0  ;;  %v612_v38 = vpop.f32.mrf.mxu1 }
 0x149   :  { %v382_v14 = vpop.f32.mrf.mxu0  ;;  %4847 = vmatmul.mubr.msk.f32.gmra.mxu0 %vm112_vm2, %v5733_v22  ;;  %v4614_v43 = vpop.f32.mrf.mxu1 }
 0x14a   :  { %v6293_v39 = vadd.f32 %v602_v18, %v382_v14  ;;  %4849 = vmatprep.mubr.msk.f32.mxu0 %vm5497_vm0, %v7510_v0 }
 0x14b   :  { %v4515_v45 = vpop.f32.mrf.mxu0  ;;  %v617_v21 = vpop.f32.mrf.mxu1 }
 0x14c   :  { %v1467_v45 = vld [vmem:[#allocation5 + $0x8] sm:$0xff] }
 0x14d   :  { %v387_v16 = vpop.f32.mrf.mxu0  ;;  %4850 = vmatmul.mubr.msk.f32.gmra.mxu0 %vm112_vm2, %v5746_v23  ;;  %v4617_v52 = vpop.f32.mrf.mxu1  ;;  %4908 = vmatpush3.msra.mxu1 %v1467_v45 }
 0x14e   :  { %v6299_v48 = vadd.f32 %v607_v6, %v387_v16  ;;  %4852 = vmatprep.mubr.msk.f32.mxu0 %vm5497_vm0, %v7510_v0  ;;  %v1466_v52 = vld [vmem:[#allocation5] sm:$0xff]  ;;  %4909 = vmatprep.subr.mxu1 %v7510_v0 }
 0x14f   :  { %v4518_v54 = vpop.f32.mrf.mxu0  ;;  %v622_v22 = vpop.f32.mrf.mxu1  ;;  %4910 = vmatpush3.msra.mxu1 %v1466_v52 }
 0x150   :  { %v1860_v54 = vld [vmem:[#allocation5 + $0x50] sm:$0xff]  ;;  %4912 = vmatmul.mubr.f32.vlgmr.msra.gmra.mxu1 %v7510_v0  ;;  %4956 = vmatprep.subr.mxu1 %v7510_v0 }
 0x151   :  { %v392_v17 = vpop.f32.mrf.mxu0  ;;  %4853 = vmatmul.mubr.msk.f32.gmra.mxu0 %vm112_vm2, %v5759_v24  ;;  %v4620_v57 = vpop.f32.mrf.mxu1  ;;  %4914 = vmatprep.mubr.msk.f32.mxu1 %vm5497_vm0, %v7510_v0 }
 0x152   :  { %v6305_v7 = vadd.f32 %v612_v38, %v392_v17  ;;  %4855 = vmatprep.mubr.msk.f32.mxu0 %vm5497_vm0, %v7510_v0  ;;  %v1859_v57 = vld [vmem:[#allocation5 + $0x48] sm:$0xff] }
 0x153   :  { %v4521_v8 = vpop.f32.mrf.mxu0  ;;  %v627_v23 = vpop.f32.mrf.mxu1 }
 0x155   :  { %v397_v18 = vpop.f32.mrf.mxu0  ;;  %4856 = vmatmul.mubr.msk.f32.gmra.mxu0 %vm112_vm2, %v5772_v25  ;;  %v4623_v63 = vpop.f32.mrf.mxu1 }
 0x156   :  { %v6311_v60 = vadd.f32 %v617_v21, %v397_v18  ;;  %4858 = vmatprep.mubr.msk.f32.mxu0 %vm5497_vm0, %v7510_v0  ;;  %v1861_v21 = vld [vmem:[#allocation5 + $0x58] sm:$0xff]  ;;  %v1858_v18 = vld [vmem:[#allocation5 + $0x40] sm:$0xff] }
 0x157   :  { %v4524_v5 = vpop.f32.mrf.mxu0  ;;  %v982_v24 = vpop.f32.mrf.mxu1  ;;  %5010 = vmatpush3.msra.mxu0 %v1861_v21 }
 0x158   :  { %5011 = vmatprep.subr.mxu0 %v7510_v0 }
 0x159   :  { %v402_v19 = vpop.f32.mrf.mxu0  ;;  %4859 = vmatmul.mubr.msk.f32.gmra.mxu0 %vm112_vm2, %v5785_v26  ;;  %v4725_v11 = vpop.f32.mrf.mxu1 }
 0x15a   :  { %v6317_v6 = vadd.f32 %v622_v22, %v402_v19  ;;  %4861 = vmatprep.mubr.msk.f32.mxu0 %vm5497_vm0, %v7510_v0  ;;  %5012 = vmatpush3.msra.mxu0 %v1860_v54 }
 0x15b   :  { %v4527_v20 = vpop.f32.mrf.mxu0  ;;  %v6321_v25 = vpop.f32.mrf.mxu1  ;;  %5013 = vmatprep.subr.mxu0 %v7510_v0 }
 0x15c   :  { %5014 = vmatpush3.msra.mxu0 %v1859_v57 }
 0x15d   :  { %v407_v15 = vpop.f32.mrf.mxu0  ;;  %4862 = vmatmul.mubr.msk.f32.gmra.mxu0 %vm112_vm2, %v5798_v27  ;;  %v4728_v14 = vpop.f32.mrf.mxu1  ;;  %5015 = vmatprep.subr.mxu0 %v7510_v0 }
 0x15e   :  { %v6325_v38 = vadd.f32 %v627_v23, %v407_v15  ;;  %4864 = vmatprep.mubr.msk.f32.mxu0 %vm5497_vm0, %v7510_v0  ;;  %5016 = vmatpush3.msra.mxu0 %v1858_v18 }
 0x15f   :  { %v4530_v26 = vpop.f32.mrf.mxu0  ;;  %v6329_v43 = vpop.f32.mrf.mxu1  ;;  %5115 = vmatprep.subr.mxu0 %v7510_v0 }
 0x161   :  { %v487_v16 = vpop.f32.mrf.mxu0  ;;  %4865 = vmatmul.mubr.msk.f32.gmra.mxu0 %vm112_vm2, %v5811_v28  ;;  %v4731_v27 = vpop.f32.mrf.mxu1 }
 0x162   :  { %4867 = vmatprep.mubr.msk.f32.mxu0 %vm5497_vm0, %v7510_v0  ;;  %v631_v11 = vadd.f32 %v487_v16, %v6117_v44 }
 0x163   :  { %v4539_v22 = vpop.f32.mrf.mxu0  ;;  %v997_v17 = vpop.f32.mrf.mxu1 }
 0x165   :  { %v492_v8 = vpop.f32.mrf.mxu0  ;;  %4868 = vmatmul.mubr.msk.f32.gmra.mxu0 %vm112_vm2, %v5824_v29  ;;  %v4734_v28 = vpop.f32.mrf.mxu1 }
 0x166   :  { %4870 = vmatprep.mubr.msk.f32.mxu0 %vm5497_vm0, %v7510_v0  ;;  %v632_v45 = vadd.f32 %v492_v8, %v6127_v47 }
 0x167   :  { %v4542_v23 = vpop.f32.mrf.mxu0  ;;  %v1002_v63 = vpop.f32.mrf.mxu1 }
 0x169   :  { %v497_v29 = vpop.f32.mrf.mxu0  ;;  %4871 = vmatmul.mubr.msk.f32.gmra.mxu0 %vm112_vm2, %v5837_v30  ;;  %v4737_v5 = vpop.f32.mrf.mxu1 }
 0x16a   :  { %4873 = vmatprep.mubr.msk.f32.mxu0 %vm5497_vm0, %v7510_v0  ;;  %v633_v54 = vadd.f32 %v497_v29, %v6137_v51 }
 0x16b   :  { %v4545_v19 = vpop.f32.mrf.mxu0  ;;  %v1007_v20 = vpop.f32.mrf.mxu1 }
 0x16d   :  { %v736_v15 = vpop.f32.mrf.mxu0  ;;  %4874 = vmatmul.mubr.msk.f32.gmra.mxu0 %vm112_vm2, %v5850_v31  ;;  %v4740_v30 = vpop.f32.mrf.mxu1 }
 0x16e   :  { %v880_v14 = vadd.f32 %v736_v15, %v631_v11  ;;  %4876 = vmatprep.mubr.msk.f32.mxu0 %vm5497_vm0, %v7510_v0 }
 0x16f   :  { %v4632_v26 = vpop.f32.mrf.mxu0  ;;  %v1012_v27 = vpop.f32.mrf.mxu1 }
 0x170   :  { %v6358_v21 = vadd.f32 %v982_v24, %v880_v14 }
 0x171   :  { %v741_v52 = vpop.f32.mrf.mxu0  ;;  %4877 = vmatmul.mubr.msk.f32.gmra.mxu0 %vm112_vm2, %v5863_v32  ;;  %v4743_v31 = vpop.f32.mrf.mxu1 }
 0x172   :  { %v881_v44 = vadd.f32 %v741_v52, %v632_v45  ;;  %4879 = vmatprep.mubr.msk.f32.mxu0 %vm5497_vm0, %v7510_v0 }
 0x173   :  { %v4635_v16 = vpop.f32.mrf.mxu0  ;;  %v1017_v57 = vpop.f32.mrf.mxu1 }
 0x174   :  { %v6366_v22 = vadd.f32 %v6321_v25, %v881_v44 }
 0x175   :  { %v746_v47 = vpop.f32.mrf.mxu0  ;;  %4880 = vmatmul.mubr.msk.f32.gmra.mxu0 %vm112_vm2, %v5876_v33  ;;  %v4746_v32 = vpop.f32.mrf.mxu1 }
 0x176   :  { %v882_v24 = vadd.f32 %v746_v47, %v633_v54  ;;  %4882 = vmatprep.mubr.msk.f32.mxu0 %vm5497_vm0, %v7510_v0 }
 0x177   :  { %v4638_v8 = vpop.f32.mrf.mxu0  ;;  %v1022_v23 = vpop.f32.mrf.mxu1 }
 0x178   :  { %v6373_v28 = vadd.f32 %v6329_v43, %v882_v24 }
 0x179   :  { %v751_v18 = vpop.f32.mrf.mxu0  ;;  %4883 = vmatmul.mubr.msk.f32.gmra.mxu0 %vm112_vm2, %v5889_v34  ;;  %v4749_v33 = vpop.f32.mrf.mxu1 }
 0x17a   :  { %v883_v51 = vadd.f32 %v751_v18, %v6151_v56  ;;  %4885 = vmatprep.mubr.msk.f32.mxu0 %vm5497_vm0, %v7510_v0 }
 0x17b   :  { %v4641_v25 = vpop.f32.mrf.mxu0  ;;  %v1027_v5 = vpop.f32.mrf.mxu1 }
 0x17c   :  { %v6380_v29 = vadd.f32 %v997_v17, %v883_v51 }
 0x17d   :  { %v756_v19 = vpop.f32.mrf.mxu0  ;;  %4886 = vmatmul.mubr.msk.f32.gmra.mxu0 %vm112_vm2, %v5902_v35  ;;  %v4752_v34 = vpop.f32.mrf.mxu1 }
 0x17e   :  { %v884_v43 = vadd.f32 %v756_v19, %v6161_v61  ;;  %4888 = vmatprep.mubr.msk.f32.mxu0 %vm5497_vm0, %v7510_v0 }
 0x17f   :  { %v4644_v11 = vpop.f32.mrf.mxu0  ;;  %v1032_v15 = vpop.f32.mrf.mxu1 }
 0x180   :  { %v6387_v56 = vadd.f32 %v1002_v63, %v884_v43 }
 0x181   :  { %v761_v14 = vpop.f32.mrf.mxu0  ;;  %4889 = vmatmul.mubr.msk.f32.gmra.mxu0 %vm112_vm2, %v5915_v36  ;;  %v4755_v35 = vpop.f32.mrf.mxu1 }
 0x182   :  { %v885_v17 = vadd.f32 %v761_v14, %v6176_v4  ;;  %4891 = vmatprep.mubr.msk.f32.mxu0 %vm5497_vm0, %v7510_v0 }
 0x183   :  { %v4647_v30 = vpop.f32.mrf.mxu0  ;;  %v1037_v26 = vpop.f32.mrf.mxu1 }
 0x184   :  { %v6394_v61 = vadd.f32 %v1007_v20, %v885_v17 }
 0x185   :  { %v766_v45 = vpop.f32.mrf.mxu0  ;;  %4892 = vmatmul.mubr.msk.f32.gmra.mxu0 %vm112_vm2, %v5928_v37  ;;  %v4758_v36 = vpop.f32.mrf.mxu1 }
 0x186   :  { %v886_v63 = vadd.f32 %v766_v45, %v6186_v12  ;;  %4894 = vmatprep.mubr.msk.f32.mxu0 %vm5497_vm0, %v7510_v0 }
 0x187   :  { %v4650_v52 = vpop.f32.mrf.mxu0  ;;  %v1042_v44 = vpop.f32.mrf.mxu1 }
 0x188   :  { %v6401_v4 = vadd.f32 %v1012_v27, %v886_v63  ;;  %v1659_v52 = vld [vmem:[#allocation5 + $0x38] sm:$0xff] }
 0x189   :  { %v771_v31 = vpop.f32.mrf.mxu0  ;;  %4895 = vmatmul.mubr.msk.f32.gmra.mxu0 %vm112_vm2, %v6174_v3  ;;  %v4761_v37 = vpop.f32.mrf.mxu1  ;;  %4957 = vmatpush3.msra.mxu1 %v1659_v52 }
 0x18a   :  { %v887_v20 = vadd.f32 %v771_v31, %v6195_v40  ;;  %4897 = vmatprep.mubr.msk.f32.mxu0 %vm5497_vm0, %v7510_v0  ;;  %4958 = vmatprep.subr.mxu1 %v7510_v0 }
 0x18b   :  { %v4653_v16 = vpop.f32.mrf.mxu0  ;;  %v1047_v54 = vpop.f32.mrf.mxu1 }
 0x18c   :  { %v6408_v12 = vadd.f32 %v1017_v57, %v887_v20 }
 0x18d   :  { %v776_v47 = vpop.f32.mrf.mxu0  ;;  %4898 = vmatmul.mubr.f32.gmra.mxu0 %v7510_v0  ;;  %v4764_v24 = vpop.f32.mrf.mxu1 }
 0x18e   :  { %v888_v27 = vadd.f32 %v776_v47, %v6201_v46  ;;  %4900 = vmatprep.mubr.msk.f32.mxu0 %vm5497_vm0, %v7510_v0 }
 0x18f   :  { %v4656_v3 = vpop.f32.mrf.mxu0  ;;  %v1052_v40 = vpop.f32.mrf.mxu1 }
 0x190   :  { %v6414_v32 = vadd.f32 %v1022_v23, %v888_v27 }
 0x191   :  { %v781_v8 = vpop.f32.mrf.mxu0  ;;  %4901 = vmatmul.mubr.f32.gmra.mxu0 %v7510_v0  ;;  %v4767_v18 = vpop.f32.mrf.mxu1 }
 0x192   :  { %v889_v57 = vadd.f32 %v781_v8, %v6207_v53  ;;  %5017 = vmatprep.mubr.msk.f32.mxu0 %vm5497_vm0, %v7510_v0 }
 0x193   :  { %v4659_v51 = vpop.f32.mrf.mxu0  ;;  %v1057_v46 = vpop.f32.mrf.mxu1 }
 0x194   :  { %v6420_v33 = vadd.f32 %v1027_v5, %v889_v57 }
 0x195   :  { %v786_v25 = vpop.f32.mrf.mxu0  ;;  %v4770_v43 = vpop.f32.mrf.mxu1 }
 0x196   :  { %v890_v19 = vadd.f32 %v786_v25, %v6213_v59  ;;  %v1658_v25 = vld [vmem:[#allocation5 + $0x30] sm:$0xff] }
 0x197   :  { %v4662_v23 = vpop.f32.mrf.mxu0  ;;  %v1062_v11 = vpop.f32.mrf.mxu1  ;;  %4959 = vmatpush3.msra.mxu1 %v1658_v25 }
 0x198   :  { %v6423_v34 = vadd.f32 %v1032_v15, %v890_v19  ;;  %4960 = vmatprep.subr.mxu1 %v7510_v0 }
 0x199   :  { %v791_v14 = vpop.f32.mrf.mxu0  ;;  %v4773_v53 = vpop.f32.mrf.mxu1 }
 0x19a   :  { %v891_v17 = vadd.f32 %v791_v14, %v6219_v2 }
 0x19b   :  { %v4665_v35 = vpop.f32.mrf.mxu0  ;;  %v1067_v45 = vpop.f32.mrf.mxu1 }
 0x19c   :  { %v6426_v30 = vadd.f32 %v1037_v26, %v891_v17 }
 0x19d   :  { %v796_v63 = vpop.f32.mrf.mxu0  ;;  %v4776_v36 = vpop.f32.mrf.mxu1 }
 0x19e   :  { %v892_v5 = vadd.f32 %v796_v63, %v6225_v13 }
 0x19f   :  { %v4668_v31 = vpop.f32.mrf.mxu0  ;;  %v1072_v15 = vpop.f32.mrf.mxu1 }
 0x1a0   :  { %v6429_v59 = vadd.f32 %v1042_v44, %v892_v5 }
 0x1a1   :  { %v801_v20 = vpop.f32.mrf.mxu0  ;;  %v4779_v37 = vpop.f32.mrf.mxu1 }
 0x1a2   :  { %v893_v2 = vadd.f32 %v801_v20, %v6231_v42 }
 0x1a3   :  { %v4671_v16 = vpop.f32.mrf.mxu0  ;;  %v1077_v47 = vpop.f32.mrf.mxu1 }
 0x1a4   :  { %v6433_v26 = vadd.f32 %v1047_v54, %v893_v2 }
 0x1a5   :  { %v806_v27 = vpop.f32.mrf.mxu0  ;;  %v4782_v24 = vpop.f32.mrf.mxu1 }
 0x1a6   :  { %v894_v13 = vadd.f32 %v806_v27, %v6237_v50  ;;  %v1657_v27 = vld [vmem:[#allocation5 + $0x28] sm:$0xff] }
 0x1a7   :  { %v4674_v3 = vpop.f32.mrf.mxu0  ;;  %v1082_v44 = vpop.f32.mrf.mxu1  ;;  %4961 = vmatpush3.msra.mxu1 %v1657_v27 }
 0x1a8   :  { %v6436_v8 = vadd.f32 %v1052_v40, %v894_v13  ;;  %4962 = vmatprep.subr.mxu1 %v7510_v0 }
 0x1a9   :  { %v811_v57 = vpop.f32.mrf.mxu0  ;;  %v4785_v51 = vpop.f32.mrf.mxu1 }
 0x1aa   :  { %v895_v18 = vadd.f32 %v811_v57, %v6244_v58 }
 0x1ab   :  { %v4677_v19 = vpop.f32.mrf.mxu0  ;;  %v1087_v54 = vpop.f32.mrf.mxu1 }
 0x1ac   :  { %v6439_v42 = vadd.f32 %v1057_v46, %v895_v18 }
 0x1ad   :  { %v816_v43 = vpop.f32.mrf.mxu0  ;;  %v4788_v23 = vpop.f32.mrf.mxu1 }
 0x1ae   :  { %v896_v50 = vadd.f32 %v816_v43, %v6250_v1 }
 0x1af   :  { %v4680_v14 = vpop.f32.mrf.mxu0  ;;  %v1092_v17 = vpop.f32.mrf.mxu1 }
 0x1b0   :  { %v6443_v40 = vadd.f32 %v1062_v11, %v896_v50 }
 0x1b1   :  { %v821_v53 = vpop.f32.mrf.mxu0  ;;  %v4791_v35 = vpop.f32.mrf.mxu1 }
 0x1b2   :  { %v897_v58 = vadd.f32 %v821_v53, %v6256_v10 }
 0x1b3   :  { %v4683_v63 = vpop.f32.mrf.mxu0  ;;  %v1097_v46 = vpop.f32.mrf.mxu1 }
 0x1b4   :  { %v6446_v5 = vadd.f32 %v1067_v45, %v897_v58  ;;  %v1656_v63 = vld [vmem:[#allocation5 + $0x20] sm:$0xff] }
 0x1b5   :  { %v826_v36 = vpop.f32.mrf.mxu0  ;;  %v4794_v31 = vpop.f32.mrf.mxu1  ;;  %4963 = vmatpush3.msra.mxu1 %v1656_v63 }
 0x1b6   :  { %v898_v52 = vadd.f32 %v826_v36, %v6262_v41  ;;  %5062 = vmatprep.subr.mxu1 %v7510_v0 }
 0x1b7   :  { %v4686_v20 = vpop.f32.mrf.mxu0  ;;  %v1102_v1 = vpop.f32.mrf.mxu1 }
 0x1b8   :  { %v6449_v2 = vadd.f32 %v1072_v15, %v898_v52 }
 0x1b9   :  { %v831_v37 = vpop.f32.mrf.mxu0  ;;  %v4797_v16 = vpop.f32.mrf.mxu1 }
 0x1ba   :  { %v899_v11 = vadd.f32 %v831_v37, %v6268_v49 }
 0x1bb   :  { %v4689_v13 = vpop.f32.mrf.mxu0  ;;  %v1107_v45 = vpop.f32.mrf.mxu1 }
 0x1bc   :  { %v6452_v10 = vadd.f32 %v1077_v47, %v899_v11 }
 0x1bd   :  { %v836_v24 = vpop.f32.mrf.mxu0  ;;  %v4800_v3 = vpop.f32.mrf.mxu1 }
 0x1be   :  { %v900_v41 = vadd.f32 %v836_v24, %v6274_v55 }
 0x1bf   :  { %v4692_v57 = vpop.f32.mrf.mxu0  ;;  %v1112_v18 = vpop.f32.mrf.mxu1 }
 0x1c0   :  { %v6456_v15 = vadd.f32 %v1082_v44, %v900_v41 }
 0x1c1   :  { %v841_v51 = vpop.f32.mrf.mxu0  ;;  %v4803_v25 = vpop.f32.mrf.mxu1 }
 0x1c2   :  { %v901_v49 = vadd.f32 %v841_v51, %v6280_v62 }
 0x1c3   :  { %v4695_v19 = vpop.f32.mrf.mxu0  ;;  %v1117_v47 = vpop.f32.mrf.mxu1 }
 0x1c4   :  { %v6459_v43 = vadd.f32 %v1087_v54, %v901_v49 }
 0x1c5   :  { %v846_v50 = vpop.f32.mrf.mxu0  ;;  %v4806_v14 = vpop.f32.mrf.mxu1 }
 0x1c6   :  { %v902_v23 = vadd.f32 %v846_v50, %v6287_v9  ;;  %v2184_v50 = vld [vmem:[#allocation5 + $0x98] sm:$0xff] }
 0x1c7   :  { %v4698_v53 = vpop.f32.mrf.mxu0  ;;  %v1122_v55 = vpop.f32.mrf.mxu1 }
 0x1c8   :  { %v6462_v58 = vadd.f32 %v1092_v17, %v902_v23 }
 0x1c9   :  { %v851_v35 = vpop.f32.mrf.mxu0  ;;  %v4809_v36 = vpop.f32.mrf.mxu1 }
 0x1ca   :  { %v903_v44 = vadd.f32 %v851_v35, %v6293_v39 }
 0x1cb   :  { %v4701_v52 = vpop.f32.mrf.mxu0 }
 0x1cc   :  { %v6465_v62 = vadd.f32 %v1097_v46, %v903_v44 }
 0x1cd   :  { %v856_v54 = vpop.f32.mrf.mxu0 }
 0x1ce   :  { %v904_v31 = vadd.f32 %v856_v54, %v6299_v48 }
 0x1cf   :  { %v4704_v9 = vpop.f32.mrf.mxu0 }
 0x1d0   :  { %v6469_v20 = vadd.f32 %v1102_v1, %v904_v31 }
 0x1d1   :  { %v861_v17 = vpop.f32.mrf.mxu0 }
 0x1d2   :  { %v905_v37 = vadd.f32 %v861_v17, %v6305_v7 }
 0x1d3   :  { %v4707_v11 = vpop.f32.mrf.mxu0 }
 0x1d4   :  { %v6472_v16 = vadd.f32 %v1107_v45, %v905_v37 }
 0x1d5   :  { %v866_v39 = vpop.f32.mrf.mxu0 }
 0x1d6   :  { %v906_v27 = vadd.f32 %v866_v39, %v6311_v60  ;;  %v6486_v60 = vld [vmem:[%s7500_s2] ss:$0 sm:$0xff] }
 0x1d7   :  { %v4710_v13 = vpop.f32.mrf.mxu0 }
 0x1d8   :  { %v6475_v46 = vadd.f32 %v1112_v18, %v906_v27 }
 0x1d9   :  { %v871_v24 = vpop.f32.mrf.mxu0 }
 0x1da   :  { %v907_v41 = vadd.f32 %v871_v24, %v6317_v6 }
 0x1db   :  { %v4713_v3 = vpop.f32.mrf.mxu0 }
 0x1dc   :  { %v6478_v48 = vadd.f32 %v1117_v47, %v907_v41 }
 0x1dd   :  { %v876_v1 = vpop.f32.mrf.mxu0 }
 0x1de   :  { %v908_v57 = vadd.f32 %v876_v1, %v6325_v38 }
 0x1df   :  { %v4716_v51 = vpop.f32.mrf.mxu0 }
 0x1e0   :  { %v6481_v7 = vadd.f32 %v1122_v55, %v908_v57 }
 0x1e1   :  { %v1228_v45 = vpop.f32.mrf.mxu0 }
 0x1e2   :  { %v1372_v18 = vadd.f32 %v1228_v45, %v6358_v21  ;;  %v2183_v21 = vld [vmem:[#allocation5 + $0x90] sm:$0xff] }
 0x1e3   :  { %v4818_v49 = vpop.f32.mrf.mxu0 }
 0x1e4   :  { %v1408_v6 = vadd.f32 %v6486_v60, %v1372_v18 }
 0x1e5   :  { %v1233_v25 = vpop.f32.mrf.mxu0 }
 0x1e6   :  { %v1437_v19 = vmax.f32 %v1408_v6, 0.0  ;;  %v6491_v47 = vadd.f32 %v1233_v25, %v6366_v22  ;;  %v2182_v22 = vld [vmem:[#allocation5 + $0x88] sm:$0xff] }
 0x1e7   :  { %v4821_v38 = vpop.f32.mrf.mxu0 }
 0x1e8   :  { %4915 = vmatmul.mubr.msk.f32.gmra.mxu1 %vm1470_vm3, %v1437_v19  ;;  %5018 = vmatmul.mubr.msk.f32.vlgmr.msra.gmra.mxu0 %vm1470_vm3, %v1437_v19 }
 0x1e9   :  { %v1238_v23 = vpop.f32.mrf.mxu0  ;;  %4917 = vmatprep.mubr.msk.f32.mxu1 %vm5497_vm0, %v7510_v0  ;;  %5020 = vmatprep.mubr.msk.f32.mxu0 %vm5497_vm0, %v7510_v0 }
 0x1ea   :  { %v1374_v14 = vadd.f32 %v1238_v23, %v6373_v28  ;;  %5116 = vmatpush3.msra.mxu0 %v2184_v50  ;;  %v2181_v28 = vld [vmem:[#allocation5 + $0x80] sm:$0xff] }
 0x1eb   :  { %v4824_v53 = vpop.f32.mrf.mxu0  ;;  %5117 = vmatprep.subr.mxu0 %v7510_v0 }
 0x1ec   :  { %v1410_v55 = vadd.f32 %v6486_v60, %v1374_v14  ;;  %5118 = vmatpush3.msra.mxu0 %v2183_v21 }
 0x1ed   :  { %v1243_v35 = vpop.f32.mrf.mxu0  ;;  %5119 = vmatprep.subr.mxu0 %v7510_v0 }
 0x1ee   :  { %v6503_v44 = vmax.f32 %v1410_v55, 0.0  ;;  %v6506_v63 = vadd.f32 %v1243_v35, %v6380_v29  ;;  %5120 = vmatpush3.msra.mxu0 %v2182_v22 }
 0x1ef   :  { %v4827_v36 = vpop.f32.mrf.mxu0  ;;  %5121 = vmatprep.subr.mxu0 %v7510_v0 }
 0x1f0   :  { %4918 = vmatmul.mubr.msk.f32.gmra.mxu1 %vm1470_vm3, %v6503_v44  ;;  %5021 = vmatmul.mubr.msk.f32.gmra.mxu0 %vm1470_vm3, %v6503_v44 }
 0x1f1   :  { %v1248_v52 = vpop.f32.mrf.mxu0  ;;  %4920 = vmatprep.mubr.msk.f32.mxu1 %vm5497_vm0, %v7510_v0  ;;  %5023 = vmatprep.mubr.msk.f32.mxu0 %vm5497_vm0, %v7510_v0 }
 0x1f2   :  { %v1376_v29 = vadd.f32 %v1248_v52, %v6387_v56  ;;  %5122 = vmatpush3.msra.mxu0 %v2181_v28 }
 0x1f3   :  { %v4830_v54 = vpop.f32.mrf.mxu0 }
 0x1f4   :  { %v1412_v31 = vadd.f32 %v6486_v60, %v1376_v29 }
 0x1f5   :  { %v1253_v9 = vpop.f32.mrf.mxu0 }
 0x1f6   :  { %v6519_v17 = vmax.f32 %v1412_v31, 0.0  ;;  %v6522_v37 = vadd.f32 %v1253_v9, %v6394_v61 }
 0x1f7   :  { %v4833_v11 = vpop.f32.mrf.mxu0 }
 0x1f8   :  { %4921 = vmatmul.mubr.msk.f32.gmra.mxu1 %vm1470_vm3, %v6519_v17  ;;  %5024 = vmatmul.mubr.msk.f32.gmra.mxu0 %vm1470_vm3, %v6519_v17 }
 0x1f9   :  { %v1258_v39 = vpop.f32.mrf.mxu0  ;;  %4923 = vmatprep.mubr.msk.f32.mxu1 %vm5497_vm0, %v7510_v0  ;;  %5026 = vmatprep.mubr.msk.f32.mxu0 %vm5497_vm0, %v7510_v0 }
 0x1fa   :  { %v1378_v56 = vadd.f32 %v1258_v39, %v6401_v4 }
 0x1fb   :  { %v4836_v27 = vpop.f32.mrf.mxu0 }
 0x1fc   :  { %v1414_v61 = vadd.f32 %v6486_v60, %v1378_v56 }
 0x1fd   :  { %v1263_v13 = vpop.f32.mrf.mxu0 }
 0x1fe   :  { %v6534_v24 = vmax.f32 %v1414_v61, 0.0  ;;  %v6537_v41 = vadd.f32 %v1263_v13, %v6408_v12 }
 0x1ff   :  { %v4839_v3 = vpop.f32.mrf.mxu0 }
 0x200   :  { %4924 = vmatmul.mubr.msk.f32.gmra.mxu1 %vm1470_vm3, %v6534_v24  ;;  %5027 = vmatmul.mubr.msk.f32.gmra.mxu0 %vm1470_vm3, %v6534_v24 }
 0x201   :  { %v1268_v1 = vpop.f32.mrf.mxu0  ;;  %4926 = vmatprep.mubr.msk.f32.mxu1 %vm5497_vm0, %v7510_v0  ;;  %5029 = vmatprep.mubr.msk.f32.mxu0 %vm5497_vm0, %v7510_v0 }
 0x202   :  { %v1380_v4 = vadd.f32 %v1268_v1, %v6414_v32 }
 0x203   :  { %v4842_v57 = vpop.f32.mrf.mxu0 }
 0x204   :  { %v1416_v12 = vadd.f32 %v6486_v60, %v1380_v4 }
 0x205   :  { %v1273_v51 = vpop.f32.mrf.mxu0 }
 0x206   :  { %v6549_v45 = vmax.f32 %v1416_v12, 0.0  ;;  %v6552_v18 = vadd.f32 %v1273_v51, %v6420_v33 }
 0x207   :  { %v4845_v49 = vpop.f32.mrf.mxu0 }
 0x208   :  { %4927 = vmatmul.mubr.msk.f32.gmra.mxu1 %vm1470_vm3, %v6549_v45  ;;  %5030 = vmatmul.mubr.msk.f32.gmra.mxu0 %vm1470_vm3, %v6549_v45 }
 0x209   :  { %v1278_v6 = vpop.f32.mrf.mxu0  ;;  %4929 = vmatprep.mubr.msk.f32.mxu1 %vm5497_vm0, %v7510_v0  ;;  %5032 = vmatprep.mubr.msk.f32.mxu0 %vm5497_vm0, %v7510_v0 }
 0x20a   :  { %v1382_v32 = vadd.f32 %v1278_v6, %v6423_v34 }
 0x20b   :  { %v4848_v25 = vpop.f32.mrf.mxu0 }
 0x20c   :  { %v1418_v33 = vadd.f32 %v6486_v60, %v1382_v32 }
 0x20d   :  { %v1283_v19 = vpop.f32.mrf.mxu0 }
 0x20e   :  { %v6564_v38 = vmax.f32 %v1418_v33, 0.0  ;;  %v6567_v50 = vadd.f32 %v1283_v19, %v6426_v30 }
 0x20f   :  { %v4851_v23 = vpop.f32.mrf.mxu0 }
 0x210   :  { %4930 = vmatmul.mubr.msk.f32.gmra.mxu1 %vm1470_vm3, %v6564_v38  ;;  %5033 = vmatmul.mubr.msk.f32.gmra.mxu0 %vm1470_vm3, %v6564_v38  ;;  %v6609_v56 = vpop.f32.mrf.mxu1 }
 0x211   :  { %v1288_v21 = vpop.f32.mrf.mxu0  ;;  %4932 = vmatprep.mubr.msk.f32.mxu1 %vm5497_vm0, %v7510_v0  ;;  %5035 = vmatprep.mubr.msk.f32.mxu0 %vm5497_vm0, %v7510_v0 }
 0x212   :  { %v1384_v34 = vadd.f32 %v1288_v21, %v6429_v59  ;;  %v4913_v3 = vpop.f32.mrf.mxu1 }
 0x213   :  { %v4854_v14 = vpop.f32.mrf.mxu0 }
 0x214   :  { %v1420_v30 = vadd.f32 %v6486_v60, %v1384_v34 }
 0x215   :  { %v1293_v53 = vpop.f32.mrf.mxu0 }
 0x216   :  { %v6579_v22 = vmax.f32 %v1420_v30, 0.0  ;;  %v6582_v55 = vadd.f32 %v1293_v53, %v6433_v26 }
 0x217   :  { %v4857_v35 = vpop.f32.mrf.mxu0 }
 0x218   :  { %4933 = vmatmul.mubr.msk.f32.gmra.mxu1 %vm1470_vm3, %v6579_v22  ;;  %5036 = vmatmul.mubr.msk.f32.gmra.mxu0 %vm1470_vm3, %v6579_v22 }
 0x219   :  { %v1298_v36 = vpop.f32.mrf.mxu0  ;;  %4935 = vmatprep.mubr.msk.f32.mxu1 %vm5497_vm0, %v7510_v0  ;;  %5038 = vmatprep.mubr.msk.f32.mxu0 %vm5497_vm0, %v7510_v0 }
 0x21a   :  { %v1386_v59 = vadd.f32 %v1298_v36, %v6436_v8 }
 0x21b   :  { %v4860_v28 = vpop.f32.mrf.mxu0 }
 0x21c   :  { %v1422_v26 = vadd.f32 %v6486_v60, %v1386_v59 }
 0x21d   :  { %v1303_v52 = vpop.f32.mrf.mxu0 }
 0x21e   :  { %v6594_v29 = vmax.f32 %v1422_v26, 0.0  ;;  %v6597_v54 = vadd.f32 %v1303_v52, %v6439_v42 }
 0x21f   :  { %v4863_v31 = vpop.f32.mrf.mxu0 }
 0x220   :  { %4936 = vmatmul.mubr.msk.f32.gmra.mxu1 %vm1470_vm3, %v6594_v29  ;;  %5039 = vmatmul.mubr.msk.f32.gmra.mxu0 %vm1470_vm3, %v6594_v29 }
 0x221   :  { %v1308_v9 = vpop.f32.mrf.mxu0  ;;  %4938 = vmatprep.mubr.msk.f32.mxu1 %vm5497_vm0, %v7510_v0  ;;  %5041 = vmatprep.mubr.msk.f32.mxu0 %vm5497_vm0, %v7510_v0 }
 0x222   :  { %v1388_v8 = vadd.f32 %v1308_v9, %v6443_v40 }
 0x223   :  { %v4866_v11 = vpop.f32.mrf.mxu0 }
 0x224   :  { %v1424_v42 = vadd.f32 %v6486_v60, %v1388_v8 }
 0x225   :  { %v1313_v39 = vpop.f32.mrf.mxu0 }
 0x226   :  { %v6611_v27 = vmax.f32 %v1424_v42, 0.0  ;;  %v6614_v61 = vadd.f32 %v1313_v39, %v6446_v5 }
 0x227   :  { %v4869_v13 = vpop.f32.mrf.mxu0 }
 0x228   :  { %4939 = vmatmul.mubr.msk.f32.gmra.mxu1 %vm1470_vm3, %v6611_v27  ;;  %5042 = vmatmul.mubr.msk.f32.gmra.mxu0 %vm1470_vm3, %v6611_v27 }
 0x229   :  { %v1318_v40 = vpop.f32.mrf.mxu0  ;;  %4941 = vmatprep.mubr.msk.f32.mxu1 %vm5497_vm0, %v7510_v0  ;;  %5044 = vmatprep.mubr.msk.f32.mxu0 %vm5497_vm0, %v7510_v0 }
 0x22a   :  { %v1390_v1 = vadd.f32 %v1318_v40, %v6449_v2  ;;  %v2024_v40 = vld [vmem:[#allocation5 + $0x78] sm:$0xff] }
 0x22b   :  { %v4872_v4 = vpop.f32.mrf.mxu0 }
 0x22c   :  { %v1426_v5 = vadd.f32 %v6486_v60, %v1390_v1 }
 0x22d   :  { %v1323_v57 = vpop.f32.mrf.mxu0 }
 0x22e   :  { %v6626_v12 = vmax.f32 %v1426_v5, 0.0  ;;  %v6629_v51 = vadd.f32 %v1323_v57, %v6452_v10  ;;  %v2023_v5 = vld [vmem:[#allocation5 + $0x70] sm:$0xff] }
 0x22f   :  { %v4875_v49 = vpop.f32.mrf.mxu0 }
 0x230   :  { %4942 = vmatmul.mubr.msk.f32.gmra.mxu1 %vm1470_vm3, %v6626_v12  ;;  %5045 = vmatmul.mubr.msk.f32.gmra.mxu0 %vm1470_vm3, %v6626_v12  ;;  %v2022_v49 = vld [vmem:[#allocation5 + $0x68] sm:$0xff] }
 0x231   :  { %v1328_v6 = vpop.f32.mrf.mxu0  ;;  %4944 = vmatprep.mubr.msk.f32.mxu1 %vm5497_vm0, %v7510_v0  ;;  %5047 = vmatprep.mubr.msk.f32.mxu0 %vm5497_vm0, %v7510_v0 }
 0x232   :  { %v1392_v2 = vadd.f32 %v1328_v6, %v6456_v15  ;;  %v6728_v6 = vadd.f32 %v6486_v60, %v6522_v37 }
 0x233   :  { %v4878_v32 = vpop.f32.mrf.mxu0 }
 0x234   :  { %v1428_v10 = vadd.f32 %v6486_v60, %v1392_v2  ;;  %v2021_v2 = vld [vmem:[#allocation5 + $0x60] sm:$0xff]  ;;  %v1442_v37 = vmax.f32 %v6728_v6, 0.0  ;;  %v6743_v32 = vadd.f32 %v6486_v60, %v6537_v41  ;;  %v6758_v41 = vadd.f32 %v6486_v60, %v6552_v18 }
 0x235   :  { %v1333_v25 = vpop.f32.mrf.mxu0  ;;  %v6786_v18 = vadd.f32 %v6486_v60, %v6582_v55  ;;  %v6814_v55 = vadd.f32 %v6486_v60, %v6614_v61 }
 0x236   :  { %v6641_v33 = vmax.f32 %v1428_v10, 0.0  ;;  %v6644_v19 = vadd.f32 %v1333_v25, %v6459_v43  ;;  %v6772_v10 = vadd.f32 %v6486_v60, %v6567_v50  ;;  %v6800_v50 = vadd.f32 %v6486_v60, %v6597_v54 }
 0x237   :  { %v4881_v23 = vpop.f32.mrf.mxu0  ;;  %v6828_v54 = vadd.f32 %v6486_v60, %v6629_v51 }
 0x238   :  { %4945 = vmatmul.mubr.msk.f32.gmra.mxu1 %vm1470_vm3, %v6641_v33  ;;  %5048 = vmatmul.mubr.msk.f32.gmra.mxu0 %vm1470_vm3, %v6641_v33  ;;  %v6840_v61 = vadd.f32 %v6486_v60, %v6644_v19 }
 0x239   :  { %v1338_v21 = vpop.f32.mrf.mxu0  ;;  %4947 = vmatprep.mubr.msk.f32.mxu1 %vm5497_vm0, %v7510_v0  ;;  %5050 = vmatprep.mubr.msk.f32.mxu0 %vm5497_vm0, %v7510_v0 }
 0x23a   :  { %v1394_v15 = vadd.f32 %v1338_v21, %v6462_v58 }
 0x23b   :  { %v4884_v34 = vpop.f32.mrf.mxu0 }
 0x23c   :  { %v1430_v43 = vadd.f32 %v6486_v60, %v1394_v15 }
 0x23d   :  { %v1343_v14 = vpop.f32.mrf.mxu0 }
 0x23e   :  { %v6656_v30 = vmax.f32 %v1430_v43, 0.0  ;;  %v6659_v53 = vadd.f32 %v1343_v14, %v6465_v62 }
 0x23f   :  { %v4887_v35 = vpop.f32.mrf.mxu0 }
 0x240   :  { %4948 = vmatmul.mubr.msk.f32.gmra.mxu1 %vm1470_vm3, %v6656_v30  ;;  %5051 = vmatmul.mubr.msk.f32.gmra.mxu0 %vm1470_vm3, %v6656_v30  ;;  %v1431_v51 = vadd.f32 %v6486_v60, %v6659_v53 }
 0x241   :  { %v1348_v36 = vpop.f32.mrf.mxu0  ;;  %4950 = vmatprep.mubr.msk.f32.mxu1 %vm5497_vm0, %v7510_v0  ;;  %5053 = vmatprep.mubr.msk.f32.mxu0 %vm5497_vm0, %v7510_v0 }
 0x242   :  { %v1396_v58 = vadd.f32 %v1348_v36, %v6469_v20 }
 0x243   :  { %v4890_v59 = vpop.f32.mrf.mxu0 }
 0x244   :  { %v1432_v62 = vadd.f32 %v6486_v60, %v1396_v58 }
 0x245   :  { %v6671_v28 = vpop.f32.mrf.mxu0 }
 0x246   :  { %v6673_v26 = vmax.f32 %v1432_v62, 0.0  ;;  %v1397_v25 = vadd.f32 %v6671_v28, %v6472_v16 }
 0x247   :  { %v4893_v52 = vpop.f32.mrf.mxu0 }
 0x248   :  { %4951 = vmatmul.mubr.msk.f32.gmra.mxu1 %vm1470_vm3, %v6673_v26  ;;  %5054 = vmatmul.mubr.msk.f32.gmra.mxu0 %vm1470_vm3, %v6673_v26  ;;  %v1433_v19 = vadd.f32 %v6486_v60, %v1397_v25 }
 0x249   :  { %v1358_v31 = vpop.f32.mrf.mxu0  ;;  %4953 = vmatprep.mubr.msk.f32.mxu1 %vm5497_vm0, %v7510_v0  ;;  %5056 = vmatprep.mubr.msk.f32.mxu0 %vm5497_vm0, %v7510_v0 }
 0x24a   :  { %v1398_v20 = vadd.f32 %v1358_v31, %v6475_v46  ;;  %v6699_v46 = vadd.f32 %v6486_v60, %v6491_v47  ;;  %v6711_v47 = vadd.f32 %v6486_v60, %v6506_v63  ;;  %v1462_v16 = vmax.f32 %v1433_v19, 0.0 }
 0x24b   :  { %v4896_v9 = vpop.f32.mrf.mxu0 }
 0x24c   :  { %v1434_v8 = vadd.f32 %v6486_v60, %v1398_v20  ;;  %v1438_v57 = vmax.f32 %v6699_v46, 0.0  ;;  %v1440_v63 = vmax.f32 %v6711_v47, 0.0 }
 0x24d   :  { %v6685_v11 = vpop.f32.mrf.mxu0 }
 0x24e   :  { %v6687_v42 = vmax.f32 %v1434_v8, 0.0  ;;  %v1399_v23 = vadd.f32 %v6685_v11, %v6478_v48 }
 0x24f   :  { %v4899_v39 = vpop.f32.mrf.mxu0 }
 0x250   :  { %4954 = vmatmul.mubr.msk.f32.gmra.mxu1 %vm1470_vm3, %v6687_v42  ;;  %5057 = vmatmul.mubr.msk.f32.gmra.mxu0 %vm1470_vm3, %v6687_v42 }
 0x251   :  { %v1368_v13 = vpop.f32.mrf.mxu0  ;;  %4964 = vmatprep.mubr.msk.f32.mxu1 %vm5497_vm0, %v7510_v0  ;;  %5059 = vmatprep.mubr.msk.f32.mxu0 %vm5497_vm0, %v7510_v0 }
 0x252   :  { %v1400_v3 = vadd.f32 %v1368_v13, %v6481_v7 }
 0x253   :  { %v4902_v1 = vpop.f32.mrf.mxu0 }
 0x254   :  { %v6703_v4 = vadd.f32 %v6486_v60, %v1400_v3  ;;  %4965 = vmatmul.mubr.f32.vlgmr.msra.gmra.mxu1 %v7510_v0  ;;  %v2379_v3 = vld [vmem:[#allocation7 + $0x10] sm:$0xff]  ;;  %v2377_v1 = vld [vmem:[#allocation7] sm:$0xff] }
 0x255   :  { %5063 = vmatpush3.msra.mxu1 %v2024_v40  ;;  %4967 = vmatprep.mubr.msk.f32.mxu1 %vm5497_vm0, %v7510_v0  ;;  %v2378_v40 = vld [vmem:[#allocation7 + $0x8] sm:$0xff] }
 0x256   :  { %v1465_v7 = vmax.f32 %v6703_v4, 0.0  ;;  %5064 = vmatprep.subr.mxu1 %v7510_v0 }
 0x257   :  { %5065 = vmatpush3.msra.mxu1 %v2023_v5 }
 0x258   :  { %4968 = vmatmul.mubr.msk.f32.gmra.mxu1 %vm1470_vm3, %v1438_v57  ;;  %5060 = vmatmul.mubr.msk.f32.gmra.mxu0 %vm1470_vm3, %v1465_v7 }
 0x259   :  { %4970 = vmatprep.mubr.msk.f32.mxu1 %vm5497_vm0, %v7510_v0  ;;  %5123 = vmatprep.mubr.msk.f32.mxu0 %vm5497_vm0, %v7510_v0 }
 0x25a   :  { %5066 = vmatprep.subr.mxu1 %v7510_v0 }
 0x25b   :  { %5067 = vmatpush3.msra.mxu1 %v2022_v49 }
 0x25c   :  { %4971 = vmatmul.mubr.msk.f32.gmra.mxu1 %vm1470_vm3, %v1440_v63  ;;  %5124 = vmatmul.mubr.msk.f32.vlgmr.msra.gmra.mxu0 %vm1470_vm3, %v6503_v44  ;;  %v1444_v44 = vmax.f32 %v6743_v32, 0.0  ;;  %v2887_v32 = vld [vmem:[#allocation7 + $0x88] sm:$0xff] }
 0x25d   :  { %4973 = vmatprep.mubr.msk.f32.mxu1 %vm5497_vm0, %v7510_v0  ;;  %5126 = vmatprep.mubr.msk.f32.mxu0 %vm5497_vm0, %v7510_v0 }
 0x25e   :  { %5068 = vmatprep.subr.mxu1 %v7510_v0 }
 0x25f   :  { %5069 = vmatpush3.msra.mxu1 %v2021_v2 }
 0x260   :  { %4974 = vmatmul.mubr.msk.f32.gmra.mxu1 %vm1470_vm3, %v1442_v37  ;;  %5127 = vmatmul.mubr.msk.f32.gmra.mxu0 %vm1470_vm3, %v6519_v17  ;;  %v1446_v17 = vmax.f32 %v6758_v41, 0.0 }
 0x261   :  { %4976 = vmatprep.mubr.msk.f32.mxu1 %vm5497_vm0, %v7510_v0  ;;  %5129 = vmatprep.mubr.msk.f32.mxu0 %vm5497_vm0, %v7510_v0 }
 0x264   :  { %4977 = vmatmul.mubr.msk.f32.gmra.mxu1 %vm1470_vm3, %v1444_v44  ;;  %5130 = vmatmul.mubr.msk.f32.gmra.mxu0 %vm1470_vm3, %v6534_v24  ;;  %v1448_v24 = vmax.f32 %v6772_v10, 0.0 }
 0x265   :  { %4979 = vmatprep.mubr.msk.f32.mxu1 %vm5497_vm0, %v7510_v0  ;;  %5132 = vmatprep.mubr.msk.f32.mxu0 %vm5497_vm0, %v7510_v0 }
 0x268   :  { %4980 = vmatmul.mubr.msk.f32.gmra.mxu1 %vm1470_vm3, %v1446_v17  ;;  %5133 = vmatmul.mubr.msk.f32.gmra.mxu0 %vm1470_vm3, %v6549_v45  ;;  %v1450_v45 = vmax.f32 %v6786_v18, 0.0 }
 0x269   :  { %4982 = vmatprep.mubr.msk.f32.mxu1 %vm5497_vm0, %v7510_v0  ;;  %5135 = vmatprep.mubr.msk.f32.mxu0 %vm5497_vm0, %v7510_v0 }
 0x26c   :  { %4983 = vmatmul.mubr.msk.f32.gmra.mxu1 %vm1470_vm3, %v1448_v24  ;;  %5136 = vmatmul.mubr.msk.f32.gmra.mxu0 %vm1470_vm3, %v6564_v38  ;;  %v1452_v38 = vmax.f32 %v6800_v50, 0.0 }
 0x26d   :  { %4985 = vmatprep.mubr.msk.f32.mxu1 %vm5497_vm0, %v7510_v0  ;;  %5138 = vmatprep.mubr.msk.f32.mxu0 %vm5497_vm0, %v7510_v0 }
 0x270   :  { %4986 = vmatmul.mubr.msk.f32.gmra.mxu1 %vm1470_vm3, %v1450_v45  ;;  %5139 = vmatmul.mubr.msk.f32.gmra.mxu0 %vm1470_vm3, %v6579_v22  ;;  %v1454_v22 = vmax.f32 %v6814_v55, 0.0 }
 0x271   :  { %4988 = vmatprep.mubr.msk.f32.mxu1 %vm5497_vm0, %v7510_v0  ;;  %5141 = vmatprep.mubr.msk.f32.mxu0 %vm5497_vm0, %v7510_v0 }
 0x274   :  { %4989 = vmatmul.mubr.msk.f32.gmra.mxu1 %vm1470_vm3, %v1452_v38  ;;  %5142 = vmatmul.mubr.msk.f32.gmra.mxu0 %vm1470_vm3, %v6594_v29  ;;  %v1456_v29 = vmax.f32 %v6828_v54, 0.0 }
 0x275   :  { %4991 = vmatprep.mubr.msk.f32.mxu1 %vm5497_vm0, %v7510_v0  ;;  %5144 = vmatprep.mubr.msk.f32.mxu0 %vm5497_vm0, %v7510_v0 }
 0x278   :  { %4992 = vmatmul.mubr.msk.f32.gmra.mxu1 %vm1470_vm3, %v1454_v22  ;;  %5145 = vmatmul.mubr.msk.f32.gmra.mxu0 %vm1470_vm3, %v6611_v27  ;;  %v1458_v27 = vmax.f32 %v6840_v61, 0.0 }
 0x279   :  { %4994 = vmatprep.mubr.msk.f32.mxu1 %vm5497_vm0, %v7510_v0  ;;  %5147 = vmatprep.mubr.msk.f32.mxu0 %vm5497_vm0, %v7510_v0 }
 0x27c   :  { %4995 = vmatmul.mubr.msk.f32.gmra.mxu1 %vm1470_vm3, %v1456_v29  ;;  %5148 = vmatmul.mubr.msk.f32.gmra.mxu0 %vm1470_vm3, %v6626_v12  ;;  %v1460_v12 = vmax.f32 %v1431_v51, 0.0 }
 0x27d   :  { %4997 = vmatprep.mubr.msk.f32.mxu1 %vm5497_vm0, %v7510_v0  ;;  %5150 = vmatprep.mubr.msk.f32.mxu0 %vm5497_vm0, %v7510_v0 }
 0x280   :  { %4998 = vmatmul.mubr.msk.f32.gmra.mxu1 %vm1470_vm3, %v1458_v27  ;;  %5151 = vmatmul.mubr.msk.f32.gmra.mxu0 %vm1470_vm3, %v6641_v33  ;;  %v1435_v33 = vadd.f32 %v6486_v60, %v1399_v23 }
 0x281   :  { %5000 = vmatprep.mubr.msk.f32.mxu1 %vm5497_vm0, %v7510_v0  ;;  %5153 = vmatprep.mubr.msk.f32.mxu0 %vm5497_vm0, %v7510_v0 }
 0x282   :  { %v1464_v48 = vmax.f32 %v1435_v33, 0.0 }
 0x284   :  { %5001 = vmatmul.mubr.msk.f32.gmra.mxu1 %vm1470_vm3, %v1460_v12  ;;  %5154 = vmatmul.mubr.msk.f32.gmra.mxu0 %vm1470_vm3, %v6656_v30 }
 0x285   :  { %5003 = vmatprep.mubr.msk.f32.mxu1 %vm5497_vm0, %v7510_v0  ;;  %5156 = vmatprep.mubr.msk.f32.mxu0 %vm5497_vm0, %v7510_v0 }
 0x288   :  { %5004 = vmatmul.mubr.msk.f32.gmra.mxu1 %vm1470_vm3, %v1462_v16  ;;  %5157 = vmatmul.mubr.msk.f32.gmra.mxu0 %vm1470_vm3, %v6673_v26  ;;  %v2380_v26 = vld [vmem:[#allocation7 + $0x18] sm:$0xff] }
 0x289   :  { %5006 = vmatprep.mubr.msk.f32.mxu1 %vm5497_vm0, %v7510_v0  ;;  %5159 = vmatprep.mubr.msk.f32.mxu0 %vm5497_vm0, %v7510_v0 }
 0x28a   :  { %5168 = vmatprep.subr.mxu1 %v2380_v26 }
 0x28c   :  { %5007 = vmatmul.mubr.msk.f32.gmra.mxu1 %vm1470_vm3, %v1464_v48  ;;  %5160 = vmatmul.mubr.msk.f32.gmra.mxu0 %vm1470_vm3, %v6687_v42 }
 0x28d   :  { %5070 = vmatprep.mubr.msk.f32.mxu1 %vm5497_vm0, %v7510_v0  ;;  %5162 = vmatprep.mubr.msk.f32.mxu0 %vm5497_vm0, %v7510_v0 }
 0x290   :  { %5071 = vmatmul.mubr.msk.f32.vlgmr.msra.gmra.mxu1 %vm1470_vm3, %v1438_v57  ;;  %5163 = vmatmul.mubr.msk.f32.gmra.mxu0 %vm1470_vm3, %v1465_v7 }
 0x291   :  { %5073 = vmatprep.mubr.msk.f32.mxu1 %vm5497_vm0, %v7510_v0  ;;  %5165 = vmatprep.mubr.msk.f32.mxu0 %vm5497_vm0, %v7510_v0 }
 0x292   :  { %5169 = vmatpush3.msra.mxu1 %v2380_v26 }
 0x293   :  { %5170 = vmatprep.subr.mxu1 %v2379_v3 }
 0x294   :  { %5074 = vmatmul.mubr.msk.f32.gmra.mxu1 %vm1470_vm3, %v1440_v63  ;;  %5166 = vmatmul.mubr.f32.gmra.mxu0 %v7510_v0  ;;  %v2889_v63 = vld [vmem:[#allocation7 + $0x98] sm:$0xff] }
 0x295   :  { %5076 = vmatprep.mubr.msk.f32.mxu1 %vm5497_vm0, %v7510_v0  ;;  %5171 = vmatpush3.msra.mxu1 %v2379_v3 }
 0x296   :  { %5172 = vmatprep.subr.mxu1 %v2378_v40  ;;  %5248 = vmatprep.subr.mxu0 %v2889_v63 }
 0x297   :  { %5173 = vmatpush3.msra.mxu1 %v2378_v40  ;;  %5249 = vmatpush3.msra.mxu0 %v2889_v63 }
 0x298   :  { %5077 = vmatmul.mubr.msk.f32.gmra.mxu1 %vm1470_vm3, %v1442_v37  ;;  %5174 = vmatprep.subr.mxu1 %v2377_v1  ;;  %v2888_v37 = vld [vmem:[#allocation7 + $0x90] sm:$0xff] }
 0x299   :  { %5079 = vmatprep.mubr.msk.f32.mxu1 %vm5497_vm0, %v7510_v0  ;;  %5175 = vmatpush3.msra.mxu1 %v2377_v1 }
 0x29a   :  { %5250 = vmatprep.subr.mxu0 %v2888_v37 }
 0x29b   :  { %5251 = vmatpush3.msra.mxu0 %v2888_v37 }
 0x29c   :  { %5080 = vmatmul.mubr.msk.f32.gmra.mxu1 %vm1470_vm3, %v1444_v44  ;;  %5252 = vmatprep.subr.mxu0 %v2887_v32  ;;  %v2886_v44 = vld [vmem:[#allocation7 + $0x80] sm:$0xff] }
 0x29d   :  { %5082 = vmatprep.mubr.msk.f32.mxu1 %vm5497_vm0, %v7510_v0  ;;  %5253 = vmatpush3.msra.mxu0 %v2887_v32 }
 0x29e   :  { %5254 = vmatprep.subr.mxu0 %v2886_v44 }
 0x29f   :  { %5255 = vmatpush3.msra.mxu0 %v2886_v44 }
 0x2a0   :  { %5083 = vmatmul.mubr.msk.f32.gmra.mxu1 %vm1470_vm3, %v1446_v17  ;;  %5279 = vmatprep.subr.mxu0 %v7510_v0 }
 0x2a1   :  { %5085 = vmatprep.mubr.msk.f32.mxu1 %vm5497_vm0, %v7510_v0 }
 0x2a4   :  { %5086 = vmatmul.mubr.msk.f32.gmra.mxu1 %vm1470_vm3, %v1448_v24 }
 0x2a5   :  { %5088 = vmatprep.mubr.msk.f32.mxu1 %vm5497_vm0, %v7510_v0 }
 0x2a8   :  { %v6922_v60 = vpop.f32.mrf.mxu1  ;;  %v6924_v21 = vpop.f32.mrf.mxu0  ;;  %5089 = vmatmul.mubr.msk.f32.gmra.mxu1 %vm1470_vm3, %v1450_v45 }
 0x2a9   :  { %5091 = vmatprep.mubr.msk.f32.mxu1 %vm5497_vm0, %v7510_v0 }
 0x2aa   :  { %v4916_v15 = vpop.f32.mrf.mxu1  ;;  %v5019_v34 = vpop.f32.mrf.mxu0 }
 0x2ac   :  { %5092 = vmatmul.mubr.msk.f32.gmra.mxu1 %vm1470_vm3, %v1452_v38 }
 0x2ad   :  { %5094 = vmatprep.mubr.msk.f32.mxu1 %vm5497_vm0, %v7510_v0 }
 0x2b0   :  { %v6936_v43 = vpop.f32.mrf.mxu1  ;;  %v6938_v14 = vpop.f32.mrf.mxu0  ;;  %5095 = vmatmul.mubr.msk.f32.gmra.mxu1 %vm1470_vm3, %v1454_v22 }
 0x2b1   :  { %5097 = vmatprep.mubr.msk.f32.mxu1 %vm5497_vm0, %v7510_v0 }
 0x2b2   :  { %v4919_v30 = vpop.f32.mrf.mxu1  ;;  %v5022_v53 = vpop.f32.mrf.mxu0 }
 0x2b4   :  { %5098 = vmatmul.mubr.msk.f32.gmra.mxu1 %vm1470_vm3, %v1456_v29 }
 0x2b5   :  { %5100 = vmatprep.mubr.msk.f32.mxu1 %vm5497_vm0, %v7510_v0 }
 0x2b8   :  { %v6946_v35 = vpop.f32.mrf.mxu1  ;;  %v6948_v36 = vpop.f32.mrf.mxu0  ;;  %5101 = vmatmul.mubr.msk.f32.gmra.mxu1 %vm1470_vm3, %v1458_v27 }
 0x2b9   :  { %5103 = vmatprep.mubr.msk.f32.mxu1 %vm5497_vm0, %v7510_v0 }
 0x2ba   :  { %v4922_v58 = vpop.f32.mrf.mxu1  ;;  %v5025_v59 = vpop.f32.mrf.mxu0 }
 0x2bc   :  { %5104 = vmatmul.mubr.msk.f32.gmra.mxu1 %vm1470_vm3, %v1460_v12  ;;  %v7001_v12 = vld [vmem:[#allocation7 + $0x38] sm:$0xff] }
 0x2bd   :  { %5106 = vmatprep.mubr.msk.f32.mxu1 %vm5497_vm0, %v7510_v0  ;;  %5188 = vmatprep.subr.mxu1 %v7001_v12 }
 0x2c0   :  { %v6956_v62 = vpop.f32.mrf.mxu1  ;;  %v6958_v28 = vpop.f32.mrf.mxu0  ;;  %5107 = vmatmul.mubr.msk.f32.gmra.mxu1 %vm1470_vm3, %v1462_v16 }
 0x2c1   :  { %5109 = vmatprep.mubr.msk.f32.mxu1 %vm5497_vm0, %v7510_v0 }
 0x2c2   :  { %v4925_v52 = vpop.f32.mrf.mxu1  ;;  %v5028_v31 = vpop.f32.mrf.mxu0 }
 0x2c4   :  { %5110 = vmatmul.mubr.msk.f32.gmra.mxu1 %vm1470_vm3, %v1464_v48 }
 0x2c5   :  { %5112 = vmatprep.mubr.msk.f32.mxu1 %vm5497_vm0, %v7510_v0 }
 0x2c8   :  { %v6966_v20 = vpop.f32.mrf.mxu1  ;;  %v6968_v9 = vpop.f32.mrf.mxu0  ;;  %5113 = vmatmul.mubr.f32.gmra.mxu1 %v7510_v0 }
 0x2c9   :  { %5176 = vmatprep.mubr.f32.mxu1 %v7510_v0 }
 0x2ca   :  { %v4928_v8 = vpop.f32.mrf.mxu1  ;;  %v5031_v11 = vpop.f32.mrf.mxu0 }
 0x2d0   :  { %v6972_v42 = vpop.f32.mrf.mxu1  ;;  %v6974_v39 = vpop.f32.mrf.mxu0 }
 0x2d2   :  { %v4931_v13 = vpop.f32.mrf.mxu1  ;;  %v5034_v46 = vpop.f32.mrf.mxu0 }
 0x2d8   :  { %v6976_v4 = vpop.f32.mrf.mxu1  ;;  %v6978_v5 = vpop.f32.mrf.mxu0 }
 0x2da   :  { %v4934_v57 = vpop.f32.mrf.mxu1  ;;  %v5037_v47 = vpop.f32.mrf.mxu0 }
 0x2e0   :  { %v6980_v7 = vpop.f32.mrf.mxu1  ;;  %v6982_v49 = vpop.f32.mrf.mxu0 }
 0x2e2   :  { %v4937_v6 = vpop.f32.mrf.mxu1  ;;  %v5040_v2 = vpop.f32.mrf.mxu0 }
 0x2e8   :  { %v6984_v41 = vpop.f32.mrf.mxu1  ;;  %v6986_v17 = vpop.f32.mrf.mxu0 }
 0x2ea   :  { %v4940_v10 = vpop.f32.mrf.mxu1  ;;  %v5043_v24 = vpop.f32.mrf.mxu0 }
 0x2f0   :  { %v6989_v18 = vpop.f32.mrf.mxu1  ;;  %v6991_v45 = vpop.f32.mrf.mxu0 }
 0x2f2   :  { %v4943_v50 = vpop.f32.mrf.mxu1  ;;  %v5046_v38 = vpop.f32.mrf.mxu0 }
 0x2f8   :  { %v6993_v55 = vpop.f32.mrf.mxu1  ;;  %v6995_v22 = vpop.f32.mrf.mxu0 }
 0x2f9   :  { %7512 = vst [vmem:[#allocation12_spill] sm:$0xff] %v6995_v22 }
 0x2fa   :  { %v4946_v54 = vpop.f32.mrf.mxu1  ;;  %v5049_v29 = vpop.f32.mrf.mxu0 }
 0x300   :  { %v6997_v61 = vpop.f32.mrf.mxu1  ;;  %v6999_v27 = vpop.f32.mrf.mxu0 }
 0x301   :  { %7513 = vst [vmem:[#allocation13_spill] sm:$0xff] %v6997_v61  ;;  %7514 = vst [vmem:[#allocation14_spill] sm:$0xff] %v6999_v27 }
 0x302   :  { %v4949_v51 = vpop.f32.mrf.mxu1  ;;  %v5052_v25 = vpop.f32.mrf.mxu0 }
 0x308   :  { %v1646_v19 = vpop.f32.mrf.mxu1  ;;  %v7004_v23 = vpop.f32.mrf.mxu0 }
 0x309   :  { %7515 = vst [vmem:[#allocation15_spill] sm:$0xff] %v7004_v23 }
 0x30a   :  { %v4952_v16 = vpop.f32.mrf.mxu1  ;;  %v5055_v33 = vpop.f32.mrf.mxu0 }
 0x310   :  { %v7006_v48 = vpop.f32.mrf.mxu1  ;;  %v1996_v15 = vpop.f32.mrf.mxu0 }
 0x312   :  { %v4955_v34 = vpop.f32.mrf.mxu1  ;;  %v5058_v30 = vpop.f32.mrf.mxu0 }
 0x314   :  { %v1768_v53 = vpop.f32.mrf.mxu1 }
 0x316   :  { %v4966_v58 = vpop.f32.mrf.mxu1 }
 0x318   :  { %v1773_v59 = vpop.f32.mrf.mxu1  ;;  %v2001_v26 = vpop.f32.mrf.mxu0 }
 0x31a   :  { %v4969_v52 = vpop.f32.mrf.mxu1  ;;  %v5061_v31 = vpop.f32.mrf.mxu0 }
 0x31c   :  { %v7008_v8 = vpop.f32.mrf.mxu1  ;;  %v7010_v11 = vpop.f32.mrf.mxu0 }
 0x31e   :  { %v4972_v13 = vpop.f32.mrf.mxu1  ;;  %v5125_v46 = vpop.f32.mrf.mxu0 }
 0x320   :  { %v7012_v3 = vpop.f32.mrf.mxu1  ;;  %v7014_v40 = vpop.f32.mrf.mxu0 }
 0x322   :  { %v4975_v1 = vpop.f32.mrf.mxu1  ;;  %v5128_v57 = vpop.f32.mrf.mxu0 }
 0x324   :  { %v7016_v47 = vpop.f32.mrf.mxu1  ;;  %v7018_v63 = vpop.f32.mrf.mxu0 }
 0x326   :  { %v4978_v6 = vpop.f32.mrf.mxu1  ;;  %v5131_v2 = vpop.f32.mrf.mxu0 }
 0x328   :  { %v7020_v37 = vpop.f32.mrf.mxu1  ;;  %v7022_v32 = vpop.f32.mrf.mxu0 }
 0x32a   :  { %v4981_v44 = vpop.f32.mrf.mxu1  ;;  %v5134_v10 = vpop.f32.mrf.mxu0 }
 0x32c   :  { %v7024_v24 = vpop.f32.mrf.mxu1  ;;  %v7026_v50 = vpop.f32.mrf.mxu0 }
 0x32e   :  { %v4984_v38 = vpop.f32.mrf.mxu1  ;;  %v5137_v54 = vpop.f32.mrf.mxu0 }
 0x330   :  { %v7028_v29 = vpop.f32.mrf.mxu1  ;;  %v7030_v51 = vpop.f32.mrf.mxu0 }
 0x332   :  { %v4987_v25 = vpop.f32.mrf.mxu1  ;;  %v5140_v16 = vpop.f32.mrf.mxu0 }
 0x334   :  { %v7032_v33 = vpop.f32.mrf.mxu1  ;;  %v7034_v34 = vpop.f32.mrf.mxu0 }
 0x336   :  { %v4990_v30 = vpop.f32.mrf.mxu1  ;;  %v5143_v58 = vpop.f32.mrf.mxu0 }
 0x338   :  { %v7036_v52 = vpop.f32.mrf.mxu1  ;;  %v7038_v31 = vpop.f32.mrf.mxu0 }
 0x33a   :  { %v4993_v13 = vpop.f32.mrf.mxu1  ;;  %v5146_v46 = vpop.f32.mrf.mxu0 }
 0x33c   :  { %v7040_v1 = vpop.f32.mrf.mxu1  ;;  %v7042_v57 = vpop.f32.mrf.mxu0 }
 0x33e   :  { %v4996_v6 = vpop.f32.mrf.mxu1  ;;  %v5149_v2 = vpop.f32.mrf.mxu0 }
 0x33f   :  { %v1842_v6 = vadd.f32 %v1768_v53, %v6609_v56 }
 0x340   :  { %v7044_v44 = vpop.f32.mrf.mxu1  ;;  %v7046_v10 = vpop.f32.mrf.mxu0 }
 0x342   :  { %v4999_v38 = vpop.f32.mrf.mxu1  ;;  %v5152_v54 = vpop.f32.mrf.mxu0 }
 0x344   :  { %v7048_v25 = vpop.f32.mrf.mxu1  ;;  %v7050_v16 = vpop.f32.mrf.mxu0 }
 0x345   :  { %7516 = vst [vmem:[#allocation16_spill] sm:$0xff] %v7048_v25  ;;  %7517 = vst [vmem:[#allocation17_spill] sm:$0xff] %v7050_v16 }
 0x346   :  { %v5002_v30 = vpop.f32.mrf.mxu1  ;;  %v5155_v58 = vpop.f32.mrf.mxu0 }
 0x347   :  { %v1843_v30 = vadd.f32 %v1773_v59, %v6922_v60  ;;  %v2005_v58 = vadd.f32 %v6924_v21, %v1842_v6  ;;  %v1845_v6 = vadd.f32 %v7012_v3, %v6946_v35  ;;  %v1846_v35 = vadd.f32 %v7016_v47, %v6956_v62  ;;  %v7104_v47 = vld [vmem:[#allocation7 + $0x58] sm:$0xff] }
 0x348   :  { %v1833_v13 = vpop.f32.mrf.mxu1  ;;  %v7052_v46 = vpop.f32.mrf.mxu0 }
 0x349   :  { %v1855_v0 = vadd.f32 %v1833_v13, %v1646_v19  ;;  %v2006_v21 = vadd.f32 %v6938_v14, %v1843_v30 }
 0x34a   :  { %v5005_v23 = vpop.f32.mrf.mxu1  ;;  %v5158_v27 = vpop.f32.mrf.mxu0 }
 0x34b   :  { %v7055_v2 = vadd.f32 %v1996_v15, %v1855_v0  ;;  %v7069_v0 = vld [vmem:[%s7502_s4] ss:$0 sm:$0xff] }
 0x34c   :  { %v1838_v61 = vpop.f32.mrf.mxu1  ;;  %v7057_v22 = vpop.f32.mrf.mxu0 }
 0x34d   :  { %v1856_v38 = vadd.f32 %v1838_v61, %v7006_v48  ;;  %v1844_v61 = vadd.f32 %v7008_v8, %v6936_v43 }
 0x34e   :  { %v5008_v54 = vpop.f32.mrf.mxu1  ;;  %v5161_v25 = vpop.f32.mrf.mxu0 }
 0x34f   :  { %v7062_v16 = vadd.f32 %v2001_v26, %v1856_v38  ;;  %v2007_v8 = vadd.f32 %v6948_v36, %v1844_v61 }
 0x350   :  { %v2091_v19 = vpop.f32.mrf.mxu1  ;;  %v7064_v23 = vpop.f32.mrf.mxu0 }
 0x351   :  { %v2165_v27 = vadd.f32 %v2091_v19, %v2005_v58  ;;  %v2509_v58 = vld [vmem:[#allocation7 + $0x28] sm:$0xff]  ;;  %v2508_v19 = vld [vmem:[#allocation7 + $0x20] sm:$0xff] }
 0x352   :  { %v5072_v56 = vpop.f32.mrf.mxu1  ;;  %v5164_v15 = vpop.f32.mrf.mxu0 }
 0x353   :  { %v2325_v60 = vadd.f32 %v7010_v11, %v2165_v27  ;;  %v2510_v11 = vld [vmem:[#allocation7 + $0x30] sm:$0xff] }
 0x354   :  { %v2096_v48 = vpop.f32.mrf.mxu1  ;;  %v7075_v53 = vpop.f32.mrf.mxu0 }
 0x355   :  { %v7078_v59 = vadd.f32 %v7069_v0, %v2325_v60  ;;  %v2166_v26 = vadd.f32 %v2096_v48, %v2006_v21 }
 0x356   :  { %v5075_v25 = vpop.f32.mrf.mxu1  ;;  %v5167_v13 = vpop.f32.mrf.mxu0 }
 0x357   :  { %v2362_v38 = vmax.f32 %v7078_v59, 0.0  ;;  %v7084_v43 = vadd.f32 %v7014_v40, %v2166_v26  ;;  %v2008_v40 = vadd.f32 %v6958_v28, %v1845_v6  ;;  %v2009_v28 = vadd.f32 %v6968_v9, %v1846_v35  ;;  %v4031_v59 = vld [vmem:[%s7505_s7 + $0x38] sm:$0xff] }
 0x358   :  { %v2101_v14 = vpop.f32.mrf.mxu1  ;;  %v1849_v13 = vadd.f32 %v7028_v29, %v6976_v4 }
 0x359   :  { %v2167_v54 = vadd.f32 %v2101_v14, %v2007_v8  ;;  %5177 = vmatmul.mubr.msk.f32.vlgmr.msra.gmra.mxu1 %vm1470_vm3, %v2362_v38 }
 0x35a   :  { %v5078_v30 = vpop.f32.mrf.mxu1  ;;  %5189 = vmatpush3.msra.mxu1 %v7001_v12  ;;  %v1847_v12 = vadd.f32 %v7020_v37, %v6966_v20  ;;  %v1848_v37 = vadd.f32 %v7024_v24, %v6972_v42  ;;  %v2012_v29 = vadd.f32 %v6982_v49, %v1849_v13 }
 0x35b   :  { %v2327_v3 = vadd.f32 %v7018_v63, %v2167_v54  ;;  %5190 = vmatprep.subr.mxu1 %v2510_v11  ;;  %v1851_v30 = vadd.f32 %v7036_v52, %v6984_v41 }
 0x35c   :  { %v2106_v36 = vpop.f32.mrf.mxu1  ;;  %5191 = vmatpush3.msra.mxu1 %v2510_v11  ;;  %v2011_v14 = vadd.f32 %v6978_v5, %v1848_v37 }
 0x35d   :  { %v2349_v27 = vadd.f32 %v7069_v0, %v2327_v3  ;;  %v2168_v56 = vadd.f32 %v2106_v36, %v2008_v40  ;;  %5192 = vmatprep.subr.mxu1 %v2509_v58 }
 0x35e   :  { %v5081_v15 = vpop.f32.mrf.mxu1  ;;  %5193 = vmatpush3.msra.mxu1 %v2509_v58 }
 0x35f   :  { %v7098_v61 = vmax.f32 %v2349_v27, 0.0  ;;  %v7101_v62 = vadd.f32 %v7022_v32, %v2168_v56  ;;  %5194 = vmatprep.subr.mxu1 %v2508_v19  ;;  %v2010_v32 = vadd.f32 %v6974_v39, %v1847_v12  ;;  %v7518_v15 = vld [vmem:[#allocation12_spill] sm:$0xff] }
 0x360   :  { %v2111_v63 = vpop.f32.mrf.mxu1  ;;  %5195 = vmatpush3.msra.mxu1 %v2508_v19  ;;  %v1853_v19 = vadd.f32 %v7044_v44, %v6993_v55  ;;  %v7522_v44 = vld [vmem:[#allocation14_spill] sm:$0xff] }
 0x361   :  { %v2169_v60 = vadd.f32 %v2111_v63, %v2009_v28  ;;  %5179 = vmatprep.mubr.msk.f32.mxu1 %vm1470_vm3, %v7098_v61  ;;  %5256 = vmatprep.mubr.msk.f32.mxu0 %vm1470_vm3, %v7098_v61 }
 0x362   :  { %v5084_v20 = vpop.f32.mrf.mxu1  ;;  %5208 = vmatprep.subr.mxu1 %v7104_v47 }
 0x363   :  { %v2329_v9 = vadd.f32 %v7026_v50, %v2169_v60  ;;  %v1850_v50 = vadd.f32 %v7032_v33, %v6980_v7  ;;  %v1852_v33 = vadd.f32 %v7040_v1, %v6989_v18  ;;  %v7519_v1 = vld [vmem:[#allocation13_spill] sm:$0xff]  ;;  %v2016_v20 = vadd.f32 %v7522_v44, %v1853_v19  ;;  %v2769_v19 = vld [vmem:[#allocation7 + $0x68] sm:$0xff] }
 0x364   :  { %v2116_v21 = vpop.f32.mrf.mxu1  ;;  %v7521_v60 = vld [vmem:[#allocation17_spill] sm:$0xff] }
 0x365   :  { %v2351_v48 = vadd.f32 %v7069_v0, %v2329_v9  ;;  %v2170_v26 = vadd.f32 %v2116_v21, %v2010_v32  ;;  %v2013_v3 = vadd.f32 %v6986_v17, %v1850_v50  ;;  %v2015_v12 = vadd.f32 %v7518_v15, %v1852_v33  ;;  %v4028_v15 = vld [vmem:[%s7505_s7 + $0x20] sm:$0xff] }
 0x366   :  { %v5087_v25 = vpop.f32.mrf.mxu1 }
 0x367   :  { %v7118_v6 = vmax.f32 %v2351_v48, 0.0  ;;  %v7121_v8 = vadd.f32 %v7030_v51, %v2170_v26  ;;  %v7523_v26 = vld [vmem:[#allocation15_spill] sm:$0xff] }
 0x368   :  { %v2121_v42 = vpop.f32.mrf.mxu1 }
 0x369   :  { %v2171_v24 = vadd.f32 %v2121_v42, %v2011_v14  ;;  %5180 = vmatmul.mubr.msk.f32.gmra.mxu1 %vm1470_vm3, %v7118_v6  ;;  %5257 = vmatmul.mubr.msk.f32.vlgmr.msra.gmra.mxu0 %vm1470_vm3, %v7118_v6 }
 0x36a   :  { %v5090_v39 = vpop.f32.mrf.mxu1 }
 0x36b   :  { %v2331_v4 = vadd.f32 %v7034_v34, %v2171_v24  ;;  %v2014_v34 = vadd.f32 %v6991_v45, %v1851_v30 }
 0x36c   :  { %v2126_v51 = vpop.f32.mrf.mxu1 }
 0x36d   :  { %v2353_v11 = vadd.f32 %v7069_v0, %v2331_v4  ;;  %v2172_v5 = vadd.f32 %v2126_v51, %v2012_v29 }
 0x36e   :  { %v5093_v54 = vpop.f32.mrf.mxu1 }
 0x36f   :  { %v7135_v58 = vmax.f32 %v2353_v11, 0.0  ;;  %v2332_v35 = vadd.f32 %v7038_v31, %v2172_v5  ;;  %v7183_v5 = vadd.f32 %v7069_v0, %v7101_v62  ;;  %v2352_v62 = vadd.f32 %v7069_v0, %v7121_v8  ;;  %v2648_v8 = vld [vmem:[#allocation7 + $0x48] sm:$0xff] }
 0x370   :  { %v2131_v40 = vpop.f32.mrf.mxu1 }
 0x371   :  { %v2173_v7 = vadd.f32 %v2131_v40, %v2013_v3  ;;  %5182 = vmatprep.mubr.msk.f32.mxu1 %vm1470_vm3, %v7135_v58  ;;  %5259 = vmatprep.mubr.msk.f32.mxu0 %vm1470_vm3, %v7135_v58  ;;  %v2365_v40 = vmax.f32 %v7183_v5, 0.0  ;;  %v2367_v33 = vmax.f32 %v2352_v62, 0.0 }
 0x372   :  { %v5096_v49 = vpop.f32.mrf.mxu1 }
 0x373   :  { %v2333_v41 = vadd.f32 %v7042_v57, %v2173_v7  ;;  %v7520_v57 = vld [vmem:[#allocation16_spill] sm:$0xff]  ;;  %v2649_v7 = vld [vmem:[#allocation7 + $0x50] sm:$0xff] }
 0x374   :  { %v2136_v52 = vpop.f32.mrf.mxu1  ;;  %v1854_v63 = vadd.f32 %v7520_v57, %v7519_v1 }
 0x375   :  { %v2355_v31 = vadd.f32 %v7069_v0, %v2333_v41  ;;  %v2174_v17 = vadd.f32 %v2136_v52, %v2014_v34 }
 0x376   :  { %v5099_v36 = vpop.f32.mrf.mxu1  ;;  %v2017_v25 = vadd.f32 %v7523_v26, %v1854_v63 }
 0x377   :  { %v7150_v27 = vmax.f32 %v2355_v31, 0.0  ;;  %v2334_v56 = vadd.f32 %v7046_v10, %v2174_v17  ;;  %v2771_v17 = vld [vmem:[#allocation7 + $0x78] sm:$0xff]  ;;  %v2770_v36 = vld [vmem:[#allocation7 + $0x70] sm:$0xff] }
 0x378   :  { %v2141_v28 = vpop.f32.mrf.mxu1 }
 0x379   :  { %v2175_v18 = vadd.f32 %v2141_v28, %v2015_v12  ;;  %5183 = vmatmul.mubr.msk.f32.gmra.mxu1 %vm1470_vm3, %v7150_v27  ;;  %5260 = vmatmul.mubr.msk.f32.gmra.mxu0 %vm1470_vm3, %v7150_v27  ;;  %v2356_v41 = vadd.f32 %v7069_v0, %v2334_v56  ;;  %v2768_v56 = vld [vmem:[#allocation7 + $0x60] sm:$0xff]  ;;  %v3026_v12 = vld [vmem:[%s7505_s7] sm:$0xff] }
 0x37a   :  { %v5102_v45 = vpop.f32.mrf.mxu1 }
 0x37b   :  { %v2335_v55 = vadd.f32 %v7521_v60, %v2175_v18  ;;  %v2371_v31 = vmax.f32 %v2356_v41, 0.0 }
 0x37c   :  { %v2146_v37 = vpop.f32.mrf.mxu1 }
 0x37d   :  { %v2357_v10 = vadd.f32 %v7069_v0, %v2335_v55  ;;  %v2176_v9 = vadd.f32 %v2146_v37, %v2016_v20 }
 0x37e   :  { %v5105_v32 = vpop.f32.mrf.mxu1 }
 0x37f   :  { %v7163_v21 = vmax.f32 %v2357_v10, 0.0  ;;  %v2336_v48 = vadd.f32 %v7052_v46, %v2176_v9  ;;  %v7176_v46 = vadd.f32 %v7069_v0, %v7084_v43 }
 0x380   :  { %v2151_v13 = vpop.f32.mrf.mxu1 }
 0x381   :  { %v2177_v14 = vadd.f32 %v2151_v13, %v2017_v25  ;;  %5185 = vmatprep.mubr.msk.f32.mxu1 %vm1470_vm3, %v7163_v21  ;;  %5262 = vmatprep.mubr.msk.f32.mxu0 %vm1470_vm3, %v7163_v21  ;;  %v2358_v52 = vadd.f32 %v7069_v0, %v2336_v48 }
 0x382   :  { %v5108_v42 = vpop.f32.mrf.mxu1 }
 0x383   :  { %v2337_v24 = vadd.f32 %v7057_v22, %v2177_v14 }
 0x384   :  { %v2156_v39 = vpop.f32.mrf.mxu1 }
 0x385   :  { %v2359_v50 = vadd.f32 %v7069_v0, %v2337_v24  ;;  %v2178_v4 = vadd.f32 %v2156_v39, %v7055_v2  ;;  %v7524_v2 = vmov 0.0  }
 0x386   :  { %v5111_v29 = vpop.f32.mrf.mxu1 }
 0x387   :  { %v7178_v51 = vmax.f32 %v2359_v50, 0.0  ;;  %v2338_v11 = vadd.f32 %v7064_v23, %v2178_v4  ;;  %v2363_v23 = vmax.f32 %v7176_v46, 0.0 }
 0x388   :  { %v2161_v54 = vpop.f32.mrf.mxu1 }
 0x389   :  { %v7186_v22 = vadd.f32 %v7069_v0, %v2338_v11  ;;  %v2179_v30 = vadd.f32 %v2161_v54, %v7062_v16  ;;  %5186 = vmatmul.mubr.msk.f32.gmra.mxu1 %vm1470_vm3, %v7178_v51  ;;  %5263 = vmatmul.mubr.msk.f32.gmra.mxu0 %vm1470_vm3, %v7178_v51  ;;  %v2354_v16 = vadd.f32 %v7069_v0, %v2332_v35  ;;  %v2647_v35 = vld [vmem:[#allocation7 + $0x40] sm:$0xff] }
 0x38a   :  { %5196 = vmatprep.mubr.f32.mxu1 %v7524_v2  ;;  %v5114_v43 = vpop.f32.mrf.mxu1 }
 0x38b   :  { %v2339_v3 = vadd.f32 %v7075_v53, %v2179_v30  ;;  %v2369_v53 = vmax.f32 %v2354_v16, 0.0  ;;  %v7292_v43 = vld [vmem:[%s7504_s6] ss:$0 sm:$0xff] }
 0x38d   :  { %v2361_v49 = vadd.f32 %v7069_v0, %v2339_v3  ;;  %5197 = vmatmul.mubr.msk.f32.vlgmr.msra.gmra.mxu1 %vm1470_vm3, %v2363_v23  ;;  %v2375_v0 = vmax.f32 %v7186_v22, 0.0 }
 0x38e   :  { %5199 = vmatprep.mubr.msk.f32.mxu1 %vm1470_vm3, %v2365_v40  ;;  %5209 = vmatpush3.msra.mxu1 %v7104_v47  ;;  %v2373_v47 = vmax.f32 %v2358_v52, 0.0 }
 0x38f   :  { %v2376_v34 = vmax.f32 %v2361_v49, 0.0  ;;  %5210 = vmatprep.subr.mxu1 %v2649_v7 }
 0x390   :  { %5211 = vmatpush3.msra.mxu1 %v2649_v7 }
 0x391   :  { %5200 = vmatmul.mubr.msk.f32.gmra.mxu1 %vm1470_vm3, %v2367_v33  ;;  %5265 = vmatprep.mubr.msk.f32.mxu0 %vm1470_vm3, %v2376_v34 }
 0x392   :  { %5202 = vmatprep.mubr.msk.f32.mxu1 %vm1470_vm3, %v2369_v53  ;;  %5212 = vmatprep.subr.mxu1 %v2648_v8 }
 0x393   :  { %5213 = vmatpush3.msra.mxu1 %v2648_v8  ;;  %5266 = vmatmul.mubr.f32.gmra.mxu0 %v7524_v2 }
 0x394   :  { %5214 = vmatprep.subr.mxu1 %v2647_v35  ;;  %5287 = vmatprep.mubr.msk.f32.mxu0 %vm5497_vm0, %v7524_v2 }
 0x395   :  { %5203 = vmatmul.mubr.msk.f32.gmra.mxu1 %vm1470_vm3, %v2371_v31 }
 0x396   :  { %5205 = vmatprep.mubr.msk.f32.mxu1 %vm1470_vm3, %v2373_v47  ;;  %5215 = vmatpush3.msra.mxu1 %v2647_v35 }
 0x397   :  { %5228 = vmatprep.subr.mxu1 %v2771_v17 }
 0x399   :  { %5206 = vmatmul.mubr.msk.f32.gmra.mxu1 %vm1470_vm3, %v2375_v0 }
 0x39a   :  { %5216 = vmatprep.mubr.msk.f32.mxu1 %vm1470_vm3, %v2362_v38  ;;  %v3029_v38 = vld [vmem:[%s7505_s7 + $0x18] sm:$0xff] }
 0x39b   :  { %5280 = vmatpush3.msra.mxu0 %v3029_v38  ;;  %v4042_v38 = vld [vmem:[%s7505_s7 + $0x78] sm:$0xff] }
 0x39c   :  { %5281 = vmatprep.subr.mxu0 %v7524_v2 }
 0x39d   :  { %5217 = vmatmul.mubr.msk.f32.vlgmr.msra.gmra.mxu1 %vm1470_vm3, %v7098_v61  ;;  %v4030_v61 = vld [vmem:[%s7505_s7 + $0x30] sm:$0xff] }
 0x39e   :  { %5219 = vmatprep.mubr.msk.f32.mxu1 %vm1470_vm3, %v7118_v6  ;;  %5229 = vmatpush3.msra.mxu1 %v2771_v17  ;;  %v3028_v6 = vld [vmem:[%s7505_s7 + $0x10] sm:$0xff] }
 0x39f   :  { %5230 = vmatprep.subr.mxu1 %v2770_v36  ;;  %5282 = vmatpush3.msra.mxu0 %v3028_v6 }
 0x3a0   :  { %5231 = vmatpush3.msra.mxu1 %v2770_v36  ;;  %5283 = vmatprep.subr.mxu0 %v7524_v2 }
 0x3a1   :  { %5220 = vmatmul.mubr.msk.f32.gmra.mxu1 %vm1470_vm3, %v7135_v58  ;;  %5232 = vmatprep.subr.mxu1 %v2769_v19  ;;  %v4029_v58 = vld [vmem:[%s7505_s7 + $0x28] sm:$0xff] }
 0x3a2   :  { %5222 = vmatprep.mubr.msk.f32.mxu1 %vm1470_vm3, %v7150_v27  ;;  %5233 = vmatpush3.msra.mxu1 %v2769_v19  ;;  %v3027_v27 = vld [vmem:[%s7505_s7 + $0x8] sm:$0xff] }
 0x3a3   :  { %5234 = vmatprep.subr.mxu1 %v2768_v56  ;;  %5284 = vmatpush3.msra.mxu0 %v3027_v27 }
 0x3a4   :  { %5235 = vmatpush3.msra.mxu1 %v2768_v56  ;;  %5285 = vmatprep.subr.mxu0 %v7524_v2 }
 0x3a5   :  { %5223 = vmatmul.mubr.msk.f32.gmra.mxu1 %vm1470_vm3, %v7163_v21  ;;  %5268 = vmatprep.subr.mxu1 %v7524_v2 }
 0x3a6   :  { %5225 = vmatprep.mubr.msk.f32.mxu1 %vm1470_vm3, %v7178_v51  ;;  %5286 = vmatpush3.msra.mxu0 %v3026_v12  ;;  %v4041_v12 = vld [vmem:[%s7505_s7 + $0x70] sm:$0xff] }
 0x3a7   :  { %5301 = vmatprep.subr.mxu0 %v7524_v2 }
 0x3a9   :  { %5226 = vmatmul.mubr.msk.f32.gmra.mxu1 %vm1470_vm3, %v2376_v34 }
 0x3aa   :  { %5236 = vmatprep.mubr.msk.f32.mxu1 %vm1470_vm3, %v2363_v23 }
 0x3ad   :  { %5237 = vmatmul.mubr.msk.f32.vlgmr.msra.gmra.mxu1 %vm1470_vm3, %v2365_v40 }
 0x3ae   :  { %5239 = vmatprep.mubr.msk.f32.mxu1 %vm1470_vm3, %v2367_v33  ;;  %5269 = vmatpush3.msra.mxu1 %v4031_v59  ;;  %v4036_v59 = vld [vmem:[%s7505_s7 + $0x50] sm:$0xff] }
 0x3af   :  { %5270 = vmatprep.subr.mxu1 %v7524_v2 }
 0x3b0   :  { %5271 = vmatpush3.msra.mxu1 %v4030_v61 }
 0x3b1   :  { %5240 = vmatmul.mubr.msk.f32.gmra.mxu1 %vm1470_vm3, %v2369_v53  ;;  %5272 = vmatprep.subr.mxu1 %v7524_v2 }
 0x3b2   :  { %5242 = vmatprep.mubr.msk.f32.mxu1 %vm1470_vm3, %v2371_v31  ;;  %5273 = vmatpush3.msra.mxu1 %v4029_v58 }
 0x3b3   :  { %5274 = vmatprep.subr.mxu1 %v7524_v2 }
 0x3b4   :  { %5275 = vmatpush3.msra.mxu1 %v4028_v15  ;;  %v4035_v15 = vld [vmem:[%s7505_s7 + $0x48] sm:$0xff] }
 0x3b5   :  { %5243 = vmatmul.mubr.msk.f32.gmra.mxu1 %vm1470_vm3, %v2373_v47  ;;  %5290 = vmatprep.subr.mxu1 %v7524_v2  ;;  %v4037_v47 = vld [vmem:[%s7505_s7 + $0x58] sm:$0xff] }
 0x3b6   :  { %5245 = vmatprep.mubr.msk.f32.mxu1 %vm1470_vm3, %v2375_v0 }
 0x3b9   :  { %5246 = vmatmul.mubr.f32.gmra.mxu1 %v7524_v2 }
 0x3ba   :  { %5276 = vmatprep.mubr.msk.f32.mxu1 %vm5497_vm0, %v7524_v2 }
 0x419   :  { %v5178_v28 = vpop.f32.mrf.mxu1 }
 0x41b   :  { %v2468_v18 = vpop.f32.mrf.mxu1 }
 0x429   :  { %v5181_v45 = vpop.f32.mrf.mxu1  ;;  %v5258_v4 = vpop.f32.mrf.mxu0 }
 0x42b   :  { %v2478_v1 = vpop.f32.mrf.mxu1  ;;  %v2956_v22 = vpop.f32.mrf.mxu0 }
 0x439   :  { %v7275_v57 = vpop.f32.mrf.mxu1  ;;  %v5261_v16 = vpop.f32.mrf.mxu0 }
 0x43b   :  { %v2488_v63 = vpop.f32.mrf.mxu1  ;;  %v2966_v17 = vpop.f32.mrf.mxu0 }
 0x449   :  { %v7277_v60 = vpop.f32.mrf.mxu1 }
 0x44b   :  { %v7279_v55 = vpop.f32.mrf.mxu1 }
 0x44d   :  { %v5198_v44 = vpop.f32.mrf.mxu1 }
 0x44e   :  { %v2639_v50 = vadd.f32 %v5198_v44, %v5178_v28  ;;  %v5264_v28 = vpop.f32.mrf.mxu0  ;;  %v4040_v44 = vld [vmem:[%s7505_s7 + $0x68] sm:$0xff] }
 0x44f   :  { %v2599_v20 = vpop.f32.mrf.mxu1 }
 0x450   :  { %v2638_v46 = vadd.f32 %v2599_v20, %v2468_v18 }
 0x451   :  { %v5201_v37 = vpop.f32.mrf.mxu1 }
 0x452   :  { %v2641_v30 = vadd.f32 %v5201_v37, %v5181_v45 }
 0x453   :  { %v2609_v10 = vpop.f32.mrf.mxu1 }
 0x454   :  { %v2640_v62 = vadd.f32 %v2609_v10, %v2478_v1  ;;  %v2976_v10 = vpop.f32.mrf.mxu0 }
 0x455   :  { %v5204_v9 = vpop.f32.mrf.mxu1 }
 0x456   :  { %v2643_v18 = vadd.f32 %v5204_v9, %v7275_v57  ;;  %v4039_v57 = vld [vmem:[%s7505_s7 + $0x60] sm:$0xff] }
 0x457   :  { %v2619_v32 = vpop.f32.mrf.mxu1 }
 0x458   :  { %v2642_v36 = vadd.f32 %v2619_v32, %v2488_v63  ;;  %v4034_v63 = vld [vmem:[%s7505_s7 + $0x40] sm:$0xff] }
 0x459   :  { %v7281_v21 = vpop.f32.mrf.mxu1 }
 0x45b   :  { %v7283_v48 = vpop.f32.mrf.mxu1 }
 0x45d   :  { %v5218_v26 = vpop.f32.mrf.mxu1 }
 0x45e   :  { %v2760_v51 = vadd.f32 %v5218_v26, %v2639_v50  ;;  %v4047_v26 = vld [vmem:[%s7505_s7 + $0x98] sm:$0xff] }
 0x45f   :  { %v2720_v25 = vpop.f32.mrf.mxu1 }
 0x460   :  { %v2759_v5 = vadd.f32 %v2720_v25, %v2638_v46  ;;  %v5267_v46 = vpop.f32.mrf.mxu0 }
 0x461   :  { %v5221_v13 = vpop.f32.mrf.mxu1 }
 0x462   :  { %v2762_v7 = vadd.f32 %v5221_v13, %v2641_v30  ;;  %v2986_v30 = vpop.f32.mrf.mxu0 }
 0x463   :  { %v2730_v14 = vpop.f32.mrf.mxu1 }
 0x464   :  { %v2761_v33 = vadd.f32 %v2730_v14, %v2640_v62  ;;  %v4046_v14 = vld [vmem:[%s7505_s7 + $0x90] sm:$0xff] }
 0x465   :  { %v5224_v42 = vpop.f32.mrf.mxu1 }
 0x466   :  { %v2764_v20 = vadd.f32 %v5224_v42, %v2643_v18  ;;  %v2644_v42 = vadd.f32 %v7283_v48, %v7279_v55  ;;  %v2645_v55 = vadd.f32 %v7281_v21, %v7277_v60  ;;  %v3665_v18 = vld [vmem:[%s7507_s9 + $0x8] sm:$0xff] }
 0x467   :  { %v2740_v24 = vpop.f32.mrf.mxu1 }
 0x468   :  { %v2763_v58 = vadd.f32 %v2740_v24, %v2642_v36  ;;  %v4052_v24 = vld [vmem:[%s7505_s7 + $0xb8] sm:$0xff]  ;;  %v3677_v36 = vld [vmem:[%s7507_s9 + $0x68] sm:$0xff] }
 0x469   :  { %v7285_v39 = vpop.f32.mrf.mxu1 }
 0x46a   :  { %v2766_v60 = vadd.f32 %v7285_v39, %v2645_v55  ;;  %v4049_v39 = vld [vmem:[%s7505_s7 + $0xa0] sm:$0xff] }
 0x46b   :  { %v7287_v29 = vpop.f32.mrf.mxu1 }
 0x46c   :  { %v2765_v48 = vadd.f32 %v7287_v29, %v2644_v42  ;;  %v4050_v29 = vld [vmem:[%s7505_s7 + $0xa8] sm:$0xff] }
 0x46d   :  { %v5238_v11 = vpop.f32.mrf.mxu1 }
 0x46e   :  { %v2878_v54 = vadd.f32 %v5238_v11, %v2760_v51  ;;  %v4045_v51 = vld [vmem:[%s7505_s7 + $0x88] sm:$0xff] }
 0x46f   :  { %v2838_v23 = vpop.f32.mrf.mxu1 }
 0x470   :  { %v2996_v3 = vadd.f32 %v5258_v4, %v2878_v54  ;;  %v2877_v40 = vadd.f32 %v2838_v23, %v2759_v5  ;;  %v4051_v5 = vld [vmem:[%s7505_s7 + $0xb0] sm:$0xff]  ;;  %v4044_v54 = vld [vmem:[%s7505_s7 + $0x80] sm:$0xff] }
 0x471   :  { %v5241_v49 = vpop.f32.mrf.mxu1 }
 0x472   :  { %v3011_v41 = vadd.f32 %v7292_v43, %v2996_v3  ;;  %v2995_v34 = vadd.f32 %v2956_v22, %v2877_v40  ;;  %v2880_v8 = vadd.f32 %v5241_v49, %v2762_v7  ;;  %v4057_v3 = vld [vmem:[%s7505_s7 + $0xd8] sm:$0xff]  ;;  %v4056_v7 = vld [vmem:[%s7505_s7 + $0xd0] sm:$0xff] }
 0x473   :  { %v2848_v53 = vpop.f32.mrf.mxu1 }
 0x474   :  { %v3019_v52 = vmax.f32 %v3011_v41, 0.0  ;;  %v3010_v35 = vadd.f32 %v7292_v43, %v2995_v34  ;;  %v2879_v31 = vadd.f32 %v2848_v53, %v2761_v33  ;;  %v2998_v61 = vadd.f32 %v5261_v16, %v2880_v8  ;;  %v4062_v33 = vld [vmem:[%s7505_s7 + $0xf8] sm:$0xff]  ;;  %v4055_v41 = vld [vmem:[%s7505_s7 + $0xc8] sm:$0xff]  ;;  %v4061_v8 = vld [vmem:[%s7505_s7 + $0xf0] sm:$0xff] }
 0x475   :  { %v5244_v0 = vpop.f32.mrf.mxu1  ;;  %v4054_v53 = vld [vmem:[%s7505_s7 + $0xc0] sm:$0xff] }
 0x476   :  { %v3018_v19 = vmax.f32 %v3010_v35, 0.0  ;;  %v2997_v56 = vadd.f32 %v2966_v17, %v2879_v31  ;;  %5277 = vmatmul.mubr.msk.f32.vlgmr.msra.gmra.mxu1 %vm1470_vm3, %v3019_v52  ;;  %v3013_v37 = vadd.f32 %v7292_v43, %v2998_v61  ;;  %v2882_v9 = vadd.f32 %v5244_v0, %v2764_v20  ;;  %v4060_v35 = vld [vmem:[%s7505_s7 + $0xe8] sm:$0xff]  ;;  %v3679_v17 = vld [vmem:[%s7507_s9 + $0x78] sm:$0xff]  ;;  %v3678_v0 = vld [vmem:[%s7507_s9 + $0x70] sm:$0xff] }
 0x477   :  { %5291 = vmatpush3.msra.mxu1 %v4037_v47  ;;  %v2858_v6 = vpop.f32.mrf.mxu1  ;;  %5298 = vmatprep.mubr.msk.f32.mxu1 %vm5497_vm0, %v7524_v2  ;;  %v4059_v47 = vld [vmem:[%s7505_s7 + $0xe0] sm:$0xff] }
 0x478   :  { %v3012_v27 = vadd.f32 %v7292_v43, %v2997_v56  ;;  %5292 = vmatprep.subr.mxu1 %v7524_v2  ;;  %5288 = vmatmul.mubr.msk.f32.vlgmr.msra.gmra.mxu0 %vm1470_vm3, %v3018_v19  ;;  %v2881_v1 = vadd.f32 %v2858_v6, %v2763_v58  ;;  %v3021_v13 = vmax.f32 %v3013_v37, 0.0  ;;  %v3000_v50 = vadd.f32 %v5264_v28, %v2882_v9  ;;  %v3676_v19 = vld [vmem:[%s7507_s9 + $0x60] sm:$0xff]  ;;  %v3675_v56 = vld [vmem:[%s7507_s9 + $0x58] sm:$0xff]  ;;  %v3670_v58 = vld [vmem:[%s7507_s9 + $0x30] sm:$0xff] }
 0x479   :  { %5293 = vmatpush3.msra.mxu1 %v4036_v59  ;;  %5302 = vmatpush3.msra.mxu0 %v4042_v38  ;;  %v5247_v32 = vpop.f32.mrf.mxu1  ;;  %v3674_v59 = vld [vmem:[%s7507_s9 + $0x50] sm:$0xff]  ;;  %v3673_v38 = vld [vmem:[%s7507_s9 + $0x48] sm:$0xff]  ;;  %v3672_v61 = vld [vmem:[%s7507_s9 + $0x40] sm:$0xff] }
 0x47a   :  { %v3020_v45 = vmax.f32 %v3012_v27, 0.0  ;;  %5294 = vmatprep.subr.mxu1 %v7524_v2  ;;  %5303 = vmatprep.subr.mxu0 %v7524_v2  ;;  %v2999_v25 = vadd.f32 %v2976_v10, %v2881_v1  ;;  %v3015_v22 = vadd.f32 %v7292_v43, %v3000_v50  ;;  %v2884_v62 = vadd.f32 %v5247_v32, %v2766_v60  ;;  %v3671_v6 = vld [vmem:[%s7507_s9 + $0x38] sm:$0xff]  ;;  %v3669_v27 = vld [vmem:[%s7507_s9 + $0x28] sm:$0xff]  ;;  %v3666_v28 = vld [vmem:[%s7507_s9 + $0x10] sm:$0xff] }
 0x47b   :  { %5295 = vmatpush3.msra.mxu1 %v4035_v15  ;;  %5304 = vmatpush3.msra.mxu0 %v4041_v12  ;;  %v2868_v4 = vpop.f32.mrf.mxu1  ;;  %v3668_v15 = vld [vmem:[%s7507_s9 + $0x20] sm:$0xff]  ;;  %v3667_v12 = vld [vmem:[%s7507_s9 + $0x18] sm:$0xff] }
 0x47c   :  { %5296 = vmatprep.subr.mxu1 %v7524_v2  ;;  %5305 = vmatprep.subr.mxu0 %v7524_v2  ;;  %v3014_v11 = vadd.f32 %v7292_v43, %v2999_v25  ;;  %v2883_v21 = vadd.f32 %v2868_v4, %v2765_v48  ;;  %v3023_v16 = vmax.f32 %v3015_v22, 0.0  ;;  %v3002_v49 = vadd.f32 %v5267_v46, %v2884_v62  ;;  %v4064_v48 = vld [vmem:[%s7506_s8] ss:$0 sm:$0xff] }
 0x47d   :  { %5297 = vmatpush3.msra.mxu1 %v4034_v63  ;;  %5306 = vmatpush3.msra.mxu0 %v4040_v44 }
 0x47e   :  { %5299 = vmatmul.mubr.msk.f32.vlgmr.msra.gmra.mxu1 %vm1470_vm3, %v3020_v45  ;;  %5307 = vmatprep.subr.mxu0 %v7524_v2  ;;  %v3022_v23 = vmax.f32 %v3014_v11, 0.0  ;;  %v3001_v40 = vadd.f32 %v2986_v30, %v2883_v21  ;;  %v3017_v52 = vadd.f32 %v7292_v43, %v3002_v49  ;;  %v3664_v45 = vld [vmem:[%s7507_s9] sm:$0xff] }
 0x47f   :  { %5312 = vmatprep.subr.mxu1 %v7524_v2  ;;  %5308 = vmatpush3.msra.mxu0 %v4039_v57  ;;  %v4065_v21 = vld [vmem:[%s7508_s10] ss:$0 sm:$0xff] }
 0x480   :  { %5309 = vmatprep.mubr.msk.f32.mxu0 %vm5497_vm0, %v7524_v2  ;;  %5313 = vmatpush3.msra.mxu1 %v4047_v26  ;;  %v3016_v34 = vadd.f32 %v7292_v43, %v3001_v40  ;;  %v3025_v43 = vmax.f32 %v3017_v52, 0.0 }
 0x481   :  { %5310 = vmatmul.mubr.msk.f32.vlgmr.msra.gmra.mxu0 %vm1470_vm3, %v3021_v13  ;;  %5314 = vmatprep.subr.mxu1 %v7524_v2 }
 0x482   :  { %5323 = vmatprep.subr.mxu0 %v7524_v2  ;;  %5315 = vmatpush3.msra.mxu1 %v4046_v14  ;;  %v3024_v31 = vmax.f32 %v3016_v34, 0.0 }
 0x483   :  { %5324 = vmatpush3.msra.mxu0 %v4052_v24  ;;  %5316 = vmatprep.subr.mxu1 %v7524_v2 }
 0x484   :  { %5325 = vmatprep.subr.mxu0 %v7524_v2  ;;  %5317 = vmatpush3.msra.mxu1 %v4045_v51 }
 0x485   :  { %5326 = vmatpush3.msra.mxu0 %v4051_v5  ;;  %5318 = vmatprep.subr.mxu1 %v7524_v2 }
 0x486   :  { %5327 = vmatprep.subr.mxu0 %v7524_v2  ;;  %5319 = vmatpush3.msra.mxu1 %v4044_v54 }
 0x487   :  { %5320 = vmatprep.mubr.msk.f32.mxu1 %vm5497_vm0, %v7524_v2  ;;  %5328 = vmatpush3.msra.mxu0 %v4050_v29 }
 0x488   :  { %5321 = vmatmul.mubr.msk.f32.vlgmr.msra.gmra.mxu1 %vm1470_vm3, %v3022_v23  ;;  %5329 = vmatprep.subr.mxu0 %v7524_v2 }
 0x489   :  { %5334 = vmatprep.subr.mxu1 %v7524_v2  ;;  %5330 = vmatpush3.msra.mxu0 %v4049_v39 }
 0x48a   :  { %5331 = vmatprep.mubr.msk.f32.mxu0 %vm5497_vm0, %v7524_v2  ;;  %5335 = vmatpush3.msra.mxu1 %v4057_v3 }
 0x48b   :  { %5332 = vmatmul.mubr.msk.f32.vlgmr.msra.gmra.mxu0 %vm1470_vm3, %v3023_v16  ;;  %5336 = vmatprep.subr.mxu1 %v7524_v2 }
 0x48c   :  { %5345 = vmatprep.subr.mxu0 %v7524_v2  ;;  %5337 = vmatpush3.msra.mxu1 %v4056_v7 }
 0x48d   :  { %5346 = vmatpush3.msra.mxu0 %v4062_v33  ;;  %5338 = vmatprep.subr.mxu1 %v7524_v2 }
 0x48e   :  { %5347 = vmatprep.subr.mxu0 %v7524_v2  ;;  %5339 = vmatpush3.msra.mxu1 %v4055_v41 }
 0x48f   :  { %5348 = vmatpush3.msra.mxu0 %v4061_v8  ;;  %5340 = vmatprep.subr.mxu1 %v7524_v2 }
 0x490   :  { %5349 = vmatprep.subr.mxu0 %v7524_v2  ;;  %5341 = vmatpush3.msra.mxu1 %v4054_v53 }
 0x491   :  { %5342 = vmatprep.mubr.msk.f32.mxu1 %vm5497_vm0, %v7524_v2  ;;  %5350 = vmatpush3.msra.mxu0 %v4060_v35 }
 0x492   :  { %5343 = vmatmul.mubr.msk.f32.vlgmr.msra.gmra.mxu1 %vm1470_vm3, %v3024_v31  ;;  %5351 = vmatprep.subr.mxu0 %v7524_v2 }
 0x493   :  { %5352 = vmatpush3.msra.mxu0 %v4059_v47  ;;  %5353 = vmatprep.mubr.msk.f32.mxu0 %vm5497_vm0, %v7524_v2 }
 0x494   :  { %5354 = vmatmul.mubr.msk.f32.vlgmr.msra.gmra.mxu0 %vm1470_vm3, %v3025_v43  ;;  %5356 = vmatprep.subr.mxu1 %v7524_v2 }
 0x495   :  { %5388 = vmatprep.mubr.msk.f32.mxu1 %vm5497_vm0, %v7524_v2  ;;  %5357 = vmatpush3.msra.mxu1 %v3679_v17 }
 0x496   :  { %5358 = vmatprep.subr.mxu1 %v7524_v2 }
 0x497   :  { %5359 = vmatpush3.msra.mxu1 %v3678_v0 }
 0x498   :  { %5360 = vmatprep.subr.mxu1 %v7524_v2 }
 0x499   :  { %5361 = vmatpush3.msra.mxu1 %v3677_v36 }
 0x49a   :  { %5362 = vmatprep.subr.mxu1 %v7524_v2 }
 0x49b   :  { %5363 = vmatpush3.msra.mxu1 %v3676_v19 }
 0x49c   :  { %5364 = vmatprep.subr.mxu1 %v7524_v2 }
 0x49d   :  { %5365 = vmatpush3.msra.mxu1 %v3675_v56 }
 0x49e   :  { %5366 = vmatprep.subr.mxu1 %v7524_v2 }
 0x49f   :  { %5367 = vmatpush3.msra.mxu1 %v3674_v59 }
 0x4a0   :  { %5368 = vmatprep.subr.mxu1 %v7524_v2 }
 0x4a1   :  { %5369 = vmatpush3.msra.mxu1 %v3673_v38 }
 0x4a2   :  { %5370 = vmatprep.subr.mxu1 %v7524_v2 }
 0x4a3   :  { %5371 = vmatpush3.msra.mxu1 %v3672_v61 }
 0x4a4   :  { %5372 = vmatprep.subr.mxu1 %v7524_v2 }
 0x4a5   :  { %5373 = vmatpush3.msra.mxu1 %v3671_v6 }
 0x4a6   :  { %5374 = vmatprep.subr.mxu1 %v7524_v2 }
 0x4a7   :  { %5375 = vmatpush3.msra.mxu1 %v3670_v58 }
 0x4a8   :  { %5376 = vmatprep.subr.mxu1 %v7524_v2 }
 0x4a9   :  { %5377 = vmatpush3.msra.mxu1 %v3669_v27 }
 0x4aa   :  { %5378 = vmatprep.subr.mxu1 %v7524_v2 }
 0x4ab   :  { %5379 = vmatpush3.msra.mxu1 %v3668_v15 }
 0x4ac   :  { %5380 = vmatprep.subr.mxu1 %v7524_v2 }
 0x4ad   :  { %5381 = vmatpush3.msra.mxu1 %v3667_v12 }
 0x4ae   :  { %5382 = vmatprep.subr.mxu1 %v7524_v2 }
 0x4af   :  { %5383 = vmatpush3.msra.mxu1 %v3666_v28 }
 0x4b0   :  { %5384 = vmatprep.subr.mxu1 %v7524_v2 }
 0x4b1   :  { %5385 = vmatpush3.msra.mxu1 %v3665_v18 }
 0x4b2   :  { %5386 = vmatprep.subr.mxu1 %v7524_v2 }
 0x4b3   :  { %5387 = vmatpush3.msra.mxu1 %v3664_v45 }
 0x536   :  { %v3104_v1 = vpop.f32.mrf.mxu1 }
 0x538   :  { %v5278_v63 = vpop.f32.mrf.mxu1  ;;  %v3177_v44 = vpop.f32.mrf.mxu0 }
 0x539   :  { %v3178_v32 = vadd.f32 %v3177_v44, %v3104_v1 }
 0x53a   :  { %v5289_v20 = vpop.f32.mrf.mxu0 }
 0x53e   :  { %v3255_v37 = vpop.f32.mrf.mxu1 }
 0x53f   :  { %v3259_v26 = vadd.f32 %v3255_v37, %v3178_v32 }
 0x540   :  { %v5300_v57 = vpop.f32.mrf.mxu1 }
 0x541   :  { %v3334_v10 = vpop.f32.mrf.mxu0 }
 0x542   :  { %v3338_v14 = vadd.f32 %v3334_v10, %v3259_v26 }
 0x543   :  { %v5311_v9 = vpop.f32.mrf.mxu0 }
 0x548   :  { %v3413_v25 = vpop.f32.mrf.mxu1 }
 0x549   :  { %v3417_v2 = vadd.f32 %v3413_v25, %v3338_v14 }
 0x54a   :  { %v5322_v13 = vpop.f32.mrf.mxu1 }
 0x54b   :  { %v3492_v42 = vpop.f32.mrf.mxu0 }
 0x54c   :  { %v3496_v50 = vadd.f32 %v3492_v42, %v3417_v2 }
 0x54d   :  { %v5333_v24 = vpop.f32.mrf.mxu0 }
 0x552   :  { %v3571_v4 = vpop.f32.mrf.mxu1 }
 0x553   :  { %v3575_v46 = vadd.f32 %v3571_v4, %v3496_v50 }
 0x554   :  { %v5344_v51 = vpop.f32.mrf.mxu1  ;;  %v3650_v55 = vpop.f32.mrf.mxu0 }
 0x555   :  { %v3654_v11 = vadd.f32 %v3650_v55, %v3575_v46 }
 0x556   :  { %v5355_v5 = vpop.f32.mrf.mxu0 }
 0x557   :  { %v3662_v54 = vadd.f32 %v4064_v48, %v3654_v11 }
 0x559   :  { %v3663_v60 = vmax.f32 %v3662_v54, 0.0 }
 0x55b   :  { %5389 = vmatmul.mubr.f32.vlgmr.msra.gmra.mxu1 %v3663_v60 }
 0x61b   :  { %v3753_v29 = vpop.f32.mrf.mxu1 }
 0x61c   :  { %v3754_v22 = vadd.f32 %v4065_v21, %v3753_v29 }
 0x61d   :  { %v5390_v30 = vpop.f32.mrf.mxu1 }
 0x61e   :  { %3757 = vst [vmem:[#allocation8] sm:$0xff] %v3754_v22 }
 0x61f   :  { %5476 = shalt.err (!%p5473_p5)
}
 0x620   :  { %3767 = dma.vmem_to_hbm [thread:$0]  %s3765_s0, 128, %s7509_s11, [#allocation4]  }
 0x621   :  { %5489 = dma.done.wait [#allocation4], 128  }
 0x622   :  { %5490 = vsyncadd [#allocation4], 4294967168 }
 0x623   :  { %3771 = vsyncpa [#allocation3], 1 }
 0x624   :  { %3772 = vsyncpa [#allocation6], 1 }
 0x625   :  { %3773 = vsyncpa [#allocation4], 1 }

</bundles_post_ra>
